<compile_context>
chip_gen: v6e
topology: v6e:2x2x1
jax: 0.10.0
libtpu: 0.0.40
codegen_flags: <defaults>
</compile_context>

<pallas_src>
import functools

import numpy as np

import jax
import jax.numpy as jnp
from jax import lax
from jax.experimental import pallas as pl
from jax.experimental.pallas import tpu as pltpu


def _lrelu(x):
    return jnp.where(x >= 0.0, x, 0.2 * x)


# ----------------------------------------------------------------------------
# One-time weight packing: OIHW conv weight -> per-row-tap block-Toeplitz mats.
# ----------------------------------------------------------------------------
def _toeplitz_pack(w, *, w_in, w_out, stride, pad):
    """Returns T of shape (K, w_in*Cin, w_out*Cout) with
       T[kh, wi*Cin + ci, ow*Cout + co] = w[co, ci, kh, wi - stride*ow + pad]
    (zero when that kw falls outside [0, K)).  For a lane-dense row slab
    A of shape (Ho, w_in*Cin), A @ T[kh] is the kh-tap contribution to the
    lane-dense (Ho, w_out*Cout) output; column padding and column stride of the
    conv are folded into the band structure."""
    cout, cin, K, _ = w.shape
    whw = jnp.transpose(w, (2, 3, 1, 0))                    # (K, K, Cin, Cout)
    wi = np.arange(w_in)[:, None]
    ow = np.arange(w_out)[None, :]
    kw = wi - stride * ow + pad                             # (w_in, w_out)
    valid = (kw >= 0) & (kw < K)
    kw_c = np.clip(kw, 0, K - 1)
    t = whw[:, kw_c]                                        # (K, w_in, w_out, Cin, Cout)
    t = jnp.where(jnp.asarray(valid)[None, :, :, None, None], t, 0.0)
    t = jnp.transpose(t, (0, 1, 3, 2, 4))                   # (K, w_in, Cin, w_out, Cout)
    return t.reshape(K, w_in * cin, w_out * cout)


def prepare_weights(weights, H, W):
    """One-time packing of the five OIHW conv weights (bias=False) into the
    per-kh Toeplitz matrices consumed by the fused kernel (hoisted out of the
    jitted forward on purpose)."""
    w1, w2, w3, w4, w5 = weights
    Wo1 = W // 2
    Wo3 = W // 4
    t1 = _toeplitz_pack(w1, w_in=W,   w_out=Wo1, stride=2, pad=4)  # (9, W,      Wo1*16)
    t2 = _toeplitz_pack(w2, w_in=Wo1, w_out=Wo1, stride=1, pad=3)  # (7, Wo1*16, Wo1*32)
    t3 = _toeplitz_pack(w3, w_in=Wo1, w_out=Wo3, stride=2, pad=2)  # (5, Wo1*32, Wo3*64)
    t4 = _toeplitz_pack(w4, w_in=Wo3, w_out=Wo3, stride=1, pad=1)  # (3, Wo3*64, Wo3*C)
    t5 = _toeplitz_pack(w5, w_in=Wo3, w_out=Wo3, stride=1, pad=1)  # (3, Wo3*C,  Wo3*C)
    return t1, t2, t3, t4, t5


# ----------------------------------------------------------------------------
# The single fused kernel: all five conv layers for one image per grid step.
# ----------------------------------------------------------------------------
def _fused_kernel(x_ref, t1_ref, t2_ref, t3_ref, t4_ref, t5_ref, o_ref,
                  xrp_ref, a1p_ref, a2p_ref, a3p_ref, a4p_ref,
                  *, W, Ho1, Wo1, Ho3, Wo3, C):
    f32 = jnp.float32

    # -- stage 0: row-parity split of the raw input into a row-padded scratch.
    #    xrp[r, m, :] == x[2*m + r - 4, :]  (zero outside [0, 2*Ho1)).
    zrow2 = jnp.zeros((2, W), f32)
    for r in range(2):
        xrp_ref[r, 0:2, :] = zrow2                       # halo rows only
        xrp_ref[r, Ho1 + 2:Ho1 + 4, :] = zrow2
    xv = x_ref[0, 0]                                     # (H, W) raw input
    for m in range(Ho1):
        xrp_ref[0, 2 + m:3 + m, :] = xv[2 * m:2 * m + 1, :]
        xrp_ref[1, 2 + m:3 + m, :] = xv[2 * m + 1:2 * m + 2, :]

    # -- layer 1: Conv(1->16, k9, s2, p4) + LReLU.  kh = 2a + r picks parity
    #    plane r, row offset a; columns handled by the Toeplitz band of T1.
    acc1 = jnp.zeros((Ho1, Wo1 * 16), f32)
    for kh in range(9):
        r, a = kh % 2, kh // 2
        acc1 = acc1 + jnp.dot(xrp_ref[r, a:a + Ho1, :], t1_ref[kh],
                              preferred_element_type=f32)
    acc1 = _lrelu(acc1)                                  # (Ho1, Wo1*16) lane-dense

    # -- layer 2: Conv(16->32, k7, s1, p3) + LReLU (row pad 3 in scratch).
    zrow3 = jnp.zeros((3, Wo1 * 16), f32)
    a1p_ref[0:3, :] = zrow3
    a1p_ref[Ho1 + 3:Ho1 + 6, :] = zrow3
    a1p_ref[3:3 + Ho1, :] = acc1
    acc2 = jnp.zeros((Ho1, Wo1 * 32), f32)
    for kh in range(7):
        acc2 = acc2 + jnp.dot(a1p_ref[kh:kh + Ho1, :], t2_ref[kh],
                              preferred_element_type=f32)
    acc2 = _lrelu(acc2)                                  # (Ho1, Wo1*32)

    # -- layer 3: Conv(32->64, k5, s2, p2) + LReLU.  act2 rows split by parity
    #    into two row-padded planes; kh = 2a + r picks plane r, row offset a.
    zrowa = jnp.zeros((1, Wo1 * 32), f32)
    for r in range(2):
        a2p_ref[r, 0:1, :] = zrowa
        a2p_ref[r, Ho3 + 1:Ho3 + 2, :] = zrowa
    for i in range(Ho3):
        a2p_ref[0, 1 + i:2 + i, :] = acc2[2 * i:2 * i + 1, :]
        a2p_ref[1, 1 + i:2 + i, :] = acc2[2 * i + 1:2 * i + 2, :]
    acc3 = jnp.zeros((Ho3, Wo3 * 64), f32)
    for kh in range(5):
        r, a = kh % 2, kh // 2
        acc3 = acc3 + jnp.dot(a2p_ref[r, a:a + Ho3, :], t3_ref[kh],
                              preferred_element_type=f32)
    acc3 = _lrelu(acc3)                                  # (Ho3, Wo3*64)

    # -- layer 4: Conv(64->C, k3, s1, p1) + LReLU (row pad 1).
    zrowb = jnp.zeros((1, Wo3 * 64), f32)
    a3p_ref[0:1, :] = zrowb
    a3p_ref[Ho3 + 1:Ho3 + 2, :] = zrowb
    a3p_ref[1:1 + Ho3, :] = acc3
    acc4 = jnp.zeros((Ho3, Wo3 * C), f32)
    for kh in range(3):
        acc4 = acc4 + jnp.dot(a3p_ref[kh:kh + Ho3, :], t4_ref[kh],
                              preferred_element_type=f32)
    acc4 = _lrelu(acc4)                                  # (Ho3, Wo3*C)

    # -- layer 5: Conv(C->C, k3, s1, p1) + Sigmoid.
    zrowc = jnp.zeros((1, Wo3 * C), f32)
    a4p_ref[0:1, :] = zrowc
    a4p_ref[Ho3 + 1:Ho3 + 2, :] = zrowc
    a4p_ref[1:1 + Ho3, :] = acc4
    acc5 = jnp.zeros((Ho3, Wo3 * C), f32)
    for kh in range(3):
        acc5 = acc5 + jnp.dot(a4p_ref[kh:kh + Ho3, :], t5_ref[kh],
                              preferred_element_type=f32)
    # sigmoid: exp on the EUP, exact divide on a single (Ho3, Wo3*C) tile.
    o_ref[0] = 1.0 / (1.0 + jnp.exp(-acc5))


def _fused_call(x, t1, t2, t3, t4, t5, *, W, Ho1, Wo1, Ho3, Wo3, C):
    N = x.shape[0]
    H = x.shape[2]
    kern = functools.partial(_fused_kernel, W=W, Ho1=Ho1, Wo1=Wo1,
                             Ho3=Ho3, Wo3=Wo3, C=C)
    return pl.pallas_call(
        kern,
        out_shape=jax.ShapeDtypeStruct((N, Ho3, Wo3 * C), jnp.float32),
        grid_spec=pltpu.PrefetchScalarGridSpec(
            num_scalar_prefetch=0,
            grid=(N,),
            in_specs=[
                pl.BlockSpec((1, 1, H, W), lambda n: (n, 0, 0, 0)),
                # constant index maps: weights are DMA'd once and stay in VMEM
                pl.BlockSpec(t1.shape, lambda n: (0, 0, 0)),
                pl.BlockSpec(t2.shape, lambda n: (0, 0, 0)),
                pl.BlockSpec(t3.shape, lambda n: (0, 0, 0)),
                pl.BlockSpec(t4.shape, lambda n: (0, 0, 0)),
                pl.BlockSpec(t5.shape, lambda n: (0, 0, 0)),
            ],
            out_specs=pl.BlockSpec((1, Ho3, Wo3 * C), lambda n: (n, 0, 0)),
            scratch_shapes=[
                pltpu.VMEM((2, Ho1 + 4, W), jnp.float32),         # input row-parity planes
                pltpu.VMEM((Ho1 + 6, Wo1 * 16), jnp.float32),     # act1, row pad 3
                pltpu.VMEM((2, Ho3 + 2, Wo1 * 32), jnp.float32),  # act2 parity planes, row pad 1
                pltpu.VMEM((Ho3 + 2, Wo3 * 64), jnp.float32),     # act3, row pad 1
                pltpu.VMEM((Ho3 + 2, Wo3 * C), jnp.float32),      # act4, row pad 1
            ],
        ),
        compiler_params=pltpu.CompilerParams(
            dimension_semantics=("parallel",)),
    )(x, t1, t2, t3, t4, t5)


# ----------------------------------------------------------------------------
# Jitted forward: one pallas_call + one tiny NCHW re-layout of the output.
# ----------------------------------------------------------------------------
@jax.jit
def mask_condition_model(x_nchw, packed):
    """x_nchw: (N, 1, H, W); packed: output of prepare_weights."""
    t1, t2, t3, t4, t5 = packed
    N, cin, H, W = x_nchw.shape
    assert cin == 1 and H % 4 == 0 and W % 4 == 0
    Ho1, Wo1 = H // 2, W // 2
    Ho3, Wo3 = H // 4, W // 4
    C = t5.shape[2] // Wo3
    out = _fused_call(x_nchw, t1, t2, t3, t4, t5,
                      W=W, Ho1=Ho1, Wo1=Wo1, Ho3=Ho3, Wo3=Wo3, C=C)
    # (N, Ho3, Wo3*C) lane-dense -> NCHW (tiny tensor, one XLA transpose).
    return jnp.transpose(out.reshape(N, Ho3, Wo3, C), (0, 3, 1, 2))


# ----------------------------------------------------------------------------
# Pure-JAX reference (verification only).
# ----------------------------------------------------------------------------
def _ref_conv(x, w, stride, pad):
    return lax.conv_general_dilated(
        x, w, window_strides=(stride, stride),
        padding=[(pad, pad), (pad, pad)],
        dimension_numbers=("NCHW", "OIHW", "NCHW"),
        precision=lax.Precision.HIGHEST)


def reference(x, weights):
    w1, w2, w3, w4, w5 = weights
    y = _lrelu(_ref_conv(x, w1, 2, 4))
    y = _lrelu(_ref_conv(y, w2, 1, 3))
    y = _lrelu(_ref_conv(y, w3, 2, 2))
    y = _lrelu(_ref_conv(y, w4, 1, 1))
    y = _ref_conv(y, w5, 1, 1)
    return 1.0 / (1.0 + jnp.exp(-y))


# ----------------------------------------------------------------------------
if __name__ == "__main__":
    key = jax.random.PRNGKey(0)
    N, H, W, C = 2, 16, 16, 64
    ks = jax.random.split(key, 6)

    x = jax.random.uniform(ks[0], (N, 1, H, W), jnp.float32)   # mask-like input

    def winit(k, co, ci, kk):
        scale = 1.0 / float(kk * kk * ci) ** 0.5
        return jax.random.normal(k, (co, ci, kk, kk), jnp.float32) * scale

    weights = (
        winit(ks[1], 16, 1, 9),
        winit(ks[2], 32, 16, 7),
        winit(ks[3], 64, 32, 5),
        winit(ks[4], C, 64, 3),
        winit(ks[5], C, C, 3),
    )

    packed = prepare_weights(weights, H, W)      # one-time weight packing
    out = mask_condition_model(x, packed)
    out = jax.block_until_ready(out)

    ref = reference(x, weights)
    assert out.shape == (N, C, H // 4, W // 4)
    assert jnp.allclose(out, ref, atol=1e-3, rtol=1e-3), "mismatch vs reference"

    print("KERNEL_OK")
</pallas_src>

<mosaic_0001>
module attributes {stable_mosaic.version = 11 : i64} {
  func.func @_fused_kernel(%arg0: i32, %arg1: memref<1x1x16x16xf32, #tpu.memory_space<vmem>>, %arg2: memref<9x16x128xf32, #tpu.memory_space<vmem>>, %arg3: memref<7x128x256xf32, #tpu.memory_space<vmem>>, %arg4: memref<5x256x256xf32, #tpu.memory_space<vmem>>, %arg5: memref<3x256x256xf32, #tpu.memory_space<vmem>>, %arg6: memref<3x256x256xf32, #tpu.memory_space<vmem>>, %arg7: memref<1x4x256xf32, #tpu.memory_space<vmem>>, %arg8: memref<2x12x16xf32, #tpu.memory_space<vmem>>, %arg9: memref<14x128xf32, #tpu.memory_space<vmem>>, %arg10: memref<2x6x256xf32, #tpu.memory_space<vmem>>, %arg11: memref<6x256xf32, #tpu.memory_space<vmem>>, %arg12: memref<6x256xf32, #tpu.memory_space<vmem>>) attributes {dimension_semantics = [#tpu.dimension_semantics<parallel>], iteration_bounds = array<i64: 2>, scalar_prefetch = 0 : i64, scratch_operands = 5 : i64, tpu.core_type = #tpu.core_type<tc>, window_params = [{transform_indices = @transform_0, window_bounds = array<i64: 1, 1, 16, 16>}, {pipeline_mode = #tpu.pipeline_mode<synchronous>, transform_indices = @transform_1, window_bounds = array<i64: 9, 16, 128>}, {pipeline_mode = #tpu.pipeline_mode<synchronous>, transform_indices = @transform_2, window_bounds = array<i64: 7, 128, 256>}, {pipeline_mode = #tpu.pipeline_mode<synchronous>, transform_indices = @transform_3, window_bounds = array<i64: 5, 256, 256>}, {pipeline_mode = #tpu.pipeline_mode<synchronous>, transform_indices = @transform_4, window_bounds = array<i64: 3, 256, 256>}, {pipeline_mode = #tpu.pipeline_mode<synchronous>, transform_indices = @transform_5, window_bounds = array<i64: 3, 256, 256>}, {transform_indices = @transform_6, window_bounds = array<i64: 1, 4, 256>}]} {
    %cst = arith.constant 0.000000e+00 : f32
    %0 = vector.broadcast %cst : f32 to vector<2x16xf32>
    %c0 = arith.constant 0 : index
    %c0_0 = arith.constant 0 : index
    %c0_1 = arith.constant 0 : index
    %1 = vector.load %arg8[%c0, %c0_0, %c0_1] : memref<2x12x16xf32, #tpu.memory_space<vmem>>, vector<1x2x16xf32>
    %2 = vector.shape_cast %1 : vector<1x2x16xf32> to vector<2x16xf32>
    %3 = vector.shape_cast %0 : vector<2x16xf32> to vector<1x2x16xf32>
    tpu.vector_store %arg8[%c0, %c0_0, %c0_1], %3 {strides = array<i32>} : memref<2x12x16xf32, #tpu.memory_space<vmem>>, vector<1x2x16xf32>,
    %c0_2 = arith.constant 0 : index
    %c10 = arith.constant 10 : index
    %c0_3 = arith.constant 0 : index
    %4 = vector.load %arg8[%c0_2, %c10, %c0_3] : memref<2x12x16xf32, #tpu.memory_space<vmem>>, vector<1x2x16xf32>
    %5 = vector.shape_cast %4 : vector<1x2x16xf32> to vector<2x16xf32>
    %6 = vector.shape_cast %0 : vector<2x16xf32> to vector<1x2x16xf32>
    tpu.vector_store %arg8[%c0_2, %c10, %c0_3], %6 {strides = array<i32>} : memref<2x12x16xf32, #tpu.memory_space<vmem>>, vector<1x2x16xf32>,
    %c1 = arith.constant 1 : index
    %c0_4 = arith.constant 0 : index
    %c0_5 = arith.constant 0 : index
    %7 = vector.load %arg8[%c1, %c0_4, %c0_5] : memref<2x12x16xf32, #tpu.memory_space<vmem>>, vector<1x2x16xf32>
    %8 = vector.shape_cast %7 : vector<1x2x16xf32> to vector<2x16xf32>
    %9 = vector.shape_cast %0 : vector<2x16xf32> to vector<1x2x16xf32>
    tpu.vector_store %arg8[%c1, %c0_4, %c0_5], %9 {strides = array<i32>} : memref<2x12x16xf32, #tpu.memory_space<vmem>>, vector<1x2x16xf32>,
    %c1_6 = arith.constant 1 : index
    %c10_7 = arith.constant 10 : index
    %c0_8 = arith.constant 0 : index
    %10 = vector.load %arg8[%c1_6, %c10_7, %c0_8] : memref<2x12x16xf32, #tpu.memory_space<vmem>>, vector<1x2x16xf32>
    %11 = vector.shape_cast %10 : vector<1x2x16xf32> to vector<2x16xf32>
    %12 = vector.shape_cast %0 : vector<2x16xf32> to vector<1x2x16xf32>
    tpu.vector_store %arg8[%c1_6, %c10_7, %c0_8], %12 {strides = array<i32>} : memref<2x12x16xf32, #tpu.memory_space<vmem>>, vector<1x2x16xf32>,
    %c0_9 = arith.constant 0 : index
    %c0_10 = arith.constant 0 : index
    %c0_11 = arith.constant 0 : index
    %c0_12 = arith.constant 0 : index
    %13 = vector.load %arg1[%c0_9, %c0_10, %c0_11, %c0_12] : memref<1x1x16x16xf32, #tpu.memory_space<vmem>>, vector<1x1x16x16xf32>
    %14 = vector.shape_cast %13 : vector<1x1x16x16xf32> to vector<16x16xf32>
    %15 = vector.extract_strided_slice %14 {offsets = [0, 0], sizes = [1, 16], strides = [1, 1]} : vector<16x16xf32> to vector<1x16xf32>
    %c0_13 = arith.constant 0 : index
    %c2 = arith.constant 2 : index
    %c0_14 = arith.constant 0 : index
    %16 = vector.load %arg8[%c0_13, %c2, %c0_14] : memref<2x12x16xf32, #tpu.memory_space<vmem>>, vector<1x1x16xf32>
    %17 = vector.shape_cast %16 : vector<1x1x16xf32> to vector<1x16xf32>
    %18 = vector.shape_cast %15 : vector<1x16xf32> to vector<1x1x16xf32>
    tpu.vector_store %arg8[%c0_13, %c2, %c0_14], %18 {strides = array<i32>} : memref<2x12x16xf32, #tpu.memory_space<vmem>>, vector<1x1x16xf32>,
    %19 = vector.extract_strided_slice %14 {offsets = [1, 0], sizes = [1, 16], strides = [1, 1]} : vector<16x16xf32> to vector<1x16xf32>
    %c1_15 = arith.constant 1 : index
    %c2_16 = arith.constant 2 : index
    %c0_17 = arith.constant 0 : index
    %20 = vector.load %arg8[%c1_15, %c2_16, %c0_17] : memref<2x12x16xf32, #tpu.memory_space<vmem>>, vector<1x1x16xf32>
    %21 = vector.shape_cast %20 : vector<1x1x16xf32> to vector<1x16xf32>
    %22 = vector.shape_cast %19 : vector<1x16xf32> to vector<1x1x16xf32>
    tpu.vector_store %arg8[%c1_15, %c2_16, %c0_17], %22 {strides = array<i32>} : memref<2x12x16xf32, #tpu.memory_space<vmem>>, vector<1x1x16xf32>,
    %23 = vector.extract_strided_slice %14 {offsets = [2, 0], sizes = [1, 16], strides = [1, 1]} : vector<16x16xf32> to vector<1x16xf32>
    %c0_18 = arith.constant 0 : index
    %c3 = arith.constant 3 : index
    %c0_19 = arith.constant 0 : index
    %24 = vector.load %arg8[%c0_18, %c3, %c0_19] : memref<2x12x16xf32, #tpu.memory_space<vmem>>, vector<1x1x16xf32>
    %25 = vector.shape_cast %24 : vector<1x1x16xf32> to vector<1x16xf32>
    %26 = vector.shape_cast %23 : vector<1x16xf32> to vector<1x1x16xf32>
    tpu.vector_store %arg8[%c0_18, %c3, %c0_19], %26 {strides = array<i32>} : memref<2x12x16xf32, #tpu.memory_space<vmem>>, vector<1x1x16xf32>,
    %27 = vector.extract_strided_slice %14 {offsets = [3, 0], sizes = [1, 16], strides = [1, 1]} : vector<16x16xf32> to vector<1x16xf32>
    %c1_20 = arith.constant 1 : index
    %c3_21 = arith.constant 3 : index
    %c0_22 = arith.constant 0 : index
    %28 = vector.load %arg8[%c1_20, %c3_21, %c0_22] : memref<2x12x16xf32, #tpu.memory_space<vmem>>, vector<1x1x16xf32>
    %29 = vector.shape_cast %28 : vector<1x1x16xf32> to vector<1x16xf32>
    %30 = vector.shape_cast %27 : vector<1x16xf32> to vector<1x1x16xf32>
    tpu.vector_store %arg8[%c1_20, %c3_21, %c0_22], %30 {strides = array<i32>} : memref<2x12x16xf32, #tpu.memory_space<vmem>>, vector<1x1x16xf32>,
    %31 = vector.extract_strided_slice %14 {offsets = [4, 0], sizes = [1, 16], strides = [1, 1]} : vector<16x16xf32> to vector<1x16xf32>
    %c0_23 = arith.constant 0 : index
    %c4 = arith.constant 4 : index
    %c0_24 = arith.constant 0 : index
    %32 = vector.load %arg8[%c0_23, %c4, %c0_24] : memref<2x12x16xf32, #tpu.memory_space<vmem>>, vector<1x1x16xf32>
    %33 = vector.shape_cast %32 : vector<1x1x16xf32> to vector<1x16xf32>
    %34 = vector.shape_cast %31 : vector<1x16xf32> to vector<1x1x16xf32>
    tpu.vector_store %arg8[%c0_23, %c4, %c0_24], %34 {strides = array<i32>} : memref<2x12x16xf32, #tpu.memory_space<vmem>>, vector<1x1x16xf32>,
    %35 = vector.extract_strided_slice %14 {offsets = [5, 0], sizes = [1, 16], strides = [1, 1]} : vector<16x16xf32> to vector<1x16xf32>
    %c1_25 = arith.constant 1 : index
    %c4_26 = arith.constant 4 : index
    %c0_27 = arith.constant 0 : index
    %36 = vector.load %arg8[%c1_25, %c4_26, %c0_27] : memref<2x12x16xf32, #tpu.memory_space<vmem>>, vector<1x1x16xf32>
    %37 = vector.shape_cast %36 : vector<1x1x16xf32> to vector<1x16xf32>
    %38 = vector.shape_cast %35 : vector<1x16xf32> to vector<1x1x16xf32>
    tpu.vector_store %arg8[%c1_25, %c4_26, %c0_27], %38 {strides = array<i32>} : memref<2x12x16xf32, #tpu.memory_space<vmem>>, vector<1x1x16xf32>,
    %39 = vector.extract_strided_slice %14 {offsets = [6, 0], sizes = [1, 16], strides = [1, 1]} : vector<16x16xf32> to vector<1x16xf32>
    %c0_28 = arith.constant 0 : index
    %c5 = arith.constant 5 : index
    %c0_29 = arith.constant 0 : index
    %40 = vector.load %arg8[%c0_28, %c5, %c0_29] : memref<2x12x16xf32, #tpu.memory_space<vmem>>, vector<1x1x16xf32>
    %41 = vector.shape_cast %40 : vector<1x1x16xf32> to vector<1x16xf32>
    %42 = vector.shape_cast %39 : vector<1x16xf32> to vector<1x1x16xf32>
    tpu.vector_store %arg8[%c0_28, %c5, %c0_29], %42 {strides = array<i32>} : memref<2x12x16xf32, #tpu.memory_space<vmem>>, vector<1x1x16xf32>,
    %43 = vector.extract_strided_slice %14 {offsets = [7, 0], sizes = [1, 16], strides = [1, 1]} : vector<16x16xf32> to vector<1x16xf32>
    %c1_30 = arith.constant 1 : index
    %c5_31 = arith.constant 5 : index
    %c0_32 = arith.constant 0 : index
    %44 = vector.load %arg8[%c1_30, %c5_31, %c0_32] : memref<2x12x16xf32, #tpu.memory_space<vmem>>, vector<1x1x16xf32>
    %45 = vector.shape_cast %44 : vector<1x1x16xf32> to vector<1x16xf32>
    %46 = vector.shape_cast %43 : vector<1x16xf32> to vector<1x1x16xf32>
    tpu.vector_store %arg8[%c1_30, %c5_31, %c0_32], %46 {strides = array<i32>} : memref<2x12x16xf32, #tpu.memory_space<vmem>>, vector<1x1x16xf32>,
    %47 = vector.extract_strided_slice %14 {offsets = [8, 0], sizes = [1, 16], strides = [1, 1]} : vector<16x16xf32> to vector<1x16xf32>
    %c0_33 = arith.constant 0 : index
    %c6 = arith.constant 6 : index
    %c0_34 = arith.constant 0 : index
    %48 = vector.load %arg8[%c0_33, %c6, %c0_34] : memref<2x12x16xf32, #tpu.memory_space<vmem>>, vector<1x1x16xf32>
    %49 = vector.shape_cast %48 : vector<1x1x16xf32> to vector<1x16xf32>
    %50 = vector.shape_cast %47 : vector<1x16xf32> to vector<1x1x16xf32>
    tpu.vector_store %arg8[%c0_33, %c6, %c0_34], %50 {strides = array<i32>} : memref<2x12x16xf32, #tpu.memory_space<vmem>>, vector<1x1x16xf32>,
    %51 = vector.extract_strided_slice %14 {offsets = [9, 0], sizes = [1, 16], strides = [1, 1]} : vector<16x16xf32> to vector<1x16xf32>
    %c1_35 = arith.constant 1 : index
    %c6_36 = arith.constant 6 : index
    %c0_37 = arith.constant 0 : index
    %52 = vector.load %arg8[%c1_35, %c6_36, %c0_37] : memref<2x12x16xf32, #tpu.memory_space<vmem>>, vector<1x1x16xf32>
    %53 = vector.shape_cast %52 : vector<1x1x16xf32> to vector<1x16xf32>
    %54 = vector.shape_cast %51 : vector<1x16xf32> to vector<1x1x16xf32>
    tpu.vector_store %arg8[%c1_35, %c6_36, %c0_37], %54 {strides = array<i32>} : memref<2x12x16xf32, #tpu.memory_space<vmem>>, vector<1x1x16xf32>,
    %55 = vector.extract_strided_slice %14 {offsets = [10, 0], sizes = [1, 16], strides = [1, 1]} : vector<16x16xf32> to vector<1x16xf32>
    %c0_38 = arith.constant 0 : index
    %c7 = arith.constant 7 : index
    %c0_39 = arith.constant 0 : index
    %56 = vector.load %arg8[%c0_38, %c7, %c0_39] : memref<2x12x16xf32, #tpu.memory_space<vmem>>, vector<1x1x16xf32>
    %57 = vector.shape_cast %56 : vector<1x1x16xf32> to vector<1x16xf32>
    %58 = vector.shape_cast %55 : vector<1x16xf32> to vector<1x1x16xf32>
    tpu.vector_store %arg8[%c0_38, %c7, %c0_39], %58 {strides = array<i32>} : memref<2x12x16xf32, #tpu.memory_space<vmem>>, vector<1x1x16xf32>,
    %59 = vector.extract_strided_slice %14 {offsets = [11, 0], sizes = [1, 16], strides = [1, 1]} : vector<16x16xf32> to vector<1x16xf32>
    %c1_40 = arith.constant 1 : index
    %c7_41 = arith.constant 7 : index
    %c0_42 = arith.constant 0 : index
    %60 = vector.load %arg8[%c1_40, %c7_41, %c0_42] : memref<2x12x16xf32, #tpu.memory_space<vmem>>, vector<1x1x16xf32>
    %61 = vector.shape_cast %60 : vector<1x1x16xf32> to vector<1x16xf32>
    %62 = vector.shape_cast %59 : vector<1x16xf32> to vector<1x1x16xf32>
    tpu.vector_store %arg8[%c1_40, %c7_41, %c0_42], %62 {strides = array<i32>} : memref<2x12x16xf32, #tpu.memory_space<vmem>>, vector<1x1x16xf32>,
    %63 = vector.extract_strided_slice %14 {offsets = [12, 0], sizes = [1, 16], strides = [1, 1]} : vector<16x16xf32> to vector<1x16xf32>
    %c0_43 = arith.constant 0 : index
    %c8 = arith.constant 8 : index
    %c0_44 = arith.constant 0 : index
    %64 = vector.load %arg8[%c0_43, %c8, %c0_44] : memref<2x12x16xf32, #tpu.memory_space<vmem>>, vector<1x1x16xf32>
    %65 = vector.shape_cast %64 : vector<1x1x16xf32> to vector<1x16xf32>
    %66 = vector.shape_cast %63 : vector<1x16xf32> to vector<1x1x16xf32>
    tpu.vector_store %arg8[%c0_43, %c8, %c0_44], %66 {strides = array<i32>} : memref<2x12x16xf32, #tpu.memory_space<vmem>>, vector<1x1x16xf32>,
    %67 = vector.extract_strided_slice %14 {offsets = [13, 0], sizes = [1, 16], strides = [1, 1]} : vector<16x16xf32> to vector<1x16xf32>
    %c1_45 = arith.constant 1 : index
    %c8_46 = arith.constant 8 : index
    %c0_47 = arith.constant 0 : index
    %68 = vector.load %arg8[%c1_45, %c8_46, %c0_47] : memref<2x12x16xf32, #tpu.memory_space<vmem>>, vector<1x1x16xf32>
    %69 = vector.shape_cast %68 : vector<1x1x16xf32> to vector<1x16xf32>
    %70 = vector.shape_cast %67 : vector<1x16xf32> to vector<1x1x16xf32>
    tpu.vector_store %arg8[%c1_45, %c8_46, %c0_47], %70 {strides = array<i32>} : memref<2x12x16xf32, #tpu.memory_space<vmem>>, vector<1x1x16xf32>,
    %71 = vector.extract_strided_slice %14 {offsets = [14, 0], sizes = [1, 16], strides = [1, 1]} : vector<16x16xf32> to vector<1x16xf32>
    %c0_48 = arith.constant 0 : index
    %c9 = arith.constant 9 : index
    %c0_49 = arith.constant 0 : index
    %72 = vector.load %arg8[%c0_48, %c9, %c0_49] : memref<2x12x16xf32, #tpu.memory_space<vmem>>, vector<1x1x16xf32>
    %73 = vector.shape_cast %72 : vector<1x1x16xf32> to vector<1x16xf32>
    %74 = vector.shape_cast %71 : vector<1x16xf32> to vector<1x1x16xf32>
    tpu.vector_store %arg8[%c0_48, %c9, %c0_49], %74 {strides = array<i32>} : memref<2x12x16xf32, #tpu.memory_space<vmem>>, vector<1x1x16xf32>,
    %75 = vector.extract_strided_slice %14 {offsets = [15, 0], sizes = [1, 16], strides = [1, 1]} : vector<16x16xf32> to vector<1x16xf32>
    %c1_50 = arith.constant 1 : index
    %c9_51 = arith.constant 9 : index
    %c0_52 = arith.constant 0 : index
    %76 = vector.load %arg8[%c1_50, %c9_51, %c0_52] : memref<2x12x16xf32, #tpu.memory_space<vmem>>, vector<1x1x16xf32>
    %77 = vector.shape_cast %76 : vector<1x1x16xf32> to vector<1x16xf32>
    %78 = vector.shape_cast %75 : vector<1x16xf32> to vector<1x1x16xf32>
    tpu.vector_store %arg8[%c1_50, %c9_51, %c0_52], %78 {strides = array<i32>} : memref<2x12x16xf32, #tpu.memory_space<vmem>>, vector<1x1x16xf32>,
    %cst_53 = arith.constant 0.000000e+00 : f32
    %79 = vector.broadcast %cst_53 : f32 to vector<8x128xf32>
    %c0_54 = arith.constant 0 : index
    %c0_55 = arith.constant 0 : index
    %c0_56 = arith.constant 0 : index
    %80 = vector.load %arg8[%c0_54, %c0_55, %c0_56] : memref<2x12x16xf32, #tpu.memory_space<vmem>>, vector<1x8x16xf32>
    %81 = vector.shape_cast %80 : vector<1x8x16xf32> to vector<8x16xf32>
    %c0_57 = arith.constant 0 : index
    %c0_58 = arith.constant 0 : index
    %c0_59 = arith.constant 0 : index
    %82 = vector.load %arg2[%c0_57, %c0_58, %c0_59] : memref<9x16x128xf32, #tpu.memory_space<vmem>>, vector<1x16x128xf32>
    %83 = vector.shape_cast %82 : vector<1x16x128xf32> to vector<16x128xf32>
    %cst_60 = arith.constant dense<0.000000e+00> : vector<8x128xf32>
    %84 = tpu.matmul %81, %83, %cst_60 {dimension_numbers = #tpu.dot_dimension_numbers<[1], [0], [0], [1], [0, 0, 1, 1], [], []>} : vector<8x16xf32>, vector<16x128xf32>, vector<8x128xf32> -> vector<8x128xf32>
    %85 = arith.addf %79, %84 : vector<8x128xf32>
    %c1_61 = arith.constant 1 : index
    %c0_62 = arith.constant 0 : index
    %c0_63 = arith.constant 0 : index
    %86 = vector.load %arg8[%c1_61, %c0_62, %c0_63] : memref<2x12x16xf32, #tpu.memory_space<vmem>>, vector<1x8x16xf32>
    %87 = vector.shape_cast %86 : vector<1x8x16xf32> to vector<8x16xf32>
    %c1_64 = arith.constant 1 : index
    %c0_65 = arith.constant 0 : index
    %c0_66 = arith.constant 0 : index
    %88 = vector.load %arg2[%c1_64, %c0_65, %c0_66] : memref<9x16x128xf32, #tpu.memory_space<vmem>>, vector<1x16x128xf32>
    %89 = vector.shape_cast %88 : vector<1x16x128xf32> to vector<16x128xf32>
    %cst_67 = arith.constant dense<0.000000e+00> : vector<8x128xf32>
    %90 = tpu.matmul %87, %89, %cst_67 {dimension_numbers = #tpu.dot_dimension_numbers<[1], [0], [0], [1], [0, 0, 1, 1], [], []>} : vector<8x16xf32>, vector<16x128xf32>, vector<8x128xf32> -> vector<8x128xf32>
    %91 = arith.addf %85, %90 : vector<8x128xf32>
    %c0_68 = arith.constant 0 : index
    %c1_69 = arith.constant 1 : index
    %c0_70 = arith.constant 0 : index
    %92 = vector.load %arg8[%c0_68, %c1_69, %c0_70] : memref<2x12x16xf32, #tpu.memory_space<vmem>>, vector<1x8x16xf32>
    %93 = vector.shape_cast %92 : vector<1x8x16xf32> to vector<8x16xf32>
    %c2_71 = arith.constant 2 : index
    %c0_72 = arith.constant 0 : index
    %c0_73 = arith.constant 0 : index
    %94 = vector.load %arg2[%c2_71, %c0_72, %c0_73] : memref<9x16x128xf32, #tpu.memory_space<vmem>>, vector<1x16x128xf32>
    %95 = vector.shape_cast %94 : vector<1x16x128xf32> to vector<16x128xf32>
    %cst_74 = arith.constant dense<0.000000e+00> : vector<8x128xf32>
    %96 = tpu.matmul %93, %95, %cst_74 {dimension_numbers = #tpu.dot_dimension_numbers<[1], [0], [0], [1], [0, 0, 1, 1], [], []>} : vector<8x16xf32>, vector<16x128xf32>, vector<8x128xf32> -> vector<8x128xf32>
    %97 = arith.addf %91, %96 : vector<8x128xf32>
    %c1_75 = arith.constant 1 : index
    %c1_76 = arith.constant 1 : index
    %c0_77 = arith.constant 0 : index
    %98 = vector.load %arg8[%c1_75, %c1_76, %c0_77] : memref<2x12x16xf32, #tpu.memory_space<vmem>>, vector<1x8x16xf32>
    %99 = vector.shape_cast %98 : vector<1x8x16xf32> to vector<8x16xf32>
    %c3_78 = arith.constant 3 : index
    %c0_79 = arith.constant 0 : index
    %c0_80 = arith.constant 0 : index
    %100 = vector.load %arg2[%c3_78, %c0_79, %c0_80] : memref<9x16x128xf32, #tpu.memory_space<vmem>>, vector<1x16x128xf32>
    %101 = vector.shape_cast %100 : vector<1x16x128xf32> to vector<16x128xf32>
    %cst_81 = arith.constant dense<0.000000e+00> : vector<8x128xf32>
    %102 = tpu.matmul %99, %101, %cst_81 {dimension_numbers = #tpu.dot_dimension_numbers<[1], [0], [0], [1], [0, 0, 1, 1], [], []>} : vector<8x16xf32>, vector<16x128xf32>, vector<8x128xf32> -> vector<8x128xf32>
    %103 = arith.addf %97, %102 : vector<8x128xf32>
    %c0_82 = arith.constant 0 : index
    %c2_83 = arith.constant 2 : index
    %c0_84 = arith.constant 0 : index
    %104 = vector.load %arg8[%c0_82, %c2_83, %c0_84] : memref<2x12x16xf32, #tpu.memory_space<vmem>>, vector<1x8x16xf32>
    %105 = vector.shape_cast %104 : vector<1x8x16xf32> to vector<8x16xf32>
    %c4_85 = arith.constant 4 : index
    %c0_86 = arith.constant 0 : index
    %c0_87 = arith.constant 0 : index
    %106 = vector.load %arg2[%c4_85, %c0_86, %c0_87] : memref<9x16x128xf32, #tpu.memory_space<vmem>>, vector<1x16x128xf32>
    %107 = vector.shape_cast %106 : vector<1x16x128xf32> to vector<16x128xf32>
    %cst_88 = arith.constant dense<0.000000e+00> : vector<8x128xf32>
    %108 = tpu.matmul %105, %107, %cst_88 {dimension_numbers = #tpu.dot_dimension_numbers<[1], [0], [0], [1], [0, 0, 1, 1], [], []>} : vector<8x16xf32>, vector<16x128xf32>, vector<8x128xf32> -> vector<8x128xf32>
    %109 = arith.addf %103, %108 : vector<8x128xf32>
    %c1_89 = arith.constant 1 : index
    %c2_90 = arith.constant 2 : index
    %c0_91 = arith.constant 0 : index
    %110 = vector.load %arg8[%c1_89, %c2_90, %c0_91] : memref<2x12x16xf32, #tpu.memory_space<vmem>>, vector<1x8x16xf32>
    %111 = vector.shape_cast %110 : vector<1x8x16xf32> to vector<8x16xf32>
    %c5_92 = arith.constant 5 : index
    %c0_93 = arith.constant 0 : index
    %c0_94 = arith.constant 0 : index
    %112 = vector.load %arg2[%c5_92, %c0_93, %c0_94] : memref<9x16x128xf32, #tpu.memory_space<vmem>>, vector<1x16x128xf32>
    %113 = vector.shape_cast %112 : vector<1x16x128xf32> to vector<16x128xf32>
    %cst_95 = arith.constant dense<0.000000e+00> : vector<8x128xf32>
    %114 = tpu.matmul %111, %113, %cst_95 {dimension_numbers = #tpu.dot_dimension_numbers<[1], [0], [0], [1], [0, 0, 1, 1], [], []>} : vector<8x16xf32>, vector<16x128xf32>, vector<8x128xf32> -> vector<8x128xf32>
    %115 = arith.addf %109, %114 : vector<8x128xf32>
    %c0_96 = arith.constant 0 : index
    %c3_97 = arith.constant 3 : index
    %c0_98 = arith.constant 0 : index
    %116 = vector.load %arg8[%c0_96, %c3_97, %c0_98] : memref<2x12x16xf32, #tpu.memory_space<vmem>>, vector<1x8x16xf32>
    %117 = vector.shape_cast %116 : vector<1x8x16xf32> to vector<8x16xf32>
    %c6_99 = arith.constant 6 : index
    %c0_100 = arith.constant 0 : index
    %c0_101 = arith.constant 0 : index
    %118 = vector.load %arg2[%c6_99, %c0_100, %c0_101] : memref<9x16x128xf32, #tpu.memory_space<vmem>>, vector<1x16x128xf32>
    %119 = vector.shape_cast %118 : vector<1x16x128xf32> to vector<16x128xf32>
    %cst_102 = arith.constant dense<0.000000e+00> : vector<8x128xf32>
    %120 = tpu.matmul %117, %119, %cst_102 {dimension_numbers = #tpu.dot_dimension_numbers<[1], [0], [0], [1], [0, 0, 1, 1], [], []>} : vector<8x16xf32>, vector<16x128xf32>, vector<8x128xf32> -> vector<8x128xf32>
    %121 = arith.addf %115, %120 : vector<8x128xf32>
    %c1_103 = arith.constant 1 : index
    %c3_104 = arith.constant 3 : index
    %c0_105 = arith.constant 0 : index
    %122 = vector.load %arg8[%c1_103, %c3_104, %c0_105] : memref<2x12x16xf32, #tpu.memory_space<vmem>>, vector<1x8x16xf32>
    %123 = vector.shape_cast %122 : vector<1x8x16xf32> to vector<8x16xf32>
    %c7_106 = arith.constant 7 : index
    %c0_107 = arith.constant 0 : index
    %c0_108 = arith.constant 0 : index
    %124 = vector.load %arg2[%c7_106, %c0_107, %c0_108] : memref<9x16x128xf32, #tpu.memory_space<vmem>>, vector<1x16x128xf32>
    %125 = vector.shape_cast %124 : vector<1x16x128xf32> to vector<16x128xf32>
    %cst_109 = arith.constant dense<0.000000e+00> : vector<8x128xf32>
    %126 = tpu.matmul %123, %125, %cst_109 {dimension_numbers = #tpu.dot_dimension_numbers<[1], [0], [0], [1], [0, 0, 1, 1], [], []>} : vector<8x16xf32>, vector<16x128xf32>, vector<8x128xf32> -> vector<8x128xf32>
    %127 = arith.addf %121, %126 : vector<8x128xf32>
    %c0_110 = arith.constant 0 : index
    %c4_111 = arith.constant 4 : index
    %c0_112 = arith.constant 0 : index
    %128 = vector.load %arg8[%c0_110, %c4_111, %c0_112] : memref<2x12x16xf32, #tpu.memory_space<vmem>>, vector<1x8x16xf32>
    %129 = vector.shape_cast %128 : vector<1x8x16xf32> to vector<8x16xf32>
    %c8_113 = arith.constant 8 : index
    %c0_114 = arith.constant 0 : index
    %c0_115 = arith.constant 0 : index
    %130 = vector.load %arg2[%c8_113, %c0_114, %c0_115] : memref<9x16x128xf32, #tpu.memory_space<vmem>>, vector<1x16x128xf32>
    %131 = vector.shape_cast %130 : vector<1x16x128xf32> to vector<16x128xf32>
    %cst_116 = arith.constant dense<0.000000e+00> : vector<8x128xf32>
    %132 = tpu.matmul %129, %131, %cst_116 {dimension_numbers = #tpu.dot_dimension_numbers<[1], [0], [0], [1], [0, 0, 1, 1], [], []>} : vector<8x16xf32>, vector<16x128xf32>, vector<8x128xf32> -> vector<8x128xf32>
    %133 = arith.addf %127, %132 : vector<8x128xf32>
    %cst_117 = arith.constant 0.000000e+00 : f32
    %134 = vector.broadcast %cst_117 : f32 to vector<8x128xf32>
    %135 = arith.cmpf oge, %133, %134 : vector<8x128xf32>
    %cst_118 = arith.constant 2.000000e-01 : f32
    %136 = vector.broadcast %cst_118 : f32 to vector<8x128xf32>
    %137 = arith.mulf %136, %133 : vector<8x128xf32>
    %138 = arith.select %135, %133, %137 : vector<8x128xi1>, vector<8x128xf32>
    %cst_119 = arith.constant 0.000000e+00 : f32
    %139 = vector.broadcast %cst_119 : f32 to vector<3x128xf32>
    %c0_120 = arith.constant 0 : index
    %c0_121 = arith.constant 0 : index
    %140 = vector.load %arg9[%c0_120, %c0_121] : memref<14x128xf32, #tpu.memory_space<vmem>>, vector<3x128xf32>
    tpu.vector_store %arg9[%c0_120, %c0_121], %139 {strides = array<i32>} : memref<14x128xf32, #tpu.memory_space<vmem>>, vector<3x128xf32>,
    %c11 = arith.constant 11 : index
    %c0_122 = arith.constant 0 : index
    %141 = vector.load %arg9[%c11, %c0_122] : memref<14x128xf32, #tpu.memory_space<vmem>>, vector<3x128xf32>
    tpu.vector_store %arg9[%c11, %c0_122], %139 {strides = array<i32>} : memref<14x128xf32, #tpu.memory_space<vmem>>, vector<3x128xf32>,
    %c3_123 = arith.constant 3 : index
    %c0_124 = arith.constant 0 : index
    %142 = vector.load %arg9[%c3_123, %c0_124] : memref<14x128xf32, #tpu.memory_space<vmem>>, vector<8x128xf32>
    tpu.vector_store %arg9[%c3_123, %c0_124], %138 {strides = array<i32>} : memref<14x128xf32, #tpu.memory_space<vmem>>, vector<8x128xf32>,
    %cst_125 = arith.constant 0.000000e+00 : f32
    %143 = vector.broadcast %cst_125 : f32 to vector<8x256xf32>
    %c0_126 = arith.constant 0 : index
    %c0_127 = arith.constant 0 : index
    %144 = vector.load %arg9[%c0_126, %c0_127] : memref<14x128xf32, #tpu.memory_space<vmem>>, vector<8x128xf32>
    %c0_128 = arith.constant 0 : index
    %c0_129 = arith.constant 0 : index
    %c0_130 = arith.constant 0 : index
    %145 = vector.load %arg3[%c0_128, %c0_129, %c0_130] : memref<7x128x256xf32, #tpu.memory_space<vmem>>, vector<1x128x256xf32>
    %146 = vector.shape_cast %145 : vector<1x128x256xf32> to vector<128x256xf32>
    %cst_131 = arith.constant dense<0.000000e+00> : vector<8x256xf32>
    %147 = tpu.matmul %144, %146, %cst_131 {dimension_numbers = #tpu.dot_dimension_numbers<[1], [0], [0], [1], [0, 0, 1, 1], [], []>} : vector<8x128xf32>, vector<128x256xf32>, vector<8x256xf32> -> vector<8x256xf32>
    %148 = arith.addf %143, %147 : vector<8x256xf32>
    %c1_132 = arith.constant 1 : index
    %c0_133 = arith.constant 0 : index
    %149 = vector.load %arg9[%c1_132, %c0_133] : memref<14x128xf32, #tpu.memory_space<vmem>>, vector<8x128xf32>
    %c1_134 = arith.constant 1 : index
    %c0_135 = arith.constant 0 : index
    %c0_136 = arith.constant 0 : index
    %150 = vector.load %arg3[%c1_134, %c0_135, %c0_136] : memref<7x128x256xf32, #tpu.memory_space<vmem>>, vector<1x128x256xf32>
    %151 = vector.shape_cast %150 : vector<1x128x256xf32> to vector<128x256xf32>
    %cst_137 = arith.constant dense<0.000000e+00> : vector<8x256xf32>
    %152 = tpu.matmul %149, %151, %cst_137 {dimension_numbers = #tpu.dot_dimension_numbers<[1], [0], [0], [1], [0, 0, 1, 1], [], []>} : vector<8x128xf32>, vector<128x256xf32>, vector<8x256xf32> -> vector<8x256xf32>
    %153 = arith.addf %148, %152 : vector<8x256xf32>
    %c2_138 = arith.constant 2 : index
    %c0_139 = arith.constant 0 : index
    %154 = vector.load %arg9[%c2_138, %c0_139] : memref<14x128xf32, #tpu.memory_space<vmem>>, vector<8x128xf32>
    %c2_140 = arith.constant 2 : index
    %c0_141 = arith.constant 0 : index
    %c0_142 = arith.constant 0 : index
    %155 = vector.load %arg3[%c2_140, %c0_141, %c0_142] : memref<7x128x256xf32, #tpu.memory_space<vmem>>, vector<1x128x256xf32>
    %156 = vector.shape_cast %155 : vector<1x128x256xf32> to vector<128x256xf32>
    %cst_143 = arith.constant dense<0.000000e+00> : vector<8x256xf32>
    %157 = tpu.matmul %154, %156, %cst_143 {dimension_numbers = #tpu.dot_dimension_numbers<[1], [0], [0], [1], [0, 0, 1, 1], [], []>} : vector<8x128xf32>, vector<128x256xf32>, vector<8x256xf32> -> vector<8x256xf32>
    %158 = arith.addf %153, %157 : vector<8x256xf32>
    %c3_144 = arith.constant 3 : index
    %c0_145 = arith.constant 0 : index
    %159 = vector.load %arg9[%c3_144, %c0_145] : memref<14x128xf32, #tpu.memory_space<vmem>>, vector<8x128xf32>
    %c3_146 = arith.constant 3 : index
    %c0_147 = arith.constant 0 : index
    %c0_148 = arith.constant 0 : index
    %160 = vector.load %arg3[%c3_146, %c0_147, %c0_148] : memref<7x128x256xf32, #tpu.memory_space<vmem>>, vector<1x128x256xf32>
    %161 = vector.shape_cast %160 : vector<1x128x256xf32> to vector<128x256xf32>
    %cst_149 = arith.constant dense<0.000000e+00> : vector<8x256xf32>
    %162 = tpu.matmul %159, %161, %cst_149 {dimension_numbers = #tpu.dot_dimension_numbers<[1], [0], [0], [1], [0, 0, 1, 1], [], []>} : vector<8x128xf32>, vector<128x256xf32>, vector<8x256xf32> -> vector<8x256xf32>
    %163 = arith.addf %158, %162 : vector<8x256xf32>
    %c4_150 = arith.constant 4 : index
    %c0_151 = arith.constant 0 : index
    %164 = vector.load %arg9[%c4_150, %c0_151] : memref<14x128xf32, #tpu.memory_space<vmem>>, vector<8x128xf32>
    %c4_152 = arith.constant 4 : index
    %c0_153 = arith.constant 0 : index
    %c0_154 = arith.constant 0 : index
    %165 = vector.load %arg3[%c4_152, %c0_153, %c0_154] : memref<7x128x256xf32, #tpu.memory_space<vmem>>, vector<1x128x256xf32>
    %166 = vector.shape_cast %165 : vector<1x128x256xf32> to vector<128x256xf32>
    %cst_155 = arith.constant dense<0.000000e+00> : vector<8x256xf32>
    %167 = tpu.matmul %164, %166, %cst_155 {dimension_numbers = #tpu.dot_dimension_numbers<[1], [0], [0], [1], [0, 0, 1, 1], [], []>} : vector<8x128xf32>, vector<128x256xf32>, vector<8x256xf32> -> vector<8x256xf32>
    %168 = arith.addf %163, %167 : vector<8x256xf32>
    %c5_156 = arith.constant 5 : index
    %c0_157 = arith.constant 0 : index
    %169 = vector.load %arg9[%c5_156, %c0_157] : memref<14x128xf32, #tpu.memory_space<vmem>>, vector<8x128xf32>
    %c5_158 = arith.constant 5 : index
    %c0_159 = arith.constant 0 : index
    %c0_160 = arith.constant 0 : index
    %170 = vector.load %arg3[%c5_158, %c0_159, %c0_160] : memref<7x128x256xf32, #tpu.memory_space<vmem>>, vector<1x128x256xf32>
    %171 = vector.shape_cast %170 : vector<1x128x256xf32> to vector<128x256xf32>
    %cst_161 = arith.constant dense<0.000000e+00> : vector<8x256xf32>
    %172 = tpu.matmul %169, %171, %cst_161 {dimension_numbers = #tpu.dot_dimension_numbers<[1], [0], [0], [1], [0, 0, 1, 1], [], []>} : vector<8x128xf32>, vector<128x256xf32>, vector<8x256xf32> -> vector<8x256xf32>
    %173 = arith.addf %168, %172 : vector<8x256xf32>
    %c6_162 = arith.constant 6 : index
    %c0_163 = arith.constant 0 : index
    %174 = vector.load %arg9[%c6_162, %c0_163] : memref<14x128xf32, #tpu.memory_space<vmem>>, vector<8x128xf32>
    %c6_164 = arith.constant 6 : index
    %c0_165 = arith.constant 0 : index
    %c0_166 = arith.constant 0 : index
    %175 = vector.load %arg3[%c6_164, %c0_165, %c0_166] : memref<7x128x256xf32, #tpu.memory_space<vmem>>, vector<1x128x256xf32>
    %176 = vector.shape_cast %175 : vector<1x128x256xf32> to vector<128x256xf32>
    %cst_167 = arith.constant dense<0.000000e+00> : vector<8x256xf32>
    %177 = tpu.matmul %174, %176, %cst_167 {dimension_numbers = #tpu.dot_dimension_numbers<[1], [0], [0], [1], [0, 0, 1, 1], [], []>} : vector<8x128xf32>, vector<128x256xf32>, vector<8x256xf32> -> vector<8x256xf32>
    %178 = arith.addf %173, %177 : vector<8x256xf32>
    %cst_168 = arith.constant 0.000000e+00 : f32
    %179 = vector.broadcast %cst_168 : f32 to vector<8x256xf32>
    %180 = arith.cmpf oge, %178, %179 : vector<8x256xf32>
    %cst_169 = arith.constant 2.000000e-01 : f32
    %181 = vector.broadcast %cst_169 : f32 to vector<8x256xf32>
    %182 = arith.mulf %181, %178 : vector<8x256xf32>
    %183 = arith.select %180, %178, %182 : vector<8x256xi1>, vector<8x256xf32>
    %cst_170 = arith.constant 0.000000e+00 : f32
    %184 = vector.broadcast %cst_170 : f32 to vector<1x256xf32>
    %c0_171 = arith.constant 0 : index
    %c0_172 = arith.constant 0 : index
    %c0_173 = arith.constant 0 : index
    %185 = vector.load %arg10[%c0_171, %c0_172, %c0_173] : memref<2x6x256xf32, #tpu.memory_space<vmem>>, vector<1x1x256xf32>
    %186 = vector.shape_cast %185 : vector<1x1x256xf32> to vector<1x256xf32>
    %187 = vector.shape_cast %184 : vector<1x256xf32> to vector<1x1x256xf32>
    tpu.vector_store %arg10[%c0_171, %c0_172, %c0_173], %187 {strides = array<i32>} : memref<2x6x256xf32, #tpu.memory_space<vmem>>, vector<1x1x256xf32>,
    %c0_174 = arith.constant 0 : index
    %c5_175 = arith.constant 5 : index
    %c0_176 = arith.constant 0 : index
    %188 = vector.load %arg10[%c0_174, %c5_175, %c0_176] : memref<2x6x256xf32, #tpu.memory_space<vmem>>, vector<1x1x256xf32>
    %189 = vector.shape_cast %188 : vector<1x1x256xf32> to vector<1x256xf32>
    %190 = vector.shape_cast %184 : vector<1x256xf32> to vector<1x1x256xf32>
    tpu.vector_store %arg10[%c0_174, %c5_175, %c0_176], %190 {strides = array<i32>} : memref<2x6x256xf32, #tpu.memory_space<vmem>>, vector<1x1x256xf32>,
    %c1_177 = arith.constant 1 : index
    %c0_178 = arith.constant 0 : index
    %c0_179 = arith.constant 0 : index
    %191 = vector.load %arg10[%c1_177, %c0_178, %c0_179] : memref<2x6x256xf32, #tpu.memory_space<vmem>>, vector<1x1x256xf32>
    %192 = vector.shape_cast %191 : vector<1x1x256xf32> to vector<1x256xf32>
    %193 = vector.shape_cast %184 : vector<1x256xf32> to vector<1x1x256xf32>
    tpu.vector_store %arg10[%c1_177, %c0_178, %c0_179], %193 {strides = array<i32>} : memref<2x6x256xf32, #tpu.memory_space<vmem>>, vector<1x1x256xf32>,
    %c1_180 = arith.constant 1 : index
    %c5_181 = arith.constant 5 : index
    %c0_182 = arith.constant 0 : index
    %194 = vector.load %arg10[%c1_180, %c5_181, %c0_182] : memref<2x6x256xf32, #tpu.memory_space<vmem>>, vector<1x1x256xf32>
    %195 = vector.shape_cast %194 : vector<1x1x256xf32> to vector<1x256xf32>
    %196 = vector.shape_cast %184 : vector<1x256xf32> to vector<1x1x256xf32>
    tpu.vector_store %arg10[%c1_180, %c5_181, %c0_182], %196 {strides = array<i32>} : memref<2x6x256xf32, #tpu.memory_space<vmem>>, vector<1x1x256xf32>,
    %197 = vector.extract_strided_slice %183 {offsets = [0, 0], sizes = [1, 256], strides = [1, 1]} : vector<8x256xf32> to vector<1x256xf32>
    %c0_183 = arith.constant 0 : index
    %c1_184 = arith.constant 1 : index
    %c0_185 = arith.constant 0 : index
    %198 = vector.load %arg10[%c0_183, %c1_184, %c0_185] : memref<2x6x256xf32, #tpu.memory_space<vmem>>, vector<1x1x256xf32>
    %199 = vector.shape_cast %198 : vector<1x1x256xf32> to vector<1x256xf32>
    %200 = vector.shape_cast %197 : vector<1x256xf32> to vector<1x1x256xf32>
    tpu.vector_store %arg10[%c0_183, %c1_184, %c0_185], %200 {strides = array<i32>} : memref<2x6x256xf32, #tpu.memory_space<vmem>>, vector<1x1x256xf32>,
    %201 = vector.extract_strided_slice %183 {offsets = [1, 0], sizes = [1, 256], strides = [1, 1]} : vector<8x256xf32> to vector<1x256xf32>
    %c1_186 = arith.constant 1 : index
    %c1_187 = arith.constant 1 : index
    %c0_188 = arith.constant 0 : index
    %202 = vector.load %arg10[%c1_186, %c1_187, %c0_188] : memref<2x6x256xf32, #tpu.memory_space<vmem>>, vector<1x1x256xf32>
    %203 = vector.shape_cast %202 : vector<1x1x256xf32> to vector<1x256xf32>
    %204 = vector.shape_cast %201 : vector<1x256xf32> to vector<1x1x256xf32>
    tpu.vector_store %arg10[%c1_186, %c1_187, %c0_188], %204 {strides = array<i32>} : memref<2x6x256xf32, #tpu.memory_space<vmem>>, vector<1x1x256xf32>,
    %205 = vector.extract_strided_slice %183 {offsets = [2, 0], sizes = [1, 256], strides = [1, 1]} : vector<8x256xf32> to vector<1x256xf32>
    %c0_189 = arith.constant 0 : index
    %c2_190 = arith.constant 2 : index
    %c0_191 = arith.constant 0 : index
    %206 = vector.load %arg10[%c0_189, %c2_190, %c0_191] : memref<2x6x256xf32, #tpu.memory_space<vmem>>, vector<1x1x256xf32>
    %207 = vector.shape_cast %206 : vector<1x1x256xf32> to vector<1x256xf32>
    %208 = vector.shape_cast %205 : vector<1x256xf32> to vector<1x1x256xf32>
    tpu.vector_store %arg10[%c0_189, %c2_190, %c0_191], %208 {strides = array<i32>} : memref<2x6x256xf32, #tpu.memory_space<vmem>>, vector<1x1x256xf32>,
    %209 = vector.extract_strided_slice %183 {offsets = [3, 0], sizes = [1, 256], strides = [1, 1]} : vector<8x256xf32> to vector<1x256xf32>
    %c1_192 = arith.constant 1 : index
    %c2_193 = arith.constant 2 : index
    %c0_194 = arith.constant 0 : index
    %210 = vector.load %arg10[%c1_192, %c2_193, %c0_194] : memref<2x6x256xf32, #tpu.memory_space<vmem>>, vector<1x1x256xf32>
    %211 = vector.shape_cast %210 : vector<1x1x256xf32> to vector<1x256xf32>
    %212 = vector.shape_cast %209 : vector<1x256xf32> to vector<1x1x256xf32>
    tpu.vector_store %arg10[%c1_192, %c2_193, %c0_194], %212 {strides = array<i32>} : memref<2x6x256xf32, #tpu.memory_space<vmem>>, vector<1x1x256xf32>,
    %213 = vector.extract_strided_slice %183 {offsets = [4, 0], sizes = [1, 256], strides = [1, 1]} : vector<8x256xf32> to vector<1x256xf32>
    %c0_195 = arith.constant 0 : index
    %c3_196 = arith.constant 3 : index
    %c0_197 = arith.constant 0 : index
    %214 = vector.load %arg10[%c0_195, %c3_196, %c0_197] : memref<2x6x256xf32, #tpu.memory_space<vmem>>, vector<1x1x256xf32>
    %215 = vector.shape_cast %214 : vector<1x1x256xf32> to vector<1x256xf32>
    %216 = vector.shape_cast %213 : vector<1x256xf32> to vector<1x1x256xf32>
    tpu.vector_store %arg10[%c0_195, %c3_196, %c0_197], %216 {strides = array<i32>} : memref<2x6x256xf32, #tpu.memory_space<vmem>>, vector<1x1x256xf32>,
    %217 = vector.extract_strided_slice %183 {offsets = [5, 0], sizes = [1, 256], strides = [1, 1]} : vector<8x256xf32> to vector<1x256xf32>
    %c1_198 = arith.constant 1 : index
    %c3_199 = arith.constant 3 : index
    %c0_200 = arith.constant 0 : index
    %218 = vector.load %arg10[%c1_198, %c3_199, %c0_200] : memref<2x6x256xf32, #tpu.memory_space<vmem>>, vector<1x1x256xf32>
    %219 = vector.shape_cast %218 : vector<1x1x256xf32> to vector<1x256xf32>
    %220 = vector.shape_cast %217 : vector<1x256xf32> to vector<1x1x256xf32>
    tpu.vector_store %arg10[%c1_198, %c3_199, %c0_200], %220 {strides = array<i32>} : memref<2x6x256xf32, #tpu.memory_space<vmem>>, vector<1x1x256xf32>,
    %221 = vector.extract_strided_slice %183 {offsets = [6, 0], sizes = [1, 256], strides = [1, 1]} : vector<8x256xf32> to vector<1x256xf32>
    %c0_201 = arith.constant 0 : index
    %c4_202 = arith.constant 4 : index
    %c0_203 = arith.constant 0 : index
    %222 = vector.load %arg10[%c0_201, %c4_202, %c0_203] : memref<2x6x256xf32, #tpu.memory_space<vmem>>, vector<1x1x256xf32>
    %223 = vector.shape_cast %222 : vector<1x1x256xf32> to vector<1x256xf32>
    %224 = vector.shape_cast %221 : vector<1x256xf32> to vector<1x1x256xf32>
    tpu.vector_store %arg10[%c0_201, %c4_202, %c0_203], %224 {strides = array<i32>} : memref<2x6x256xf32, #tpu.memory_space<vmem>>, vector<1x1x256xf32>,
    %225 = vector.extract_strided_slice %183 {offsets = [7, 0], sizes = [1, 256], strides = [1, 1]} : vector<8x256xf32> to vector<1x256xf32>
    %c1_204 = arith.constant 1 : index
    %c4_205 = arith.constant 4 : index
    %c0_206 = arith.constant 0 : index
    %226 = vector.load %arg10[%c1_204, %c4_205, %c0_206] : memref<2x6x256xf32, #tpu.memory_space<vmem>>, vector<1x1x256xf32>
    %227 = vector.shape_cast %226 : vector<1x1x256xf32> to vector<1x256xf32>
    %228 = vector.shape_cast %225 : vector<1x256xf32> to vector<1x1x256xf32>
    tpu.vector_store %arg10[%c1_204, %c4_205, %c0_206], %228 {strides = array<i32>} : memref<2x6x256xf32, #tpu.memory_space<vmem>>, vector<1x1x256xf32>,
    %cst_207 = arith.constant 0.000000e+00 : f32
    %229 = vector.broadcast %cst_207 : f32 to vector<4x256xf32>
    %c0_208 = arith.constant 0 : index
    %c0_209 = arith.constant 0 : index
    %c0_210 = arith.constant 0 : index
    %230 = vector.load %arg10[%c0_208, %c0_209, %c0_210] : memref<2x6x256xf32, #tpu.memory_space<vmem>>, vector<1x4x256xf32>
    %231 = vector.shape_cast %230 : vector<1x4x256xf32> to vector<4x256xf32>
    %c0_211 = arith.constant 0 : index
    %c0_212 = arith.constant 0 : index
    %c0_213 = arith.constant 0 : index
    %232 = vector.load %arg4[%c0_211, %c0_212, %c0_213] : memref<5x256x256xf32, #tpu.memory_space<vmem>>, vector<1x256x256xf32>
    %233 = vector.shape_cast %232 : vector<1x256x256xf32> to vector<256x256xf32>
    %cst_214 = arith.constant dense<0.000000e+00> : vector<4x256xf32>
    %234 = tpu.matmul %231, %233, %cst_214 {dimension_numbers = #tpu.dot_dimension_numbers<[1], [0], [0], [1], [0, 0, 1, 1], [], []>} : vector<4x256xf32>, vector<256x256xf32>, vector<4x256xf32> -> vector<4x256xf32>
    %235 = arith.addf %229, %234 : vector<4x256xf32>
    %c1_215 = arith.constant 1 : index
    %c0_216 = arith.constant 0 : index
    %c0_217 = arith.constant 0 : index
    %236 = vector.load %arg10[%c1_215, %c0_216, %c0_217] : memref<2x6x256xf32, #tpu.memory_space<vmem>>, vector<1x4x256xf32>
    %237 = vector.shape_cast %236 : vector<1x4x256xf32> to vector<4x256xf32>
    %c1_218 = arith.constant 1 : index
    %c0_219 = arith.constant 0 : index
    %c0_220 = arith.constant 0 : index
    %238 = vector.load %arg4[%c1_218, %c0_219, %c0_220] : memref<5x256x256xf32, #tpu.memory_space<vmem>>, vector<1x256x256xf32>
    %239 = vector.shape_cast %238 : vector<1x256x256xf32> to vector<256x256xf32>
    %cst_221 = arith.constant dense<0.000000e+00> : vector<4x256xf32>
    %240 = tpu.matmul %237, %239, %cst_221 {dimension_numbers = #tpu.dot_dimension_numbers<[1], [0], [0], [1], [0, 0, 1, 1], [], []>} : vector<4x256xf32>, vector<256x256xf32>, vector<4x256xf32> -> vector<4x256xf32>
    %241 = arith.addf %235, %240 : vector<4x256xf32>
    %c0_222 = arith.constant 0 : index
    %c1_223 = arith.constant 1 : index
    %c0_224 = arith.constant 0 : index
    %242 = vector.load %arg10[%c0_222, %c1_223, %c0_224] : memref<2x6x256xf32, #tpu.memory_space<vmem>>, vector<1x4x256xf32>
    %243 = vector.shape_cast %242 : vector<1x4x256xf32> to vector<4x256xf32>
    %c2_225 = arith.constant 2 : index
    %c0_226 = arith.constant 0 : index
    %c0_227 = arith.constant 0 : index
    %244 = vector.load %arg4[%c2_225, %c0_226, %c0_227] : memref<5x256x256xf32, #tpu.memory_space<vmem>>, vector<1x256x256xf32>
    %245 = vector.shape_cast %244 : vector<1x256x256xf32> to vector<256x256xf32>
    %cst_228 = arith.constant dense<0.000000e+00> : vector<4x256xf32>
    %246 = tpu.matmul %243, %245, %cst_228 {dimension_numbers = #tpu.dot_dimension_numbers<[1], [0], [0], [1], [0, 0, 1, 1], [], []>} : vector<4x256xf32>, vector<256x256xf32>, vector<4x256xf32> -> vector<4x256xf32>
    %247 = arith.addf %241, %246 : vector<4x256xf32>
    %c1_229 = arith.constant 1 : index
    %c1_230 = arith.constant 1 : index
    %c0_231 = arith.constant 0 : index
    %248 = vector.load %arg10[%c1_229, %c1_230, %c0_231] : memref<2x6x256xf32, #tpu.memory_space<vmem>>, vector<1x4x256xf32>
    %249 = vector.shape_cast %248 : vector<1x4x256xf32> to vector<4x256xf32>
    %c3_232 = arith.constant 3 : index
    %c0_233 = arith.constant 0 : index
    %c0_234 = arith.constant 0 : index
    %250 = vector.load %arg4[%c3_232, %c0_233, %c0_234] : memref<5x256x256xf32, #tpu.memory_space<vmem>>, vector<1x256x256xf32>
    %251 = vector.shape_cast %250 : vector<1x256x256xf32> to vector<256x256xf32>
    %cst_235 = arith.constant dense<0.000000e+00> : vector<4x256xf32>
    %252 = tpu.matmul %249, %251, %cst_235 {dimension_numbers = #tpu.dot_dimension_numbers<[1], [0], [0], [1], [0, 0, 1, 1], [], []>} : vector<4x256xf32>, vector<256x256xf32>, vector<4x256xf32> -> vector<4x256xf32>
    %253 = arith.addf %247, %252 : vector<4x256xf32>
    %c0_236 = arith.constant 0 : index
    %c2_237 = arith.constant 2 : index
    %c0_238 = arith.constant 0 : index
    %254 = vector.load %arg10[%c0_236, %c2_237, %c0_238] : memref<2x6x256xf32, #tpu.memory_space<vmem>>, vector<1x4x256xf32>
    %255 = vector.shape_cast %254 : vector<1x4x256xf32> to vector<4x256xf32>
    %c4_239 = arith.constant 4 : index
    %c0_240 = arith.constant 0 : index
    %c0_241 = arith.constant 0 : index
    %256 = vector.load %arg4[%c4_239, %c0_240, %c0_241] : memref<5x256x256xf32, #tpu.memory_space<vmem>>, vector<1x256x256xf32>
    %257 = vector.shape_cast %256 : vector<1x256x256xf32> to vector<256x256xf32>
    %cst_242 = arith.constant dense<0.000000e+00> : vector<4x256xf32>
    %258 = tpu.matmul %255, %257, %cst_242 {dimension_numbers = #tpu.dot_dimension_numbers<[1], [0], [0], [1], [0, 0, 1, 1], [], []>} : vector<4x256xf32>, vector<256x256xf32>, vector<4x256xf32> -> vector<4x256xf32>
    %259 = arith.addf %253, %258 : vector<4x256xf32>
    %cst_243 = arith.constant 0.000000e+00 : f32
    %260 = vector.broadcast %cst_243 : f32 to vector<4x256xf32>
    %261 = arith.cmpf oge, %259, %260 : vector<4x256xf32>
    %cst_244 = arith.constant 2.000000e-01 : f32
    %262 = vector.broadcast %cst_244 : f32 to vector<4x256xf32>
    %263 = arith.mulf %262, %259 : vector<4x256xf32>
    %264 = arith.select %261, %259, %263 : vector<4x256xi1>, vector<4x256xf32>
    %cst_245 = arith.constant 0.000000e+00 : f32
    %265 = vector.broadcast %cst_245 : f32 to vector<1x256xf32>
    %c0_246 = arith.constant 0 : index
    %c0_247 = arith.constant 0 : index
    %266 = vector.load %arg11[%c0_246, %c0_247] : memref<6x256xf32, #tpu.memory_space<vmem>>, vector<1x256xf32>
    tpu.vector_store %arg11[%c0_246, %c0_247], %265 {strides = array<i32>} : memref<6x256xf32, #tpu.memory_space<vmem>>, vector<1x256xf32>,
    %c5_248 = arith.constant 5 : index
    %c0_249 = arith.constant 0 : index
    %267 = vector.load %arg11[%c5_248, %c0_249] : memref<6x256xf32, #tpu.memory_space<vmem>>, vector<1x256xf32>
    tpu.vector_store %arg11[%c5_248, %c0_249], %265 {strides = array<i32>} : memref<6x256xf32, #tpu.memory_space<vmem>>, vector<1x256xf32>,
    %c1_250 = arith.constant 1 : index
    %c0_251 = arith.constant 0 : index
    %268 = vector.load %arg11[%c1_250, %c0_251] : memref<6x256xf32, #tpu.memory_space<vmem>>, vector<4x256xf32>
    tpu.vector_store %arg11[%c1_250, %c0_251], %264 {strides = array<i32>} : memref<6x256xf32, #tpu.memory_space<vmem>>, vector<4x256xf32>,
    %cst_252 = arith.constant 0.000000e+00 : f32
    %269 = vector.broadcast %cst_252 : f32 to vector<4x256xf32>
    %c0_253 = arith.constant 0 : index
    %c0_254 = arith.constant 0 : index
    %270 = vector.load %arg11[%c0_253, %c0_254] : memref<6x256xf32, #tpu.memory_space<vmem>>, vector<4x256xf32>
    %c0_255 = arith.constant 0 : index
    %c0_256 = arith.constant 0 : index
    %c0_257 = arith.constant 0 : index
    %271 = vector.load %arg5[%c0_255, %c0_256, %c0_257] : memref<3x256x256xf32, #tpu.memory_space<vmem>>, vector<1x256x256xf32>
    %272 = vector.shape_cast %271 : vector<1x256x256xf32> to vector<256x256xf32>
    %cst_258 = arith.constant dense<0.000000e+00> : vector<4x256xf32>
    %273 = tpu.matmul %270, %272, %cst_258 {dimension_numbers = #tpu.dot_dimension_numbers<[1], [0], [0], [1], [0, 0, 1, 1], [], []>} : vector<4x256xf32>, vector<256x256xf32>, vector<4x256xf32> -> vector<4x256xf32>
    %274 = arith.addf %269, %273 : vector<4x256xf32>
    %c1_259 = arith.constant 1 : index
    %c0_260 = arith.constant 0 : index
    %275 = vector.load %arg11[%c1_259, %c0_260] : memref<6x256xf32, #tpu.memory_space<vmem>>, vector<4x256xf32>
    %c1_261 = arith.constant 1 : index
    %c0_262 = arith.constant 0 : index
    %c0_263 = arith.constant 0 : index
    %276 = vector.load %arg5[%c1_261, %c0_262, %c0_263] : memref<3x256x256xf32, #tpu.memory_space<vmem>>, vector<1x256x256xf32>
    %277 = vector.shape_cast %276 : vector<1x256x256xf32> to vector<256x256xf32>
    %cst_264 = arith.constant dense<0.000000e+00> : vector<4x256xf32>
    %278 = tpu.matmul %275, %277, %cst_264 {dimension_numbers = #tpu.dot_dimension_numbers<[1], [0], [0], [1], [0, 0, 1, 1], [], []>} : vector<4x256xf32>, vector<256x256xf32>, vector<4x256xf32> -> vector<4x256xf32>
    %279 = arith.addf %274, %278 : vector<4x256xf32>
    %c2_265 = arith.constant 2 : index
    %c0_266 = arith.constant 0 : index
    %280 = vector.load %arg11[%c2_265, %c0_266] : memref<6x256xf32, #tpu.memory_space<vmem>>, vector<4x256xf32>
    %c2_267 = arith.constant 2 : index
    %c0_268 = arith.constant 0 : index
    %c0_269 = arith.constant 0 : index
    %281 = vector.load %arg5[%c2_267, %c0_268, %c0_269] : memref<3x256x256xf32, #tpu.memory_space<vmem>>, vector<1x256x256xf32>
    %282 = vector.shape_cast %281 : vector<1x256x256xf32> to vector<256x256xf32>
    %cst_270 = arith.constant dense<0.000000e+00> : vector<4x256xf32>
    %283 = tpu.matmul %280, %282, %cst_270 {dimension_numbers = #tpu.dot_dimension_numbers<[1], [0], [0], [1], [0, 0, 1, 1], [], []>} : vector<4x256xf32>, vector<256x256xf32>, vector<4x256xf32> -> vector<4x256xf32>
    %284 = arith.addf %279, %283 : vector<4x256xf32>
    %cst_271 = arith.constant 0.000000e+00 : f32
    %285 = vector.broadcast %cst_271 : f32 to vector<4x256xf32>
    %286 = arith.cmpf oge, %284, %285 : vector<4x256xf32>
    %cst_272 = arith.constant 2.000000e-01 : f32
    %287 = vector.broadcast %cst_272 : f32 to vector<4x256xf32>
    %288 = arith.mulf %287, %284 : vector<4x256xf32>
    %289 = arith.select %286, %284, %288 : vector<4x256xi1>, vector<4x256xf32>
    %cst_273 = arith.constant 0.000000e+00 : f32
    %290 = vector.broadcast %cst_273 : f32 to vector<1x256xf32>
    %c0_274 = arith.constant 0 : index
    %c0_275 = arith.constant 0 : index
    %291 = vector.load %arg12[%c0_274, %c0_275] : memref<6x256xf32, #tpu.memory_space<vmem>>, vector<1x256xf32>
    tpu.vector_store %arg12[%c0_274, %c0_275], %290 {strides = array<i32>} : memref<6x256xf32, #tpu.memory_space<vmem>>, vector<1x256xf32>,
    %c5_276 = arith.constant 5 : index
    %c0_277 = arith.constant 0 : index
    %292 = vector.load %arg12[%c5_276, %c0_277] : memref<6x256xf32, #tpu.memory_space<vmem>>, vector<1x256xf32>
    tpu.vector_store %arg12[%c5_276, %c0_277], %290 {strides = array<i32>} : memref<6x256xf32, #tpu.memory_space<vmem>>, vector<1x256xf32>,
    %c1_278 = arith.constant 1 : index
    %c0_279 = arith.constant 0 : index
    %293 = vector.load %arg12[%c1_278, %c0_279] : memref<6x256xf32, #tpu.memory_space<vmem>>, vector<4x256xf32>
    tpu.vector_store %arg12[%c1_278, %c0_279], %289 {strides = array<i32>} : memref<6x256xf32, #tpu.memory_space<vmem>>, vector<4x256xf32>,
    %cst_280 = arith.constant 0.000000e+00 : f32
    %294 = vector.broadcast %cst_280 : f32 to vector<4x256xf32>
    %c0_281 = arith.constant 0 : index
    %c0_282 = arith.constant 0 : index
    %295 = vector.load %arg12[%c0_281, %c0_282] : memref<6x256xf32, #tpu.memory_space<vmem>>, vector<4x256xf32>
    %c0_283 = arith.constant 0 : index
    %c0_284 = arith.constant 0 : index
    %c0_285 = arith.constant 0 : index
    %296 = vector.load %arg6[%c0_283, %c0_284, %c0_285] : memref<3x256x256xf32, #tpu.memory_space<vmem>>, vector<1x256x256xf32>
    %297 = vector.shape_cast %296 : vector<1x256x256xf32> to vector<256x256xf32>
    %cst_286 = arith.constant dense<0.000000e+00> : vector<4x256xf32>
    %298 = tpu.matmul %295, %297, %cst_286 {dimension_numbers = #tpu.dot_dimension_numbers<[1], [0], [0], [1], [0, 0, 1, 1], [], []>} : vector<4x256xf32>, vector<256x256xf32>, vector<4x256xf32> -> vector<4x256xf32>
    %299 = arith.addf %294, %298 : vector<4x256xf32>
    %c1_287 = arith.constant 1 : index
    %c0_288 = arith.constant 0 : index
    %300 = vector.load %arg12[%c1_287, %c0_288] : memref<6x256xf32, #tpu.memory_space<vmem>>, vector<4x256xf32>
    %c1_289 = arith.constant 1 : index
    %c0_290 = arith.constant 0 : index
    %c0_291 = arith.constant 0 : index
    %301 = vector.load %arg6[%c1_289, %c0_290, %c0_291] : memref<3x256x256xf32, #tpu.memory_space<vmem>>, vector<1x256x256xf32>
    %302 = vector.shape_cast %301 : vector<1x256x256xf32> to vector<256x256xf32>
    %cst_292 = arith.constant dense<0.000000e+00> : vector<4x256xf32>
    %303 = tpu.matmul %300, %302, %cst_292 {dimension_numbers = #tpu.dot_dimension_numbers<[1], [0], [0], [1], [0, 0, 1, 1], [], []>} : vector<4x256xf32>, vector<256x256xf32>, vector<4x256xf32> -> vector<4x256xf32>
    %304 = arith.addf %299, %303 : vector<4x256xf32>
    %c2_293 = arith.constant 2 : index
    %c0_294 = arith.constant 0 : index
    %305 = vector.load %arg12[%c2_293, %c0_294] : memref<6x256xf32, #tpu.memory_space<vmem>>, vector<4x256xf32>
    %c2_295 = arith.constant 2 : index
    %c0_296 = arith.constant 0 : index
    %c0_297 = arith.constant 0 : index
    %306 = vector.load %arg6[%c2_295, %c0_296, %c0_297] : memref<3x256x256xf32, #tpu.memory_space<vmem>>, vector<1x256x256xf32>
    %307 = vector.shape_cast %306 : vector<1x256x256xf32> to vector<256x256xf32>
    %cst_298 = arith.constant dense<0.000000e+00> : vector<4x256xf32>
    %308 = tpu.matmul %305, %307, %cst_298 {dimension_numbers = #tpu.dot_dimension_numbers<[1], [0], [0], [1], [0, 0, 1, 1], [], []>} : vector<4x256xf32>, vector<256x256xf32>, vector<4x256xf32> -> vector<4x256xf32>
    %309 = arith.addf %304, %308 : vector<4x256xf32>
    %cst_299 = arith.constant 0.000000e+00 : f32
    %310 = vector.broadcast %cst_299 : f32 to vector<4x256xf32>
    %311 = arith.subf %310, %309 : vector<4x256xf32>
    %312 = math.exp %311 : vector<4x256xf32>
    %cst_300 = arith.constant 1.000000e+00 : f32
    %313 = vector.broadcast %cst_300 : f32 to vector<4x256xf32>
    %314 = arith.addf %313, %312 : vector<4x256xf32>
    %cst_301 = arith.constant 1.000000e+00 : f32
    %315 = vector.broadcast %cst_301 : f32 to vector<4x256xf32>
    %316 = arith.divf %315, %314 : vector<4x256xf32>
    %c0_302 = arith.constant 0 : index
    %c0_303 = arith.constant 0 : index
    %c0_304 = arith.constant 0 : index
    %317 = vector.load %arg7[%c0_302, %c0_303, %c0_304] : memref<1x4x256xf32, #tpu.memory_space<vmem>>, vector<1x4x256xf32>
    %318 = vector.shape_cast %317 : vector<1x4x256xf32> to vector<4x256xf32>
    %319 = vector.shape_cast %316 : vector<4x256xf32> to vector<1x4x256xf32>
    tpu.vector_store %arg7[%c0_302, %c0_303, %c0_304], %319 {strides = array<i32>} : memref<1x4x256xf32, #tpu.memory_space<vmem>>, vector<1x4x256xf32>,
    return
  }
  func.func @transform_0(%arg0: i32) -> (i32, i32, i32, i32) {
    %c0_i32 = arith.constant 0 : i32
    %c0_i32_0 = arith.constant 0 : i32
    %c0_i32_1 = arith.constant 0 : i32
    %c0_i32_2 = arith.constant 0 : i32
    return %arg0, %c0_i32, %c0_i32_0, %c0_i32_1 : i32, i32, i32, i32
  }
  func.func @transform_1(%arg0: i32) -> (i32, i32, i32) {
    %c0_i32 = arith.constant 0 : i32
    %c0_i32_0 = arith.constant 0 : i32
    %c0_i32_1 = arith.constant 0 : i32
    %c0_i32_2 = arith.constant 0 : i32
    return %c0_i32, %c0_i32_0, %c0_i32_1 : i32, i32, i32
  }
  func.func @transform_2(%arg0: i32) -> (i32, i32, i32) {
    %c0_i32 = arith.constant 0 : i32
    %c0_i32_0 = arith.constant 0 : i32
    %c0_i32_1 = arith.constant 0 : i32
    %c0_i32_2 = arith.constant 0 : i32
    return %c0_i32, %c0_i32_0, %c0_i32_1 : i32, i32, i32
  }
  func.func @transform_3(%arg0: i32) -> (i32, i32, i32) {
    %c0_i32 = arith.constant 0 : i32
    %c0_i32_0 = arith.constant 0 : i32
    %c0_i32_1 = arith.constant 0 : i32
    %c0_i32_2 = arith.constant 0 : i32
    return %c0_i32, %c0_i32_0, %c0_i32_1 : i32, i32, i32
  }
  func.func @transform_4(%arg0: i32) -> (i32, i32, i32) {
    %c0_i32 = arith.constant 0 : i32
    %c0_i32_0 = arith.constant 0 : i32
    %c0_i32_1 = arith.constant 0 : i32
    %c0_i32_2 = arith.constant 0 : i32
    return %c0_i32, %c0_i32_0, %c0_i32_1 : i32, i32, i32
  }
  func.func @transform_5(%arg0: i32) -> (i32, i32, i32) {
    %c0_i32 = arith.constant 0 : i32
    %c0_i32_0 = arith.constant 0 : i32
    %c0_i32_1 = arith.constant 0 : i32
    %c0_i32_2 = arith.constant 0 : i32
    return %c0_i32, %c0_i32_0, %c0_i32_1 : i32, i32, i32
  }
  func.func @transform_6(%arg0: i32) -> (i32, i32, i32) {
    %c0_i32 = arith.constant 0 : i32
    %c0_i32_0 = arith.constant 0 : i32
    %c0_i32_1 = arith.constant 0 : i32
    return %arg0, %c0_i32, %c0_i32_0 : i32, i32, i32
  }
}

</mosaic_0001>

<bundles_post_ra>
// kernel: mask_condition_model.1
= control target key start
LH: loop header
LB: loop body
LE: loop exit
PB: predicated region body
PF: predicated region fallthrough
CT: control target
= control target key end

     0   :  { %11 = vsyncpa [#allocation8], 0  ;;  %s4483_s0 = inlined_call_operand.hbm [shape: f32[2,1,16,16], index: 0, kind: input, shape index: {}]   ;;  %s4484_s1 = inlined_call_operand.hbm [shape: f32[9,16,128], index: 1, kind: input, shape index: {}]   ;;  %s4485_s2 = inlined_call_operand.hbm [shape: f32[7,128,256], index: 2, kind: input, shape index: {}]   ;;  %s4486_s3 = inlined_call_operand.hbm [shape: f32[5,256,256], index: 3, kind: input, shape index: {}]   ;;  %s4487_s4 = inlined_call_operand.hbm [shape: f32[3,256,256], index: 4, kind: input, shape index: {}]   ;;  %s4488_s5 = inlined_call_operand.hbm [shape: f32[3,256,256], index: 5, kind: input, shape index: {}]   ;;  %s4489_s6 = inlined_call_operand.vmem [shape: f32[2,4,256], index: 6, kind: output, shape index: {}]  }
   0x1   :  { %13 = vsyncpa [#allocation8 + $0x1], 0 }
   0x2   :  { %14 = vsyncpa [#allocation10], 0 }
   0x3   :  { %15 = vsyncpa [#allocation13], 0 }
   0x4   :  { %16 = vsyncpa [#allocation16], 0  ;;  %s4156_s21 = smov 0   ;;  %s4158_s22 = smov 0  }
   0x5   :  { %s4160_s23 = smov 0   ;;  %s4162_s24 = smov 0  }
   0x6 LB: > { %s4108_s25 = smov [#allocation9]   ;;  %s4177_s27 = sadd.s32 4294967295, %s4106_s24   ;;  %s4106_s24 = sphi %s4162_s24, %s4511_s24   ;;  %s4102_s23 = sphi %s4160_s23, %s4510_s23   ;;  %s4098_s22 = sphi %s4158_s22, %s4509_s22   ;;  %s4094_s21 = sphi %s4156_s21, %s4508_s21  }
   0x7   : > { %s196_s26 = sshll.u32 %s4108_s25, 4  ;;  %p3675_p0 = scmp.ge.s32.totalorder %s4106_s24, 1  ;;  %s197_s26 = int_to_ptr.vmem [resolvable:$true] %s196_s26 }
   0x8   : > { %p4490_p1 = scmp.eq.s32.totalorder %s4177_s27, 0  ;;  %p184_p2 = scmp.lt.s32.totalorder %s4106_s24, 3 }
   0x9   : > { %s4109_s30 = smov [#allocation12]   ;;  %s4110_s8 = smov [#allocation11]  }
   0xa   : > { %p4182_p3 = pnand %p3675_p0, %p184_p2  ;;  %s222_s7 = sshll.u32 %s4109_s30, 4  ;;  %s4194_s7 = int_to_ptr.vmem [resolvable:$true] %s222_s7 }
   0xb   : > { %s4196_s9 = sshll.u32 %s4110_s8, 4  ;;  %s3913_s11 = scalar_lea.vmem %s197_s26, 2304  ;;  %s210_s9 = int_to_ptr.vmem [resolvable:$true] %s4196_s9 }
   0xc   : > { %s4493_s28 = scalar_select %p4182_p3, 1, 0 }
   0xd   : > { %p3819_p4 = pneg %p4182_p3  ;;  %p3914_p7 = scmp.ne.s32.totalorder %s197_s26, %s3913_s11 }
   0xe   : > { %p3921_p10 = scmp.lt.s32.totalorder %s197_s26, %s197_s26  ;;  %p3922_p11 = scmp.lt.s32.totalorder %s3913_s11, %s3913_s11 }
   0xf   : > { %p4190_p5 = pnand %p3819_p4, %p4490_p1 }
  0x10   : > { %p3923_p12 = por %p3922_p11, %p3921_p10 }
  0x11   : > { %p4200_p6 = pneg %p4190_p5 }
  0x13   : > { %p3916_p8 = pnand %p3914_p7, %p4200_p6 }
  0x15   : > { %p3917_p9 = pneg %p3916_p8 }
  0x17   : > { %p3924_p13 = pnand %p3923_p12, %p3917_p9 }
  0x19   : > { %3927 = shalt.err (!%p3924_p13)
}
  0x1a   : > { %s4111_s12 = smov 128   ;;  %s4112_s13 = smov 8  }
  0x1b   : > { %3822 = dma.hbm_to_vmem [thread:$0]  (!%p4190_p5), %s4484_s1, 2304, %s197_s26, [#allocation10], %s4111_s12, %s4111_s12, %s4112_s13  }
  0x1c   : > { %s3939_s16 = scalar_lea.vmem %s4194_s7, 40960  ;;  %p3947_p7 = scmp.lt.s32.totalorder %s4194_s7, %s4194_s7 }
  0x1d   : > { %p3940_p0 = scmp.ne.s32.totalorder %s4194_s7, %s3939_s16  ;;  %p3948_p8 = scmp.lt.s32.totalorder %s3939_s16, %s3939_s16 }
  0x1f   : > { %p3942_p2 = pnand %p3940_p0, %p4200_p6  ;;  %p3949_p9 = por %p3948_p8, %p3947_p7 }
  0x21   : > { %p3943_p4 = pneg %p3942_p2 }
  0x23   : > { %p3950_p10 = pnand %p3949_p9, %p3943_p4 }
  0x25   : > { %3953 = shalt.err (!%p3950_p10)
}
  0x26   : > { %s4113_s17 = smov 256   ;;  %s4114_s18 = smov 16  }
  0x27   : > { %3828 = dma.hbm_to_vmem [thread:$0]  (!%p4190_p5), %s4486_s3, 40960, %s4194_s7, [#allocation13], %s4113_s17, %s4113_s17, %s4114_s18  }
  0x28   : > { %s3965_s25 = scalar_lea.vmem %s210_s9, 28672  ;;  %p3973_p0 = scmp.lt.s32.totalorder %s210_s9, %s210_s9 }
  0x29   : > { %p3966_p11 = scmp.ne.s32.totalorder %s210_s9, %s3965_s25  ;;  %p3974_p2 = scmp.lt.s32.totalorder %s3965_s25, %s3965_s25 }
  0x2b   : > { %p3968_p12 = pnand %p3966_p11, %p4200_p6  ;;  %p3975_p4 = por %p3974_p2, %p3973_p0 }
  0x2d   : > { %p3969_p13 = pneg %p3968_p12 }
  0x2f   : > { %p3976_p7 = pnand %p3975_p4, %p3969_p13 }
  0x31   : > { %3979 = shalt.err (!%p3976_p7)
}
  0x32   : > { %3825 = dma.hbm_to_vmem [thread:$0]  (!%p4190_p5), %s4485_s2, 28672, %s210_s9, [#allocation10], %s4113_s17, %s4113_s17, %s4114_s18  }
  0x33   : > { %s4115_s7 = smov [#allocation14]   ;;  %s4116_s11 = smov [#allocation15]  }
  0x34   : > { %s235_s8 = sshll.u32 %s4115_s7, 4  ;;  %s248_s14 = sshll.u32 %s4116_s11, 4  ;;  %s236_s8 = int_to_ptr.vmem [resolvable:$true] %s235_s8  ;;  %s249_s14 = int_to_ptr.vmem [resolvable:$true] %s248_s14 }
  0x35   : > { %s3991_s15 = scalar_lea.vmem %s236_s8, 24576  ;;  %p3999_p11 = scmp.lt.s32.totalorder %s236_s8, %s236_s8 }
  0x36   : > { %p3992_p8 = scmp.ne.s32.totalorder %s236_s8, %s3991_s15  ;;  %p4000_p12 = scmp.lt.s32.totalorder %s3991_s15, %s3991_s15 }
  0x38   : > { %p3994_p9 = pnand %p3992_p8, %p4200_p6  ;;  %p4001_p13 = por %p4000_p12, %p3999_p11 }
  0x3a   : > { %p3995_p10 = pneg %p3994_p9 }
  0x3c   : > { %p4002_p0 = pnand %p4001_p13, %p3995_p10 }
  0x3e   : > { %4005 = shalt.err (!%p4002_p0)
}
  0x3f   : > { %3831 = dma.hbm_to_vmem [thread:$0]  (!%p4190_p5), %s4487_s4, 24576, %s236_s8, [#allocation13], %s4113_s17, %s4113_s17, %s4114_s18  }
  0x40   : > { %s4017_s19 = scalar_lea.vmem %s249_s14, 24576  ;;  %p4025_p8 = scmp.lt.s32.totalorder %s249_s14, %s249_s14 }
  0x41   : > { %p4018_p2 = scmp.ne.s32.totalorder %s249_s14, %s4017_s19  ;;  %p4026_p9 = scmp.lt.s32.totalorder %s4017_s19, %s4017_s19 }
  0x43   : > { %p4020_p4 = pnand %p4018_p2, %p4200_p6  ;;  %p4027_p10 = por %p4026_p9, %p4025_p8 }
  0x45   : > { %p4021_p7 = pneg %p4020_p4 }
  0x47   : > { %p4028_p11 = pnand %p4027_p10, %p4021_p7 }
  0x49   : > { %4031 = shalt.err (!%p4028_p11)
}
  0x4a   : > { %3834 = dma.hbm_to_vmem [thread:$0]  (!%p4190_p5), %s4488_s5, 24576, %s249_s14, [#allocation16], %s4113_s17, %s4113_s17, %s4114_s18  }
  0x4b   : > { %s4261_s29 = sadd.s32 1, %s4106_s24   ;;  %s29_s26 = sadd.s32 1, %s4102_s23 }
  0x4c   : > { %s26_s10 = ssub.s32 %s4106_s24, %s4261_s29  ;;  %p36_p12 = scmp.ne.s32.totalorder %s4102_s23, %s4098_s22 }
  0x4d   : > { %p27_p6 = scmp.eq.s32.totalorder %s26_s10, 0  ;;  %p37_p13 = scmp.eq.s32.totalorder %s4106_s24, 0 }
  0x4e   : > { %p42_p0 = scmp.ne.s32.totalorder %s4098_s22, %s4094_s21  ;;  %p3844_p7 = scmp.lt.s32.totalorder %s4106_s24, 2 }
  0x4f   : > { %s4272_s30 = scalar_select %p27_p6, %s4102_s23, %s29_s26  }
  0x50   : > { %p38_p2 = por %p37_p13, %p36_p12  ;;  %p4276_p4 = por %p4490_p1, %p42_p0 }
  0x51   : > { %s262_s8 = sand.u32 1, %s4102_s23   ;;  %s3705_s18 = sshll.u32 %s4106_s24, 8 }
  0x52   : > { %s4496_s7 = scalar_select %p4276_p4, 1, 0 }
  0x53   : > { %s3682_s17 = sshll.u32 %s262_s8, 4  ;;  %s4286_s15 = scalar_lea.hbm %s4483_s0, %s3705_s18 }
  0x54   : > { %s266_s21 = scalar_lea.vmem [#allocation7], %s3682_s17  ;;  %p4290_p5 = pnand %p3844_p7, %p38_p2 }
  0x55   : > { %s273_s9 = sshll.u32 %s266_s21, 4  ;;  %s4294_s19 = scalar_lea.sflag [#allocation8], %s262_s8  ;;  %s4288_s9 = int_to_ptr.vmem [resolvable:$true] %s273_s9 }
  0x56   : > { %s4032_s24 = scalar_lea.hbm %s4286_s15, 256  ;;  %p4034_p9 = pneg %p4290_p5 }
  0x57   : > { %p4033_p8 = scmp.ne.s32.totalorder %s4286_s15, %s4032_s24  ;;  %s4037_s10 = scalar_lea.hbm %s4483_s0, 512 }
  0x58   : > { %p4038_p6 = scmp.lt.s32.totalorder %s4286_s15, %s4483_s0  ;;  %p4039_p12 = scmp.lt.s32.totalorder %s4037_s10, %s4032_s24 }
  0x59   : > { %p4035_p10 = pnand %p4034_p9, %p4033_p8 }
  0x5a   : > { %p4040_p13 = por %p4039_p12, %p4038_p6 }
  0x5b   : > { %p4036_p11 = pneg %p4035_p10 }
  0x5d   : > { %p4041_p0 = pnand %p4040_p13, %p4036_p11 }
  0x5f   : > { %4044 = shalt.err (!%p4041_p0)
}
  0x60   : > { %s4045_s8 = scalar_lea.vmem %s4288_s9, 256  ;;  %s4117_s18 = smov [#allocation7]  }
  0x61   : > { %p4046_p2 = scmp.ne.s32.totalorder %s4288_s9, %s4045_s8  ;;  %s4050_s11 = sshll.u32 %s4117_s18, 4  ;;  %s4051_s11 = int_to_ptr.vmem [resolvable:$false] %s4050_s11 }
  0x62   : > { %s4052_s14 = scalar_lea.vmem %s4051_s11, 512  ;;  %p4053_p10 = scmp.lt.s32.totalorder %s4288_s9, %s4051_s11 }
  0x63   : > { %p4048_p7 = pnand %p4046_p2, %p4034_p9  ;;  %p4054_p1 = scmp.lt.s32.totalorder %s4052_s14, %s4045_s8 }
  0x65   : > { %p4049_p8 = pneg %p4048_p7  ;;  %p4055_p4 = por %p4054_p1, %p4053_p10 }
  0x67   : > { %p4056_p3 = pnand %p4055_p4, %p4049_p8 }
  0x69   : > { %4059 = shalt.err (!%p4056_p3)
}
  0x6a   : > { %3838 = dma.hbm_to_vmem [thread:$0]  (!%p4290_p5), %s4286_s15, 256, %s4288_s9, %s4294_s19, %s4111_s12, %s4111_s12, %s4112_s13  }
  0x6b   : > { %p4498_p9 = scmp.ne.s32.totalorder %s4493_s28, 0 }
  0x6c   : > { %s287_s21 = sand.u32 (!%p4498_p9), 1, %s4098_s22   ;;  %p4499_p1 = scmp.ne.s32.totalorder (!%p4498_p9), %s4496_s7, 0 }
  0x6d   : > { %285 = sbr.rel (%p4498_p9) target bundleno = 1615 (0x64f), region = 44  ;;  %s4321_s24 = sshll.u32 (!%p4498_p9), %s287_s21, 4 }
  0x6e   : > { %s288_s20 = scalar_lea.sflag (!%p4498_p9), [#allocation8], %s287_s21  ;;  %s291_s25 = scalar_lea.vmem (!%p4498_p9), [#allocation7], %s4321_s24 }
  0x72   : > { %4077 = dma.done.wait (%p4499_p1), %s288_s20, 256  }
  0x73   : > { %4079 = vsyncadd (%p4499_p1), %s288_s20, 4294967040  ;;  %p4500_p3 = scmp.eq.s32.totalorder %s4177_s27, 0 }
  0x75   : > { %4081 = dma.done.wait (%p4500_p3), [#allocation10], 30976   ;;  %p4501_p4 = pmov %p4500_p3 }
  0x76   : > { %p4502_p5 = pmov %p4500_p3 }
  0x77   : > { %4083 = vsyncadd (%p4501_p4), [#allocation10], 4294936320 }
  0x78   : > { %4085 = dma.done.wait (%p4502_p5), [#allocation13], 65536   ;;  %p4503_p11 = pmov %p4500_p3 }
  0x79   : > { %p4504_p6 = pmov %p4500_p3 }
  0x7a   : > { %4087 = vsyncadd (%p4503_p11), [#allocation13], 4294901760 }
  0x7b   : > { %4089 = dma.done.wait (%p4504_p6), [#allocation16], 24576   ;;  %p4505_p12 = pmov %p4500_p3 }
  0x7c   : > { %vm345_vm0 = vcmask 123904   ;;  %v4118_v0 = vmov 0.0   ;;  %vm4119_vm1 = vmmov 0   ;;  %vm355_vm2 = vcmask 123905   ;;  %v383_v1 = vld [vmem:[#allocation9 + $0x18] sm:$0xff]  ;;  %v382_v2 = vld [vmem:[#allocation9 + $0x10] sm:$0xff] }
  0x7d   : > { %4091 = vsyncadd (%p4505_p12), [#allocation16], 4294942720  ;;  %3734 = vmatprep.subr.mxu1 %v4118_v0  ;;  %1080 = vst [vmem:[#allocation3] sm:$0x7] %v4118_v0  ;;  %3738 = vmatprep.mubr.msk.f32.mxu1 %vm4119_vm1, %v4118_v0  ;;  %vm359_vm3 = vcmask 125955   ;;  %vm363_vm4 = vcmask 128005  }
  0x7e   : > { %1081 = vst [vmem:[#allocation3 + $0xb] sm:$0x7] %v4118_v0  ;;  %349 = vst.msk [vmem:[#allocation2 + $0x10] sm:$0x3] %vm345_vm0, %v4118_v0  ;;  %3790 = vmatprep.subr.mxu0 %v4118_v0  ;;  %3794 = vmatprep.mubr.msk.f32.mxu0 %vm4119_vm1, %v4118_v0  ;;  %vm367_vm5 = vcmask 130055   ;;  %vm353_vm6 = vcmask 122880  }
  0x7f   : > { %346 = vst.msk [vmem:[#allocation2] sm:$0x3] %vm345_vm0, %v4118_v0  ;;  %347 = vst.msk [vmem:[#allocation2 + $0xa] sm:$0x3] %vm345_vm0, %v4118_v0  ;;  %vm357_vm7 = vcmask 124930   ;;  %vm361_vm8 = vcmask 126980   ;;  %3735 = vmatpush3.msra.mxu1 %v383_v1 }
  0x80   : > { %350 = vst.msk [vmem:[#allocation2 + $0x1a] sm:$0x3] %vm345_vm0, %v4118_v0  ;;  %vm365_vm9 = vcmask 129030   ;;  %v351_v3 = vld [vmem:[%s291_s25] sm:$0xff]  ;;  %v352_v4 = vld [vmem:[%s291_s25 + $0x8] sm:$0xff]  ;;  %3736 = vmatprep.subr.mxu1 %v4118_v0  ;;  %vm384_vm10 = vcmask 130048  }
  0x81   : > { %356 = vst.msk [vmem:[#allocation2 + $0x11] sm:$0x2] %vm355_vm2, %v351_v3  ;;  %370 = vst.msk [vmem:[#allocation2 + $0x15] sm:$0x2] %vm355_vm2, %v352_v4  ;;  %3737 = vmatpush3.msra.mxu1 %v382_v2  ;;  %v1002_v5 = vld [vmem:[#allocation9 + $0x88] sm:$0xff]  ;;  %v1001_v6 = vld [vmem:[#allocation9 + $0x80] sm:$0xff] }
  0x82   : > { %360 = vst.msk [vmem:[#allocation2 + $0x10] sm:$0x8] %vm359_vm3, %v351_v3  ;;  %372 = vst.msk [vmem:[#allocation2 + $0x14] sm:$0x8] %vm359_vm3, %v352_v4  ;;  %3741 = vmatprep.subr.mxu1 %v4118_v0  ;;  %3791 = vmatpush3.msra.mxu0 %v1002_v5  ;;  %v379_v7 = vld [vmem:[#allocation9 + $0x8] sm:$0xff]  ;;  %v378_v9 = vld [vmem:[#allocation9] sm:$0xff] }
  0x83   : > { %364 = vst.msk [vmem:[#allocation2 + $0xf] sm:$0x20] %vm363_vm4, %v351_v3  ;;  %374 = vst.msk [vmem:[#allocation2 + $0x13] sm:$0x20] %vm363_vm4, %v352_v4  ;;  %3792 = vmatprep.subr.mxu0 %v4118_v0  ;;  %v534_v12 = vld [vmem:[#allocation9 + $0x28] sm:$0xff]  ;;  %v533_v13 = vld [vmem:[#allocation9 + $0x20] sm:$0xff] }
  0x84   : > { %368 = vst.msk [vmem:[#allocation2 + $0xe] sm:$0x80] %vm367_vm5, %v351_v3  ;;  %376 = vst.msk [vmem:[#allocation2 + $0x12] sm:$0x80] %vm367_vm5, %v352_v4  ;;  %3793 = vmatpush3.msra.mxu0 %v1001_v6  ;;  %v612_v15 = vld [vmem:[#allocation9 + $0x38] sm:$0xff]  ;;  %v611_v16 = vld [vmem:[#allocation9 + $0x30] sm:$0xff] }
  0x85   : > { %354 = vst.msk [vmem:[#allocation2 + $0x2] sm:$0x1] %vm353_vm6, %v351_v3  ;;  %369 = vst.msk [vmem:[#allocation2 + $0x6] sm:$0x1] %vm353_vm6, %v352_v4  ;;  %v690_v18 = vld [vmem:[#allocation9 + $0x48] sm:$0xff]  ;;  %v689_v19 = vld [vmem:[#allocation9 + $0x40] sm:$0xff] }
  0x86   : > { %358 = vst.msk [vmem:[#allocation2 + $0x1] sm:$0x4] %vm357_vm7, %v351_v3  ;;  %371 = vst.msk [vmem:[#allocation2 + $0x5] sm:$0x4] %vm357_vm7, %v352_v4  ;;  %v768_v21 = vld [vmem:[#allocation9 + $0x58] sm:$0xff]  ;;  %v767_v22 = vld [vmem:[#allocation9 + $0x50] sm:$0xff] }
  0x87   : > { %362 = vst.msk [vmem:[#allocation2] sm:$0x10] %vm361_vm8, %v351_v3  ;;  %373 = vst.msk [vmem:[#allocation2 + $0x4] sm:$0x10] %vm361_vm8, %v352_v4  ;;  %v846_v24 = vld [vmem:[#allocation9 + $0x68] sm:$0xff]  ;;  %v845_v25 = vld [vmem:[#allocation9 + $0x60] sm:$0xff] }
  0x88   : > { %366 = vst.msk [vmem:[#allocation2 - $0x1] sm:$0x40] %vm365_vm9, %v351_v3  ;;  %375 = vst.msk [vmem:[#allocation2 + $0x3] sm:$0x40] %vm365_vm9, %v352_v4  ;;  %v924_v27 = vld [vmem:[#allocation9 + $0x78] sm:$0xff]  ;;  %v923_v28 = vld [vmem:[#allocation9 + $0x70] sm:$0xff] }
  0x89   : > { %v1149_v30 = vld [vmem:[#allocation11 + $0x1f8] sm:$0xff]  ;;  %v1148_v32 = vld [vmem:[#allocation11 + $0x1f0] sm:$0xff]  ;;  %v1147_v34 = vld [vmem:[#allocation11 + $0x1e8] sm:$0xff]  ;;  %p340_p13 = scmp.lt.s32.totalorder %s4177_s27, 1 }
  0x8a   : > { %v1115_v31 = vld [vmem:[#allocation11 + $0xf8] sm:$0xff]  ;;  %v1114_v33 = vld [vmem:[#allocation11 + $0xf0] sm:$0xff]  ;;  %v1113_v35 = vld [vmem:[#allocation11 + $0xe8] sm:$0xff] }
  0x8b   : > { %v380_v8 = vld [vmem:[#allocation2 + $0x10] sm:$0xff]  ;;  %1221 = vmatprep.subr.mxu0 %v1115_v31  ;;  %v1146_v36 = vld [vmem:[#allocation11 + $0x1e0] sm:$0xff]  ;;  %v1145_v38 = vld [vmem:[#allocation11 + $0x1d8] sm:$0xff]  ;;  %s4513_s27 = smov (!%p340_p13, %s4177_s27), 1 }
  0x8c   : > { %3739 = vmatmul.mubr.msk.f32.vlgmr.msra.gmra.mxu1 %vm384_vm10, %v380_v8  ;;  %v609_v17 = vld [vmem:[#allocation2 + $0x11] sm:$0xff]  ;;  %v1112_v37 = vld [vmem:[#allocation11 + $0xe0] sm:$0xff]  ;;  %v1143_v42 = vld [vmem:[#allocation11 + $0x1c8] sm:$0xff]  ;;  %s3706_s28 = sshll.u32 %s4513_s27, 3 }
  0x8d   : > { %3742 = vmatpush3.msra.mxu1 %v379_v7  ;;  %3745 = vmatprep.mubr.msk.f32.mxu1 %vm4119_vm1, %v4118_v0  ;;  %v765_v23 = vld [vmem:[#allocation2 + $0x12] sm:$0xff]  ;;  %v1109_v43 = vld [vmem:[#allocation11 + $0xc8] sm:$0xff]  ;;  %v1142_v44 = vld [vmem:[#allocation11 + $0x1c0] sm:$0xff]  ;;  %s344_s7 = scalar_lea.vmem %s4489_s6, %s3706_s28 }
  0x8e   : > { %3743 = vmatprep.subr.mxu1 %v4118_v0  ;;  %v921_v29 = vld [vmem:[#allocation2 + $0x13] sm:$0xff]  ;;  %v1108_v45 = vld [vmem:[#allocation11 + $0xc0] sm:$0xff]  ;;  %v1139_v50 = vld [vmem:[#allocation11 + $0x1a8] sm:$0xff] }
  0x8f   : > { %v377_v10 = vld [vmem:[#allocation2] sm:$0xff]  ;;  %3744 = vmatpush3.msra.mxu1 %v378_v9  ;;  %v1111_v39 = vld [vmem:[#allocation11 + $0xd8] sm:$0xff]  ;;  %v1144_v40 = vld [vmem:[#allocation11 + $0x1d0] sm:$0xff] }
  0x90   : > { %v999_v11 = vld [vmem:[#allocation2 + $0x4] sm:$0xff]  ;;  %3748 = vmatprep.subr.mxu1 %v4118_v0  ;;  %3746 = vmatmul.mubr.msk.f32.vlgmr.msra.gmra.mxu1 %vm384_vm10, %v377_v10  ;;  %v1110_v41 = vld [vmem:[#allocation11 + $0xd0] sm:$0xff]  ;;  %v1141_v46 = vld [vmem:[#allocation11 + $0x1b8] sm:$0xff] }
  0x91   : > { %3795 = vmatmul.mubr.msk.f32.vlgmr.msra.gmra.mxu0 %vm384_vm10, %v999_v11  ;;  %3749 = vmatpush3.msra.mxu1 %v534_v12  ;;  %v531_v14 = vld [vmem:[#allocation2 + $0x1] sm:$0xff]  ;;  %v1107_v47 = vld [vmem:[#allocation11 + $0xb8] sm:$0xff]  ;;  %v1140_v48 = vld [vmem:[#allocation11 + $0x1b0] sm:$0xff] }
  0x92   : > { %1285 = vmatprep.mubr.f32.mxu0 %v4118_v0  ;;  %3752 = vmatprep.mubr.msk.f32.mxu1 %vm4119_vm1, %v4118_v0  ;;  %v687_v20 = vld [vmem:[#allocation2 + $0x2] sm:$0xff]  ;;  %v1106_v49 = vld [vmem:[#allocation11 + $0xb0] sm:$0xff]  ;;  %v1137_v54 = vld [vmem:[#allocation11 + $0x198] sm:$0xff] }
  0x93   : > { %3750 = vmatprep.subr.mxu1 %v4118_v0  ;;  %v843_v26 = vld [vmem:[#allocation2 + $0x3] sm:$0xff]  ;;  %1222 = vmatpush1.msra.mxu0 %v1114_v33  ;;  %v1103_v55 = vld [vmem:[#allocation11 + $0x98] sm:$0xff]  ;;  %v1136_v56 = vld [vmem:[#allocation11 + $0x190] sm:$0xff] }
  0x94   : > { %3751 = vmatpush3.msra.mxu1 %v533_v13  ;;  %1223 = vmatprep.subr.mxu0 %v1113_v35  ;;  %v1105_v51 = vld [vmem:[#allocation11 + $0xa8] sm:$0xff]  ;;  %v1138_v52 = vld [vmem:[#allocation11 + $0x1a0] sm:$0xff]  ;;  %v1102_v57 = vld [vmem:[#allocation11 + $0x90] sm:$0xff] }
  0x95   : > { %3755 = vmatprep.subr.mxu1 %v4118_v0  ;;  %3753 = vmatmul.mubr.msk.f32.vlgmr.msra.gmra.mxu1 %vm384_vm10, %v531_v14  ;;  %v1104_v53 = vld [vmem:[#allocation11 + $0xa0] sm:$0xff]  ;;  %v1135_v58 = vld [vmem:[#allocation11 + $0x188] sm:$0xff]  ;;  %v1133_v62 = vld [vmem:[#allocation11 + $0x178] sm:$0xff] }
  0x96   : > { %3756 = vmatpush3.msra.mxu1 %v612_v15  ;;  %3759 = vmatprep.mubr.msk.f32.mxu1 %vm4119_vm1, %v4118_v0  ;;  %v1101_v59 = vld [vmem:[#allocation11 + $0x88] sm:$0xff]  ;;  %v1134_v60 = vld [vmem:[#allocation11 + $0x180] sm:$0xff]  ;;  %v1099_v63 = vld [vmem:[#allocation11 + $0x78] sm:$0xff] }
  0x97   : > { %3757 = vmatprep.subr.mxu1 %v4118_v0  ;;  %1224 = vmatpush1.msra.mxu0 %v1112_v37  ;;  %v1100_v61 = vld [vmem:[#allocation11 + $0x80] sm:$0xff]  ;;  %v1132_v1 = vld [vmem:[#allocation11 + $0x170] sm:$0xff]  ;;  %v1131_v3 = vld [vmem:[#allocation11 + $0x168] sm:$0xff] }
  0x98   : > { %3758 = vmatpush3.msra.mxu1 %v611_v16  ;;  %1225 = vmatprep.subr.mxu0 %v1111_v39  ;;  %v1098_v2 = vld [vmem:[#allocation11 + $0x70] sm:$0xff]  ;;  %v1097_v4 = vld [vmem:[#allocation11 + $0x68] sm:$0xff]  ;;  %v1130_v5 = vld [vmem:[#allocation11 + $0x160] sm:$0xff] }
  0x99   : > { %3762 = vmatprep.subr.mxu1 %v4118_v0  ;;  %3760 = vmatmul.mubr.msk.f32.vlgmr.msra.gmra.mxu1 %vm384_vm10, %v609_v17  ;;  %v1096_v6 = vld [vmem:[#allocation11 + $0x60] sm:$0xff]  ;;  %v1129_v7 = vld [vmem:[#allocation11 + $0x158] sm:$0xff]  ;;  %v1128_v9 = vld [vmem:[#allocation11 + $0x150] sm:$0xff] }
  0x9a   : > { %3763 = vmatpush3.msra.mxu1 %v690_v18  ;;  %3766 = vmatprep.mubr.msk.f32.mxu1 %vm4119_vm1, %v4118_v0  ;;  %v1095_v8 = vld [vmem:[#allocation11 + $0x58] sm:$0xff]  ;;  %v1094_v10 = vld [vmem:[#allocation11 + $0x50] sm:$0xff]  ;;  %v1127_v11 = vld [vmem:[#allocation11 + $0x148] sm:$0xff] }
  0x9b   : > { %3764 = vmatprep.subr.mxu1 %v4118_v0  ;;  %1226 = vmatpush1.msra.mxu0 %v1110_v41  ;;  %v1093_v12 = vld [vmem:[#allocation11 + $0x48] sm:$0xff]  ;;  %v1126_v13 = vld [vmem:[#allocation11 + $0x140] sm:$0xff]  ;;  %v1125_v15 = vld [vmem:[#allocation11 + $0x138] sm:$0xff] }
  0x9c   : > { %3765 = vmatpush3.msra.mxu1 %v689_v19  ;;  %1227 = vmatprep.subr.mxu0 %v1109_v43  ;;  %v1092_v14 = vld [vmem:[#allocation11 + $0x40] sm:$0xff]  ;;  %v1091_v16 = vld [vmem:[#allocation11 + $0x38] sm:$0xff]  ;;  %v1124_v17 = vld [vmem:[#allocation11 + $0x130] sm:$0xff] }
  0x9d   : > { %3769 = vmatprep.subr.mxu1 %v4118_v0  ;;  %3767 = vmatmul.mubr.msk.f32.vlgmr.msra.gmra.mxu1 %vm384_vm10, %v687_v20  ;;  %v1090_v18 = vld [vmem:[#allocation11 + $0x30] sm:$0xff]  ;;  %v1123_v19 = vld [vmem:[#allocation11 + $0x128] sm:$0xff]  ;;  %v1325_v31 = vld [vmem:[#allocation11 + $0x2f8] sm:$0xff] }
  0x9e   : > { %3770 = vmatpush3.msra.mxu1 %v768_v21  ;;  %3773 = vmatprep.mubr.msk.f32.mxu1 %vm4119_vm1, %v4118_v0  ;;  %v1089_v20 = vld [vmem:[#allocation11 + $0x28] sm:$0xff]  ;;  %v1122_v21 = vld [vmem:[#allocation11 + $0x120] sm:$0xff] }
  0x9f   : > { %3771 = vmatprep.subr.mxu1 %v4118_v0  ;;  %1228 = vmatpush1.msra.mxu0 %v1108_v45 }
  0xa0   : > { %3772 = vmatpush3.msra.mxu1 %v767_v22  ;;  %1229 = vmatprep.subr.mxu0 %v1107_v47  ;;  %v1088_v22 = vld [vmem:[#allocation11 + $0x20] sm:$0xff] }
  0xa1   : > { %3776 = vmatprep.subr.mxu1 %v4118_v0  ;;  %3774 = vmatmul.mubr.msk.f32.vlgmr.msra.gmra.mxu1 %vm384_vm10, %v765_v23  ;;  %v1121_v23 = vld [vmem:[#allocation11 + $0x118] sm:$0xff] }
  0xa2   : > { %3777 = vmatpush3.msra.mxu1 %v846_v24  ;;  %3780 = vmatprep.mubr.msk.f32.mxu1 %vm4119_vm1, %v4118_v0  ;;  %v1087_v24 = vld [vmem:[#allocation11 + $0x18] sm:$0xff] }
  0xa3   : > { %3778 = vmatprep.subr.mxu1 %v4118_v0  ;;  %1230 = vmatpush1.msra.mxu0 %v1106_v49 }
  0xa4   : > { %3779 = vmatpush3.msra.mxu1 %v845_v25  ;;  %1231 = vmatprep.subr.mxu0 %v1105_v51  ;;  %v1120_v25 = vld [vmem:[#allocation11 + $0x110] sm:$0xff] }
  0xa5   : > { %3783 = vmatprep.subr.mxu1 %v4118_v0  ;;  %3781 = vmatmul.mubr.msk.f32.vlgmr.msra.gmra.mxu1 %vm384_vm10, %v843_v26  ;;  %v1086_v26 = vld [vmem:[#allocation11 + $0x10] sm:$0xff] }
  0xa6   : > { %3784 = vmatpush3.msra.mxu1 %v924_v27  ;;  %3787 = vmatprep.mubr.msk.f32.mxu1 %vm4119_vm1, %v4118_v0  ;;  %v1119_v27 = vld [vmem:[#allocation11 + $0x108] sm:$0xff] }
  0xa7   : > { %3785 = vmatprep.subr.mxu1 %v4118_v0  ;;  %1232 = vmatpush1.msra.mxu0 %v1104_v53 }
  0xa8   : > { %3786 = vmatpush3.msra.mxu1 %v923_v28  ;;  %1233 = vmatprep.subr.mxu0 %v1103_v55  ;;  %v1085_v28 = vld [vmem:[#allocation11 + $0x8] sm:$0xff] }
  0xa9   : > { %3788 = vmatmul.mubr.msk.f32.vlgmr.msra.gmra.mxu1 %vm384_vm10, %v921_v29  ;;  %1150 = vmatprep.subr.mxu1 %v1149_v30  ;;  %v1118_v29 = vld [vmem:[#allocation11 + $0x100] sm:$0xff] }
  0xaa   : > { %1214 = vmatprep.mubr.f32.mxu1 %v4118_v0  ;;  %1151 = vmatpush1.msra.mxu1 %v1148_v32  ;;  %v1084_v30 = vld [vmem:[#allocation11] sm:$0xff]  ;;  %v1432_v32 = vld [vmem:[#allocation11 + $0x3f8] sm:$0xff] }
  0xab   : > { %1152 = vmatprep.subr.mxu1 %v1147_v34  ;;  %1234 = vmatpush1.msra.mxu0 %v1102_v57 }
  0xac   : > { %1153 = vmatpush1.msra.mxu1 %v1146_v36  ;;  %1235 = vmatprep.subr.mxu0 %v1101_v59 }
  0xad   : > { %1154 = vmatprep.subr.mxu1 %v1145_v38  ;;  %1236 = vmatpush1.msra.mxu0 %v1100_v61  ;;  %v1324_v61 = vld [vmem:[#allocation11 + $0x2f0] sm:$0xff] }
  0xae   : > { %1155 = vmatpush1.msra.mxu1 %v1144_v40  ;;  %1237 = vmatprep.subr.mxu0 %v1099_v63  ;;  %v1323_v63 = vld [vmem:[#allocation11 + $0x2e8] sm:$0xff] }
  0xaf   : > { %1156 = vmatprep.subr.mxu1 %v1143_v42  ;;  %1238 = vmatpush1.msra.mxu0 %v1098_v2 }
  0xb0   : > { %1157 = vmatpush1.msra.mxu1 %v1142_v44  ;;  %1239 = vmatprep.subr.mxu0 %v1097_v4  ;;  %v1322_v4 = vld [vmem:[#allocation11 + $0x2e0] sm:$0xff] }
  0xb1   : > { %1158 = vmatprep.subr.mxu1 %v1141_v46  ;;  %1240 = vmatpush1.msra.mxu0 %v1096_v6  ;;  %v1321_v6 = vld [vmem:[#allocation11 + $0x2d8] sm:$0xff] }
  0xb2   : > { %1159 = vmatpush1.msra.mxu1 %v1140_v48  ;;  %1241 = vmatprep.subr.mxu0 %v1095_v8  ;;  %v1320_v8 = vld [vmem:[#allocation11 + $0x2d0] sm:$0xff] }
  0xb3   : > { %1160 = vmatprep.subr.mxu1 %v1139_v50  ;;  %1242 = vmatpush1.msra.mxu0 %v1094_v10  ;;  %v1319_v10 = vld [vmem:[#allocation11 + $0x2c8] sm:$0xff] }
  0xb4   : > { %1161 = vmatpush1.msra.mxu1 %v1138_v52  ;;  %1243 = vmatprep.subr.mxu0 %v1093_v12  ;;  %v1318_v12 = vld [vmem:[#allocation11 + $0x2c0] sm:$0xff] }
  0xb5   : > { %1162 = vmatprep.subr.mxu1 %v1137_v54  ;;  %1244 = vmatpush1.msra.mxu0 %v1092_v14  ;;  %v1317_v14 = vld [vmem:[#allocation11 + $0x2b8] sm:$0xff] }
  0xb6   : > { %1163 = vmatpush1.msra.mxu1 %v1136_v56  ;;  %1245 = vmatprep.subr.mxu0 %v1091_v16  ;;  %v1316_v16 = vld [vmem:[#allocation11 + $0x2b0] sm:$0xff] }
  0xb7   : > { %1164 = vmatprep.subr.mxu1 %v1135_v58  ;;  %1246 = vmatpush1.msra.mxu0 %v1090_v18  ;;  %v1315_v18 = vld [vmem:[#allocation11 + $0x2a8] sm:$0xff] }
  0xb8   : > { %1165 = vmatpush1.msra.mxu1 %v1134_v60  ;;  %1247 = vmatprep.subr.mxu0 %v1089_v20  ;;  %v1314_v20 = vld [vmem:[#allocation11 + $0x2a0] sm:$0xff] }
  0xb9   : > { %1166 = vmatprep.subr.mxu1 %v1133_v62  ;;  %1248 = vmatpush1.msra.mxu0 %v1088_v22  ;;  %v1431_v62 = vld [vmem:[#allocation11 + $0x3f0] sm:$0xff]  ;;  %v1313_v22 = vld [vmem:[#allocation11 + $0x298] sm:$0xff] }
  0xba   : > { %1167 = vmatpush1.msra.mxu1 %v1132_v1  ;;  %1249 = vmatprep.subr.mxu0 %v1087_v24  ;;  %v1312_v24 = vld [vmem:[#allocation11 + $0x290] sm:$0xff] }
  0xbb   : > { %1168 = vmatprep.subr.mxu1 %v1131_v3  ;;  %1250 = vmatpush1.msra.mxu0 %v1086_v26  ;;  %v1430_v3 = vld [vmem:[#allocation11 + $0x3e8] sm:$0xff] }
  0xbc   : > { %1169 = vmatpush1.msra.mxu1 %v1130_v5  ;;  %1251 = vmatprep.subr.mxu0 %v1085_v28  ;;  %v1429_v5 = vld [vmem:[#allocation11 + $0x3e0] sm:$0xff]  ;;  %v1311_v26 = vld [vmem:[#allocation11 + $0x288] sm:$0xff] }
  0xbd   : > { %1170 = vmatprep.subr.mxu1 %v1129_v7  ;;  %1252 = vmatpush1.msra.mxu0 %v1084_v30  ;;  %v1428_v7 = vld [vmem:[#allocation11 + $0x3d8] sm:$0xff]  ;;  %v1310_v28 = vld [vmem:[#allocation11 + $0x280] sm:$0xff] }
  0xbe   : > { %1171 = vmatpush1.msra.mxu1 %v1128_v9  ;;  %1433 = vmatprep.subr.mxu0 %v1432_v32  ;;  %v1427_v9 = vld [vmem:[#allocation11 + $0x3d0] sm:$0xff]  ;;  %v1309_v30 = vld [vmem:[#allocation11 + $0x278] sm:$0xff] }
  0xbf   : > { %1172 = vmatprep.subr.mxu1 %v1127_v11  ;;  %v1426_v11 = vld [vmem:[#allocation11 + $0x3c8] sm:$0xff]  ;;  %v1308_v32 = vld [vmem:[#allocation11 + $0x270] sm:$0xff] }
  0xc0   : > { %1173 = vmatpush1.msra.mxu1 %v1126_v13  ;;  %v1425_v13 = vld [vmem:[#allocation11 + $0x3c0] sm:$0xff] }
  0xc1   : > { %1174 = vmatprep.subr.mxu1 %v1125_v15  ;;  %v1424_v15 = vld [vmem:[#allocation11 + $0x3b8] sm:$0xff] }
  0xc2   : > { %1175 = vmatpush1.msra.mxu1 %v1124_v17  ;;  %v1423_v17 = vld [vmem:[#allocation11 + $0x3b0] sm:$0xff] }
  0xc3   : > { %1176 = vmatprep.subr.mxu1 %v1123_v19  ;;  %v1422_v19 = vld [vmem:[#allocation11 + $0x3a8] sm:$0xff] }
  0xc4   : > { %1177 = vmatpush1.msra.mxu1 %v1122_v21  ;;  %v1421_v21 = vld [vmem:[#allocation11 + $0x3a0] sm:$0xff] }
  0xc5   : > { %1178 = vmatprep.subr.mxu1 %v1121_v23  ;;  %v1420_v23 = vld [vmem:[#allocation11 + $0x398] sm:$0xff] }
  0xc6   : > { %1179 = vmatpush1.msra.mxu1 %v1120_v25  ;;  %v1419_v25 = vld [vmem:[#allocation11 + $0x390] sm:$0xff] }
  0xc7   : > { %1180 = vmatprep.subr.mxu1 %v1119_v27  ;;  %v1418_v27 = vld [vmem:[#allocation11 + $0x388] sm:$0xff] }
  0xc8   : > { %1181 = vmatpush1.msra.mxu1 %v1118_v29  ;;  %v1417_v29 = vld [vmem:[#allocation11 + $0x380] sm:$0xff] }
  0xc9   : > { %1326 = vmatprep.subr.mxu1 %v1325_v31  ;;  %v1416_v31 = vld [vmem:[#allocation11 + $0x378] sm:$0xff] }
 0x14c   : > { %v454_v33 = vpop.f32.mrf.mxu1 }
 0x14e   : > { %v3740_v34 = vpop.f32.mrf.mxu1 }
 0x14f   : > { %v1307_v34 = vld [vmem:[#allocation11 + $0x268] sm:$0xff] }
 0x150   : > { %v527_v36 = vpop.f32.mrf.mxu1 }
 0x151   : > { %v1072_v35 = vpop.f32.mrf.mxu0  ;;  %v528_v44 = vadd.f32 %v527_v36, %v454_v33  ;;  %v1415_v33 = vld [vmem:[#allocation11 + $0x370] sm:$0xff]  ;;  %v1306_v36 = vld [vmem:[#allocation11 + $0x260] sm:$0xff] }
 0x152   : > { %v3747_v38 = vpop.f32.mrf.mxu1 }
 0x153   : > { %v3796_v37 = vpop.f32.mrf.mxu0  ;;  %v1305_v38 = vld [vmem:[#allocation11 + $0x258] sm:$0xff] }
 0x154   : > { %v1413_v37 = vld [vmem:[#allocation11 + $0x360] sm:$0xff] }
 0x155   : > { %v604_v39 = vpop.f32.mrf.mxu1 }
 0x156   : > { %v608_v46 = vadd.f32 %v604_v39, %v528_v44  ;;  %v1412_v39 = vld [vmem:[#allocation11 + $0x358] sm:$0xff]  ;;  %v1302_v44 = vld [vmem:[#allocation11 + $0x240] sm:$0xff] }
 0x157   : > { %v3754_v40 = vpop.f32.mrf.mxu1 }
 0x158   : > { %v1304_v40 = vld [vmem:[#allocation11 + $0x250] sm:$0xff] }
 0x159   : > { %v682_v41 = vpop.f32.mrf.mxu1 }
 0x15a   : > { %v686_v48 = vadd.f32 %v682_v41, %v608_v46  ;;  %v1411_v41 = vld [vmem:[#allocation11 + $0x350] sm:$0xff]  ;;  %v1301_v46 = vld [vmem:[#allocation11 + $0x238] sm:$0xff] }
 0x15b   : > { %v3761_v42 = vpop.f32.mrf.mxu1 }
 0x15c   : > { %v1303_v42 = vld [vmem:[#allocation11 + $0x248] sm:$0xff] }
 0x15d   : > { %v760_v43 = vpop.f32.mrf.mxu1 }
 0x15e   : > { %v764_v50 = vadd.f32 %v760_v43, %v686_v48  ;;  %v1410_v43 = vld [vmem:[#allocation11 + $0x348] sm:$0xff]  ;;  %v1300_v48 = vld [vmem:[#allocation11 + $0x230] sm:$0xff] }
 0x15f   : > { %v3768_v45 = vpop.f32.mrf.mxu1 }
 0x160   : > { %v1409_v45 = vld [vmem:[#allocation11 + $0x340] sm:$0xff] }
 0x161   : > { %v838_v47 = vpop.f32.mrf.mxu1 }
 0x162   : > { %v842_v52 = vadd.f32 %v838_v47, %v764_v50  ;;  %v1408_v47 = vld [vmem:[#allocation11 + $0x338] sm:$0xff]  ;;  %v1299_v50 = vld [vmem:[#allocation11 + $0x228] sm:$0xff] }
 0x163   : > { %v3775_v49 = vpop.f32.mrf.mxu1 }
 0x164   : > { %v1407_v49 = vld [vmem:[#allocation11 + $0x330] sm:$0xff] }
 0x165   : > { %v916_v51 = vpop.f32.mrf.mxu1 }
 0x166   : > { %v920_v54 = vadd.f32 %v916_v51, %v842_v52  ;;  %v1406_v51 = vld [vmem:[#allocation11 + $0x328] sm:$0xff]  ;;  %v1298_v52 = vld [vmem:[#allocation11 + $0x220] sm:$0xff] }
 0x167   : > { %v3782_v53 = vpop.f32.mrf.mxu1 }
 0x168   : > { %v1405_v53 = vld [vmem:[#allocation11 + $0x320] sm:$0xff] }
 0x169   : > { %v994_v55 = vpop.f32.mrf.mxu1 }
 0x16a   : > { %v998_v56 = vadd.f32 %v994_v55, %v920_v54  ;;  %v1297_v54 = vld [vmem:[#allocation11 + $0x218] sm:$0xff] }
 0x16b   : > { %v3789_v57 = vpop.f32.mrf.mxu1  ;;  %v1404_v55 = vld [vmem:[#allocation11 + $0x318] sm:$0xff] }
 0x16c   : > { %v1076_v58 = vadd.f32 %v1072_v35, %v998_v56  ;;  %v1414_v35 = vld [vmem:[#allocation11 + $0x368] sm:$0xff]  ;;  %v1296_v56 = vld [vmem:[#allocation11 + $0x210] sm:$0xff] }
 0x16d   : > { %v1403_v57 = vld [vmem:[#allocation11 + $0x310] sm:$0xff] }
 0x16e   : > { %vm1077_vm11 = vcmp.ge.f32.partialorder %v1076_v58, 0.0  ;;  %v1078_v59 = vmul.f32 0.2, %v1076_v58 }
 0x170   : > { %v4413_v60 = vsel %vm1077_vm11, %v1076_v58, %v1078_v59  ;;  %v1295_v58 = vld [vmem:[#allocation11 + $0x208] sm:$0xff] }
 0x171   : > { %1082 = vst [vmem:[#allocation3 + $0x3] sm:$0xff] %v4413_v60  ;;  %v1402_v59 = vld [vmem:[#allocation11 + $0x308] sm:$0xff] }
 0x178   : > { %v1116_v1 = vld [vmem:[#allocation3 + $0x1] sm:$0xff] }
 0x179   : > { %v1083_v2 = vld [vmem:[#allocation3] sm:$0xff]  ;;  %1215 = vmatmul.mubr.f32.vlgmr.msra.gmra.mxu1 %v1116_v1  ;;  %v1646_v1 = vld [vmem:[#allocation11 + $0x5f8] sm:$0xff] }
 0x17a   : > { %1286 = vmatmul.mubr.f32.vlgmr.msra.gmra.mxu0 %v1083_v2  ;;  %1327 = vmatpush1.msra.mxu1 %v1324_v61  ;;  %v1294_v61 = vld [vmem:[#allocation11 + $0x200] sm:$0xff] }
 0x17b   : > { %1434 = vmatpush1.msra.mxu0 %v1431_v62  ;;  %1328 = vmatprep.subr.mxu1 %v1323_v63  ;;  %v1401_v62 = vld [vmem:[#allocation11 + $0x300] sm:$0xff]  ;;  %v1539_v63 = vld [vmem:[#allocation11 + $0x4f8] sm:$0xff] }
 0x17c   : > { %1435 = vmatprep.subr.mxu0 %v1430_v3  ;;  %1329 = vmatpush1.msra.mxu1 %v1322_v4  ;;  %v1292_v2 = vld [vmem:[#allocation3 + $0x2] sm:$0xff]  ;;  %v1538_v3 = vld [vmem:[#allocation11 + $0x4f0] sm:$0xff] }
 0x17d   : > { %1436 = vmatpush1.msra.mxu0 %v1429_v5  ;;  %1330 = vmatprep.subr.mxu1 %v1321_v6  ;;  %v1645_v4 = vld [vmem:[#allocation11 + $0x5f0] sm:$0xff]  ;;  %v1537_v5 = vld [vmem:[#allocation11 + $0x4e8] sm:$0xff] }
 0x17e   : > { %1437 = vmatprep.subr.mxu0 %v1428_v7  ;;  %1331 = vmatpush1.msra.mxu1 %v1320_v8  ;;  %v1644_v6 = vld [vmem:[#allocation11 + $0x5e8] sm:$0xff]  ;;  %v1536_v7 = vld [vmem:[#allocation11 + $0x4e0] sm:$0xff] }
 0x17f   : > { %1438 = vmatpush1.msra.mxu0 %v1427_v9  ;;  %1332 = vmatprep.subr.mxu1 %v1319_v10  ;;  %v1643_v8 = vld [vmem:[#allocation11 + $0x5e0] sm:$0xff]  ;;  %v1535_v9 = vld [vmem:[#allocation11 + $0x4d8] sm:$0xff] }
 0x180   : > { %1439 = vmatprep.subr.mxu0 %v1426_v11  ;;  %1333 = vmatpush1.msra.mxu1 %v1318_v12  ;;  %v1642_v10 = vld [vmem:[#allocation11 + $0x5d8] sm:$0xff]  ;;  %v1534_v11 = vld [vmem:[#allocation11 + $0x4d0] sm:$0xff] }
 0x181   : > { %1440 = vmatpush1.msra.mxu0 %v1425_v13  ;;  %1334 = vmatprep.subr.mxu1 %v1317_v14  ;;  %v1641_v12 = vld [vmem:[#allocation11 + $0x5d0] sm:$0xff]  ;;  %v1533_v13 = vld [vmem:[#allocation11 + $0x4c8] sm:$0xff] }
 0x182   : > { %1441 = vmatprep.subr.mxu0 %v1424_v15  ;;  %1335 = vmatpush1.msra.mxu1 %v1316_v16  ;;  %v1640_v14 = vld [vmem:[#allocation11 + $0x5c8] sm:$0xff]  ;;  %v1639_v15 = vld [vmem:[#allocation11 + $0x5c0] sm:$0xff]  ;;  %v1531_v16 = vld [vmem:[#allocation11 + $0x4b8] sm:$0xff] }
 0x183   : > { %1442 = vmatpush1.msra.mxu0 %v1423_v17  ;;  %1336 = vmatprep.subr.mxu1 %v1315_v18  ;;  %v1638_v17 = vld [vmem:[#allocation11 + $0x5b8] sm:$0xff]  ;;  %v1530_v18 = vld [vmem:[#allocation11 + $0x4b0] sm:$0xff] }
 0x184   : > { %1443 = vmatprep.subr.mxu0 %v1422_v19  ;;  %1337 = vmatpush1.msra.mxu1 %v1314_v20  ;;  %v1637_v19 = vld [vmem:[#allocation11 + $0x5b0] sm:$0xff]  ;;  %v1529_v20 = vld [vmem:[#allocation11 + $0x4a8] sm:$0xff] }
 0x185   : > { %1444 = vmatpush1.msra.mxu0 %v1421_v21  ;;  %1338 = vmatprep.subr.mxu1 %v1313_v22  ;;  %v1636_v21 = vld [vmem:[#allocation11 + $0x5a8] sm:$0xff]  ;;  %v1528_v22 = vld [vmem:[#allocation11 + $0x4a0] sm:$0xff] }
 0x186   : > { %1445 = vmatprep.subr.mxu0 %v1420_v23  ;;  %1339 = vmatpush1.msra.mxu1 %v1312_v24  ;;  %v1635_v23 = vld [vmem:[#allocation11 + $0x5a0] sm:$0xff]  ;;  %v1527_v24 = vld [vmem:[#allocation11 + $0x498] sm:$0xff] }
 0x187   : > { %1446 = vmatpush1.msra.mxu0 %v1419_v25  ;;  %1340 = vmatprep.subr.mxu1 %v1311_v26  ;;  %v1634_v25 = vld [vmem:[#allocation11 + $0x598] sm:$0xff]  ;;  %v1526_v26 = vld [vmem:[#allocation11 + $0x490] sm:$0xff] }
 0x188   : > { %1447 = vmatprep.subr.mxu0 %v1418_v27  ;;  %1341 = vmatpush1.msra.mxu1 %v1310_v28  ;;  %v1633_v27 = vld [vmem:[#allocation11 + $0x590] sm:$0xff]  ;;  %v1525_v28 = vld [vmem:[#allocation11 + $0x488] sm:$0xff] }
 0x189   : > { %1448 = vmatpush1.msra.mxu0 %v1417_v29  ;;  %1342 = vmatprep.subr.mxu1 %v1309_v30  ;;  %v1632_v29 = vld [vmem:[#allocation11 + $0x588] sm:$0xff]  ;;  %v1524_v30 = vld [vmem:[#allocation11 + $0x480] sm:$0xff] }
 0x18a   : > { %1449 = vmatprep.subr.mxu0 %v1416_v31  ;;  %1343 = vmatpush1.msra.mxu1 %v1308_v32  ;;  %v1631_v31 = vld [vmem:[#allocation11 + $0x580] sm:$0xff]  ;;  %v1523_v32 = vld [vmem:[#allocation11 + $0x478] sm:$0xff] }
 0x18b   : > { %1450 = vmatpush1.msra.mxu0 %v1415_v33  ;;  %1344 = vmatprep.subr.mxu1 %v1307_v34  ;;  %v1630_v33 = vld [vmem:[#allocation11 + $0x578] sm:$0xff]  ;;  %v1522_v34 = vld [vmem:[#allocation11 + $0x470] sm:$0xff] }
 0x18c   : > { %1451 = vmatprep.subr.mxu0 %v1414_v35  ;;  %1345 = vmatpush1.msra.mxu1 %v1306_v36  ;;  %v1629_v35 = vld [vmem:[#allocation11 + $0x570] sm:$0xff]  ;;  %v1521_v36 = vld [vmem:[#allocation11 + $0x468] sm:$0xff] }
 0x18d   : > { %1452 = vmatpush1.msra.mxu0 %v1413_v37  ;;  %1346 = vmatprep.subr.mxu1 %v1305_v38  ;;  %v1628_v37 = vld [vmem:[#allocation11 + $0x568] sm:$0xff]  ;;  %v1520_v38 = vld [vmem:[#allocation11 + $0x460] sm:$0xff] }
 0x18e   : > { %1453 = vmatprep.subr.mxu0 %v1412_v39  ;;  %1347 = vmatpush1.msra.mxu1 %v1304_v40  ;;  %v1627_v39 = vld [vmem:[#allocation11 + $0x560] sm:$0xff]  ;;  %v1519_v40 = vld [vmem:[#allocation11 + $0x458] sm:$0xff] }
 0x18f   : > { %1454 = vmatpush1.msra.mxu0 %v1411_v41  ;;  %1348 = vmatprep.subr.mxu1 %v1303_v42  ;;  %v1626_v41 = vld [vmem:[#allocation11 + $0x558] sm:$0xff]  ;;  %v1518_v42 = vld [vmem:[#allocation11 + $0x450] sm:$0xff] }
 0x190   : > { %1455 = vmatprep.subr.mxu0 %v1410_v43  ;;  %1349 = vmatpush1.msra.mxu1 %v1302_v44  ;;  %v1625_v43 = vld [vmem:[#allocation11 + $0x550] sm:$0xff]  ;;  %v1517_v44 = vld [vmem:[#allocation11 + $0x448] sm:$0xff] }
 0x191   : > { %1456 = vmatpush1.msra.mxu0 %v1409_v45  ;;  %1350 = vmatprep.subr.mxu1 %v1301_v46  ;;  %v1624_v45 = vld [vmem:[#allocation11 + $0x548] sm:$0xff]  ;;  %v1516_v46 = vld [vmem:[#allocation11 + $0x440] sm:$0xff] }
 0x192   : > { %1457 = vmatprep.subr.mxu0 %v1408_v47  ;;  %1351 = vmatpush1.msra.mxu1 %v1300_v48  ;;  %v1623_v47 = vld [vmem:[#allocation11 + $0x540] sm:$0xff]  ;;  %v1515_v48 = vld [vmem:[#allocation11 + $0x438] sm:$0xff] }
 0x193   : > { %1458 = vmatpush1.msra.mxu0 %v1407_v49  ;;  %1352 = vmatprep.subr.mxu1 %v1299_v50  ;;  %v1622_v49 = vld [vmem:[#allocation11 + $0x538] sm:$0xff]  ;;  %v1514_v50 = vld [vmem:[#allocation11 + $0x430] sm:$0xff] }
 0x194   : > { %1459 = vmatprep.subr.mxu0 %v1406_v51  ;;  %1353 = vmatpush1.msra.mxu1 %v1298_v52  ;;  %v1621_v51 = vld [vmem:[#allocation11 + $0x530] sm:$0xff]  ;;  %v1513_v52 = vld [vmem:[#allocation11 + $0x428] sm:$0xff] }
 0x195   : > { %1460 = vmatpush1.msra.mxu0 %v1405_v53  ;;  %1354 = vmatprep.subr.mxu1 %v1297_v54  ;;  %v1620_v53 = vld [vmem:[#allocation11 + $0x528] sm:$0xff]  ;;  %v1512_v54 = vld [vmem:[#allocation11 + $0x420] sm:$0xff] }
 0x196   : > { %1461 = vmatprep.subr.mxu0 %v1404_v55  ;;  %1355 = vmatpush1.msra.mxu1 %v1296_v56  ;;  %v1619_v55 = vld [vmem:[#allocation11 + $0x520] sm:$0xff]  ;;  %v1511_v56 = vld [vmem:[#allocation11 + $0x418] sm:$0xff] }
 0x197   : > { %1462 = vmatpush1.msra.mxu0 %v1403_v57  ;;  %1356 = vmatprep.subr.mxu1 %v1295_v58  ;;  %v1618_v57 = vld [vmem:[#allocation11 + $0x518] sm:$0xff]  ;;  %v1510_v58 = vld [vmem:[#allocation11 + $0x410] sm:$0xff] }
 0x198   : > { %1463 = vmatprep.subr.mxu0 %v1402_v59  ;;  %1357 = vmatpush1.msra.mxu1 %v1294_v61  ;;  %v1617_v59 = vld [vmem:[#allocation11 + $0x510] sm:$0xff]  ;;  %v1509_v61 = vld [vmem:[#allocation11 + $0x408] sm:$0xff] }
 0x199   : > { %1390 = vmatprep.mubr.f32.mxu1 %v4118_v0  ;;  %1464 = vmatpush1.msra.mxu0 %v1401_v62  ;;  %v1616_v62 = vld [vmem:[#allocation11 + $0x508] sm:$0xff] }
 0x19a   : > { %1497 = vmatprep.mubr.f32.mxu0 %v4118_v0  ;;  %1391 = vmatmul.mubr.f32.vlgmr.msra.gmra.mxu1 %v1292_v2  ;;  %v1753_v2 = vld [vmem:[#allocation11 + $0x6f8] sm:$0xff] }
 0x19b   : > { %1498 = vmatmul.mubr.f32.vlgmr.msra.gmra.mxu0 %v4413_v60  ;;  %1540 = vmatprep.subr.mxu1 %v1539_v63  ;;  %v1532_v60 = vld [vmem:[#allocation11 + $0x4c0] sm:$0xff] }
 0x19c   : > { %1647 = vmatprep.subr.mxu0 %v1646_v1  ;;  %1541 = vmatpush1.msra.mxu1 %v1538_v3  ;;  %v1508_v63 = vld [vmem:[#allocation11 + $0x400] sm:$0xff] }
 0x19d   : > { %1648 = vmatpush1.msra.mxu0 %v1645_v4  ;;  %1542 = vmatprep.subr.mxu1 %v1537_v5  ;;  %v1615_v1 = vld [vmem:[#allocation11 + $0x500] sm:$0xff]  ;;  %v1752_v5 = vld [vmem:[#allocation11 + $0x6f0] sm:$0xff] }
 0x19e   : > { %1649 = vmatprep.subr.mxu0 %v1644_v6  ;;  %1543 = vmatpush1.msra.mxu1 %v1536_v7  ;;  %v1506_v3 = vld [vmem:[#allocation3 + $0x4] sm:$0xff] }
 0x19f   : > { %1650 = vmatpush1.msra.mxu0 %v1643_v8  ;;  %1544 = vmatprep.subr.mxu1 %v1535_v9  ;;  %v1613_v4 = vld [vmem:[#allocation3 + $0x5] sm:$0xff]  ;;  %v1749_v8 = vld [vmem:[#allocation11 + $0x6d8] sm:$0xff]  ;;  %v1748_v9 = vld [vmem:[#allocation11 + $0x6d0] sm:$0xff] }
 0x1a0   : > { %1651 = vmatprep.subr.mxu0 %v1642_v10  ;;  %1545 = vmatpush1.msra.mxu1 %v1534_v11  ;;  %v1751_v6 = vld [vmem:[#allocation11 + $0x6e8] sm:$0xff]  ;;  %v1750_v7 = vld [vmem:[#allocation11 + $0x6e0] sm:$0xff] }
 0x1a1   : > { %1652 = vmatpush1.msra.mxu0 %v1641_v12  ;;  %1546 = vmatprep.subr.mxu1 %v1533_v13  ;;  %v1747_v10 = vld [vmem:[#allocation11 + $0x6c8] sm:$0xff]  ;;  %v1746_v11 = vld [vmem:[#allocation11 + $0x6c0] sm:$0xff]  ;;  %v1745_v12 = vld [vmem:[#allocation11 + $0x6b8] sm:$0xff] }
 0x1a2   : > { %1653 = vmatprep.subr.mxu0 %v1640_v14  ;;  %1547 = vmatpush1.msra.mxu1 %v1532_v60  ;;  %v1744_v13 = vld [vmem:[#allocation11 + $0x6b0] sm:$0xff]  ;;  %v1743_v14 = vld [vmem:[#allocation11 + $0x6a8] sm:$0xff]  ;;  %v1742_v60 = vld [vmem:[#allocation11 + $0x6a0] sm:$0xff] }
 0x1a3   : > { %1654 = vmatpush1.msra.mxu0 %v1639_v15  ;;  %1548 = vmatprep.subr.mxu1 %v1531_v16  ;;  %v1741_v15 = vld [vmem:[#allocation11 + $0x698] sm:$0xff]  ;;  %v1740_v16 = vld [vmem:[#allocation11 + $0x690] sm:$0xff] }
 0x1a4   : > { %1655 = vmatprep.subr.mxu0 %v1638_v17  ;;  %1549 = vmatpush1.msra.mxu1 %v1530_v18  ;;  %v1739_v17 = vld [vmem:[#allocation11 + $0x688] sm:$0xff]  ;;  %v1738_v18 = vld [vmem:[#allocation11 + $0x680] sm:$0xff] }
 0x1a5   : > { %1656 = vmatpush1.msra.mxu0 %v1637_v19  ;;  %1550 = vmatprep.subr.mxu1 %v1529_v20  ;;  %v1737_v19 = vld [vmem:[#allocation11 + $0x678] sm:$0xff]  ;;  %v1736_v20 = vld [vmem:[#allocation11 + $0x670] sm:$0xff] }
 0x1a6   : > { %1657 = vmatprep.subr.mxu0 %v1636_v21  ;;  %1551 = vmatpush1.msra.mxu1 %v1528_v22  ;;  %v1735_v21 = vld [vmem:[#allocation11 + $0x668] sm:$0xff]  ;;  %v1734_v22 = vld [vmem:[#allocation11 + $0x660] sm:$0xff] }
 0x1a7   : > { %1658 = vmatpush1.msra.mxu0 %v1635_v23  ;;  %1552 = vmatprep.subr.mxu1 %v1527_v24  ;;  %v1733_v23 = vld [vmem:[#allocation11 + $0x658] sm:$0xff]  ;;  %v1732_v24 = vld [vmem:[#allocation11 + $0x650] sm:$0xff] }
 0x1a8   : > { %1659 = vmatprep.subr.mxu0 %v1634_v25  ;;  %1553 = vmatpush1.msra.mxu1 %v1526_v26  ;;  %v1731_v25 = vld [vmem:[#allocation11 + $0x648] sm:$0xff]  ;;  %v1730_v26 = vld [vmem:[#allocation11 + $0x640] sm:$0xff] }
 0x1a9   : > { %1660 = vmatpush1.msra.mxu0 %v1633_v27  ;;  %1554 = vmatprep.subr.mxu1 %v1525_v28  ;;  %v1729_v27 = vld [vmem:[#allocation11 + $0x638] sm:$0xff]  ;;  %v1728_v28 = vld [vmem:[#allocation11 + $0x630] sm:$0xff] }
 0x1aa   : > { %1661 = vmatprep.subr.mxu0 %v1632_v29  ;;  %1555 = vmatpush1.msra.mxu1 %v1524_v30  ;;  %v1727_v29 = vld [vmem:[#allocation11 + $0x628] sm:$0xff]  ;;  %v1726_v30 = vld [vmem:[#allocation11 + $0x620] sm:$0xff] }
 0x1ab   : > { %1662 = vmatpush1.msra.mxu0 %v1631_v31  ;;  %1556 = vmatprep.subr.mxu1 %v1523_v32  ;;  %v1725_v31 = vld [vmem:[#allocation11 + $0x618] sm:$0xff]  ;;  %v1724_v32 = vld [vmem:[#allocation11 + $0x610] sm:$0xff] }
 0x1ac   : > { %1663 = vmatprep.subr.mxu0 %v1630_v33  ;;  %1557 = vmatpush1.msra.mxu1 %v1522_v34  ;;  %v1723_v33 = vld [vmem:[#allocation11 + $0x608] sm:$0xff]  ;;  %v1722_v34 = vld [vmem:[#allocation11 + $0x600] sm:$0xff] }
 0x1ad   : > { %1664 = vmatpush1.msra.mxu0 %v1629_v35  ;;  %1558 = vmatprep.subr.mxu1 %v1521_v36  ;;  %v1720_v35 = vld [vmem:[#allocation3 + $0x6] sm:$0xff]  ;;  %v1965_v36 = vld [vmem:[#allocation12 + $0xf8] sm:$0xff] }
 0x1ae   : > { %1665 = vmatprep.subr.mxu0 %v1628_v37  ;;  %1559 = vmatpush1.msra.mxu1 %v1520_v38  ;;  %v1964_v37 = vld [vmem:[#allocation12 + $0xf0] sm:$0xff]  ;;  %v2032_v38 = vld [vmem:[#allocation12 + $0x2f8] sm:$0xff] }
 0x1af   : > { %1666 = vmatpush1.msra.mxu0 %v1627_v39  ;;  %1560 = vmatprep.subr.mxu1 %v1519_v40  ;;  %v1963_v39 = vld [vmem:[#allocation12 + $0xe8] sm:$0xff]  ;;  %v2031_v40 = vld [vmem:[#allocation12 + $0x2f0] sm:$0xff] }
 0x1b0   : > { %1667 = vmatprep.subr.mxu0 %v1626_v41  ;;  %1561 = vmatpush1.msra.mxu1 %v1518_v42  ;;  %v1962_v41 = vld [vmem:[#allocation12 + $0xe0] sm:$0xff]  ;;  %v2030_v42 = vld [vmem:[#allocation12 + $0x2e8] sm:$0xff] }
 0x1b1   : > { %1668 = vmatpush1.msra.mxu0 %v1625_v43  ;;  %1562 = vmatprep.subr.mxu1 %v1517_v44  ;;  %v1961_v43 = vld [vmem:[#allocation12 + $0xd8] sm:$0xff]  ;;  %v2029_v44 = vld [vmem:[#allocation12 + $0x2e0] sm:$0xff] }
 0x1b2   : > { %1669 = vmatprep.subr.mxu0 %v1624_v45  ;;  %1563 = vmatpush1.msra.mxu1 %v1516_v46  ;;  %v1960_v45 = vld [vmem:[#allocation12 + $0xd0] sm:$0xff]  ;;  %v2028_v46 = vld [vmem:[#allocation12 + $0x2d8] sm:$0xff] }
 0x1b3   : > { %1670 = vmatpush1.msra.mxu0 %v1623_v47  ;;  %1564 = vmatprep.subr.mxu1 %v1515_v48  ;;  %v1959_v47 = vld [vmem:[#allocation12 + $0xc8] sm:$0xff]  ;;  %v2027_v48 = vld [vmem:[#allocation12 + $0x2d0] sm:$0xff] }
 0x1b4   : > { %1671 = vmatprep.subr.mxu0 %v1622_v49  ;;  %1565 = vmatpush1.msra.mxu1 %v1514_v50  ;;  %v1958_v49 = vld [vmem:[#allocation12 + $0xc0] sm:$0xff]  ;;  %v2026_v50 = vld [vmem:[#allocation12 + $0x2c8] sm:$0xff] }
 0x1b5   : > { %1672 = vmatpush1.msra.mxu0 %v1621_v51  ;;  %1566 = vmatprep.subr.mxu1 %v1513_v52  ;;  %v1957_v51 = vld [vmem:[#allocation12 + $0xb8] sm:$0xff]  ;;  %v2025_v52 = vld [vmem:[#allocation12 + $0x2c0] sm:$0xff] }
 0x1b6   : > { %1673 = vmatprep.subr.mxu0 %v1620_v53  ;;  %1567 = vmatpush1.msra.mxu1 %v1512_v54  ;;  %v1956_v53 = vld [vmem:[#allocation12 + $0xb0] sm:$0xff]  ;;  %v2024_v54 = vld [vmem:[#allocation12 + $0x2b8] sm:$0xff] }
 0x1b7   : > { %1674 = vmatpush1.msra.mxu0 %v1619_v55  ;;  %1568 = vmatprep.subr.mxu1 %v1511_v56  ;;  %v1955_v55 = vld [vmem:[#allocation12 + $0xa8] sm:$0xff]  ;;  %v2023_v56 = vld [vmem:[#allocation12 + $0x2b0] sm:$0xff] }
 0x1b8   : > { %1675 = vmatprep.subr.mxu0 %v1618_v57  ;;  %1569 = vmatpush1.msra.mxu1 %v1510_v58  ;;  %v1954_v57 = vld [vmem:[#allocation12 + $0xa0] sm:$0xff]  ;;  %v2022_v58 = vld [vmem:[#allocation12 + $0x2a8] sm:$0xff] }
 0x1b9   : > { %1676 = vmatpush1.msra.mxu0 %v1617_v59  ;;  %1570 = vmatprep.subr.mxu1 %v1509_v61  ;;  %v1953_v59 = vld [vmem:[#allocation12 + $0x98] sm:$0xff]  ;;  %v2021_v61 = vld [vmem:[#allocation12 + $0x2a0] sm:$0xff] }
 0x1ba   : > { %1677 = vmatprep.subr.mxu0 %v1616_v62  ;;  %1571 = vmatpush1.msra.mxu1 %v1508_v63  ;;  %v1952_v62 = vld [vmem:[#allocation12 + $0x90] sm:$0xff]  ;;  %v2020_v63 = vld [vmem:[#allocation12 + $0x298] sm:$0xff] }
 0x1bb   : > { %1604 = vmatprep.mubr.f32.mxu1 %v4118_v0  ;;  %1678 = vmatpush1.msra.mxu0 %v1615_v1  ;;  %v1951_v1 = vld [vmem:[#allocation12 + $0x88] sm:$0xff] }
 0x1bc   : > { %1711 = vmatprep.mubr.f32.mxu0 %v4118_v0  ;;  %1605 = vmatmul.mubr.f32.vlgmr.msra.gmra.mxu1 %v1506_v3  ;;  %v1950_v3 = vld [vmem:[#allocation12 + $0x80] sm:$0xff] }
 0x1bd   : > { %1712 = vmatmul.mubr.f32.vlgmr.msra.gmra.mxu0 %v1613_v4  ;;  %1754 = vmatprep.subr.mxu1 %v1753_v2  ;;  %v2019_v2 = vld [vmem:[#allocation12 + $0x290] sm:$0xff]  ;;  %v2018_v4 = vld [vmem:[#allocation12 + $0x288] sm:$0xff] }
 0x1be   : > { %1818 = vmatprep.mubr.f32.mxu1 %v4118_v0  ;;  %1755 = vmatpush1.msra.mxu1 %v1752_v5  ;;  %v1949_v5 = vld [vmem:[#allocation12 + $0x78] sm:$0xff] }
 0x1bf   : > { %1756 = vmatprep.subr.mxu1 %v1751_v6  ;;  %2065 = vmatprep.subr.mxu0 %v2032_v38  ;;  %v2017_v6 = vld [vmem:[#allocation12 + $0x280] sm:$0xff]  ;;  %v1996_v38 = vld [vmem:[#allocation12 + $0x1f0] sm:$0xff] }
 0x1c0   : > { %1757 = vmatpush1.msra.mxu1 %v1750_v7  ;;  %2066 = vmatpush1.msra.mxu0 %v2031_v40  ;;  %v1948_v7 = vld [vmem:[#allocation12 + $0x70] sm:$0xff]  ;;  %v1995_v40 = vld [vmem:[#allocation12 + $0x1e8] sm:$0xff] }
 0x1c1   : > { %1758 = vmatprep.subr.mxu1 %v1749_v8  ;;  %2067 = vmatprep.subr.mxu0 %v2030_v42  ;;  %v2016_v8 = vld [vmem:[#allocation12 + $0x278] sm:$0xff]  ;;  %v1994_v42 = vld [vmem:[#allocation12 + $0x1e0] sm:$0xff] }
 0x1c2   : > { %1759 = vmatpush1.msra.mxu1 %v1748_v9  ;;  %2068 = vmatpush1.msra.mxu0 %v2029_v44  ;;  %v1947_v9 = vld [vmem:[#allocation12 + $0x68] sm:$0xff]  ;;  %v1993_v44 = vld [vmem:[#allocation12 + $0x1d8] sm:$0xff] }
 0x1c3   : > { %1760 = vmatprep.subr.mxu1 %v1747_v10  ;;  %2069 = vmatprep.subr.mxu0 %v2028_v46  ;;  %v2015_v10 = vld [vmem:[#allocation12 + $0x270] sm:$0xff] }
 0x1c4   : > { %1761 = vmatpush1.msra.mxu1 %v1746_v11  ;;  %2070 = vmatpush1.msra.mxu0 %v2027_v48  ;;  %v1946_v11 = vld [vmem:[#allocation12 + $0x60] sm:$0xff]  ;;  %v1992_v46 = vld [vmem:[#allocation12 + $0x1d0] sm:$0xff]  ;;  %v1991_v48 = vld [vmem:[#allocation12 + $0x1c8] sm:$0xff] }
 0x1c5   : > { %1762 = vmatprep.subr.mxu1 %v1745_v12  ;;  %2071 = vmatprep.subr.mxu0 %v2026_v50  ;;  %v2014_v12 = vld [vmem:[#allocation12 + $0x268] sm:$0xff]  ;;  %v1990_v50 = vld [vmem:[#allocation12 + $0x1c0] sm:$0xff] }
 0x1c6   : > { %1763 = vmatpush1.msra.mxu1 %v1744_v13  ;;  %2072 = vmatpush1.msra.mxu0 %v2025_v52  ;;  %v1945_v13 = vld [vmem:[#allocation12 + $0x58] sm:$0xff] }
 0x1c7   : > { %1764 = vmatprep.subr.mxu1 %v1743_v14  ;;  %2073 = vmatprep.subr.mxu0 %v2024_v54  ;;  %v2013_v14 = vld [vmem:[#allocation12 + $0x260] sm:$0xff]  ;;  %v1989_v52 = vld [vmem:[#allocation12 + $0x1b8] sm:$0xff]  ;;  %v1988_v54 = vld [vmem:[#allocation12 + $0x1b0] sm:$0xff] }
 0x1c8   : > { %1765 = vmatpush1.msra.mxu1 %v1742_v60  ;;  %2074 = vmatpush1.msra.mxu0 %v2023_v56  ;;  %v1944_v60 = vld [vmem:[#allocation12 + $0x50] sm:$0xff]  ;;  %v1987_v56 = vld [vmem:[#allocation12 + $0x1a8] sm:$0xff] }
 0x1c9   : > { %1766 = vmatprep.subr.mxu1 %v1741_v15  ;;  %2075 = vmatprep.subr.mxu0 %v2022_v58  ;;  %v2012_v15 = vld [vmem:[#allocation12 + $0x258] sm:$0xff]  ;;  %v1986_v58 = vld [vmem:[#allocation12 + $0x1a0] sm:$0xff] }
 0x1ca   : > { %1767 = vmatpush1.msra.mxu1 %v1740_v16  ;;  %2076 = vmatpush1.msra.mxu0 %v2021_v61  ;;  %v1943_v16 = vld [vmem:[#allocation12 + $0x48] sm:$0xff]  ;;  %v1985_v61 = vld [vmem:[#allocation12 + $0x198] sm:$0xff] }
 0x1cb   : > { %1768 = vmatprep.subr.mxu1 %v1739_v17  ;;  %2077 = vmatprep.subr.mxu0 %v2020_v63  ;;  %v2011_v17 = vld [vmem:[#allocation12 + $0x250] sm:$0xff] }
 0x1cc   : > { %1769 = vmatpush1.msra.mxu1 %v1738_v18  ;;  %2078 = vmatpush1.msra.mxu0 %v2019_v2  ;;  %v1942_v18 = vld [vmem:[#allocation12 + $0x40] sm:$0xff]  ;;  %v1984_v63 = vld [vmem:[#allocation12 + $0x190] sm:$0xff]  ;;  %v2052_v2 = vld [vmem:[#allocation12 + $0x398] sm:$0xff] }
 0x1cd   : > { %1770 = vmatprep.subr.mxu1 %v1737_v19  ;;  %2079 = vmatprep.subr.mxu0 %v2018_v4  ;;  %v2010_v19 = vld [vmem:[#allocation12 + $0x248] sm:$0xff]  ;;  %v2051_v4 = vld [vmem:[#allocation12 + $0x390] sm:$0xff] }
 0x1ce   : > { %1771 = vmatpush1.msra.mxu1 %v1736_v20  ;;  %2080 = vmatpush1.msra.mxu0 %v2017_v6  ;;  %v1941_v20 = vld [vmem:[#allocation12 + $0x38] sm:$0xff] }
 0x1cf   : > { %1772 = vmatprep.subr.mxu1 %v1735_v21  ;;  %2081 = vmatprep.subr.mxu0 %v2016_v8  ;;  %v2009_v21 = vld [vmem:[#allocation12 + $0x240] sm:$0xff]  ;;  %v1981_v8 = vld [vmem:[#allocation12 + $0x178] sm:$0xff] }
 0x1d0   : > { %1773 = vmatpush1.msra.mxu1 %v1734_v22  ;;  %2082 = vmatpush1.msra.mxu0 %v2015_v10  ;;  %v1940_v22 = vld [vmem:[#allocation12 + $0x30] sm:$0xff] }
 0x1d1   : > { %1774 = vmatprep.subr.mxu1 %v1733_v23  ;;  %2083 = vmatprep.subr.mxu0 %v2014_v12  ;;  %v2008_v23 = vld [vmem:[#allocation12 + $0x238] sm:$0xff]  ;;  %v1980_v10 = vld [vmem:[#allocation12 + $0x170] sm:$0xff]  ;;  %v1979_v12 = vld [vmem:[#allocation12 + $0x168] sm:$0xff] }
 0x1d2   : > { %1775 = vmatpush1.msra.mxu1 %v1732_v24  ;;  %2084 = vmatpush1.msra.mxu0 %v2013_v14  ;;  %v1939_v24 = vld [vmem:[#allocation12 + $0x28] sm:$0xff]  ;;  %v1978_v14 = vld [vmem:[#allocation12 + $0x160] sm:$0xff] }
 0x1d3   : > { %1776 = vmatprep.subr.mxu1 %v1731_v25  ;;  %2085 = vmatprep.subr.mxu0 %v2012_v15  ;;  %v2007_v25 = vld [vmem:[#allocation12 + $0x230] sm:$0xff]  ;;  %v1977_v15 = vld [vmem:[#allocation12 + $0x158] sm:$0xff] }
 0x1d4   : > { %1777 = vmatpush1.msra.mxu1 %v1730_v26  ;;  %2086 = vmatpush1.msra.mxu0 %v2011_v17  ;;  %v1938_v26 = vld [vmem:[#allocation12 + $0x20] sm:$0xff]  ;;  %v2044_v17 = vld [vmem:[#allocation12 + $0x358] sm:$0xff] }
 0x1d5   : > { %1778 = vmatprep.subr.mxu1 %v1729_v27  ;;  %2087 = vmatprep.subr.mxu0 %v2010_v19  ;;  %v2006_v27 = vld [vmem:[#allocation12 + $0x228] sm:$0xff]  ;;  %v2043_v19 = vld [vmem:[#allocation12 + $0x350] sm:$0xff] }
 0x1d6   : > { %1779 = vmatpush1.msra.mxu1 %v1728_v28  ;;  %2088 = vmatpush1.msra.mxu0 %v2009_v21  ;;  %v1937_v28 = vld [vmem:[#allocation12 + $0x18] sm:$0xff]  ;;  %v2042_v21 = vld [vmem:[#allocation12 + $0x348] sm:$0xff] }
 0x1d7   : > { %1780 = vmatprep.subr.mxu1 %v1727_v29  ;;  %2089 = vmatprep.subr.mxu0 %v2008_v23  ;;  %v2005_v29 = vld [vmem:[#allocation12 + $0x220] sm:$0xff] }
 0x1d8   : > { %1781 = vmatpush1.msra.mxu1 %v1726_v30  ;;  %v1936_v30 = vld [vmem:[#allocation12 + $0x10] sm:$0xff]  ;;  %2090 = vmatpush1.msra.mxu0 %v2007_v25  ;;  %v2041_v23 = vld [vmem:[#allocation12 + $0x340] sm:$0xff]  ;;  %v2040_v25 = vld [vmem:[#allocation12 + $0x338] sm:$0xff] }
 0x1d9   : > { %1782 = vmatprep.subr.mxu1 %v1725_v31  ;;  %v2004_v31 = vld [vmem:[#allocation12 + $0x218] sm:$0xff]  ;;  %2091 = vmatprep.subr.mxu0 %v2006_v27  ;;  %v2039_v27 = vld [vmem:[#allocation12 + $0x330] sm:$0xff] }
 0x1da   : > { %1783 = vmatpush1.msra.mxu1 %v1724_v32  ;;  %v1935_v32 = vld [vmem:[#allocation12 + $0x8] sm:$0xff]  ;;  %2092 = vmatpush1.msra.mxu0 %v2005_v29 }
 0x1db   : > { %1784 = vmatprep.subr.mxu1 %v1723_v33  ;;  %v2003_v33 = vld [vmem:[#allocation12 + $0x210] sm:$0xff]  ;;  %2093 = vmatprep.subr.mxu0 %v2004_v31  ;;  %v2038_v29 = vld [vmem:[#allocation12 + $0x328] sm:$0xff]  ;;  %v2037_v31 = vld [vmem:[#allocation12 + $0x320] sm:$0xff] }
 0x1dc   : > { %1785 = vmatpush1.msra.mxu1 %v1722_v34  ;;  %v1934_v34 = vld [vmem:[#allocation12] sm:$0xff]  ;;  %2094 = vmatpush1.msra.mxu0 %v2003_v33  ;;  %v2036_v33 = vld [vmem:[#allocation12 + $0x318] sm:$0xff] }
 0x1dd   : > { %1819 = vmatmul.mubr.f32.vlgmr.msra.gmra.mxu1 %v1720_v35  ;;  %2136 = vmatprep.subr.mxu1 %v1965_v36  ;;  %v2002_v35 = vld [vmem:[#allocation12 + $0x208] sm:$0xff]  ;;  %v1997_v36 = vld [vmem:[#allocation12 + $0x1f8] sm:$0xff] }
 0x1de   : > { %2137 = vmatpush1.msra.mxu1 %v1964_v37  ;;  %v2001_v37 = vld [vmem:[#allocation12 + $0x200] sm:$0xff]  ;;  %2095 = vmatprep.subr.mxu0 %v2002_v35  ;;  %v2035_v35 = vld [vmem:[#allocation12 + $0x310] sm:$0xff] }
 0x1df   : > { %2138 = vmatprep.subr.mxu1 %v1963_v39  ;;  %v2064_v39 = vld [vmem:[#allocation12 + $0x3f8] sm:$0xff]  ;;  %2096 = vmatpush1.msra.mxu0 %v2001_v37  ;;  %v2034_v37 = vld [vmem:[#allocation12 + $0x308] sm:$0xff] }
 0x1e0   : > { %2139 = vmatpush1.msra.mxu1 %v1962_v41  ;;  %v2063_v41 = vld [vmem:[#allocation12 + $0x3f0] sm:$0xff]  ;;  %2097 = vmatprep.subr.mxu0 %v2064_v39  ;;  %v2033_v39 = vld [vmem:[#allocation12 + $0x300] sm:$0xff] }
 0x1e1   : > { %2140 = vmatprep.subr.mxu1 %v1961_v43  ;;  %v2062_v43 = vld [vmem:[#allocation12 + $0x3e8] sm:$0xff]  ;;  %2098 = vmatpush2.msra.mxu0 %v2063_v41 }
 0x1e2   : > { %2141 = vmatpush1.msra.mxu1 %v1960_v45  ;;  %v2061_v45 = vld [vmem:[#allocation12 + $0x3e0] sm:$0xff]  ;;  %2099 = vmatprep.subr.mxu0 %v2062_v43 }
 0x1e3   : > { %2142 = vmatprep.subr.mxu1 %v1959_v47  ;;  %v2060_v47 = vld [vmem:[#allocation12 + $0x3d8] sm:$0xff]  ;;  %2100 = vmatpush2.msra.mxu0 %v2061_v45 }
 0x1e4   : > { %2143 = vmatpush1.msra.mxu1 %v1958_v49  ;;  %v2059_v49 = vld [vmem:[#allocation12 + $0x3d0] sm:$0xff]  ;;  %2101 = vmatprep.subr.mxu0 %v2060_v47 }
 0x1e5   : > { %2144 = vmatprep.subr.mxu1 %v1957_v51  ;;  %2102 = vmatpush2.msra.mxu0 %v2059_v49  ;;  %v2058_v51 = vld [vmem:[#allocation12 + $0x3c8] sm:$0xff] }
 0x1e6   : > { %2145 = vmatpush1.msra.mxu1 %v1956_v53  ;;  %2103 = vmatprep.subr.mxu0 %v2058_v51  ;;  %v2057_v53 = vld [vmem:[#allocation12 + $0x3c0] sm:$0xff] }
 0x1e7   : > { %2146 = vmatprep.subr.mxu1 %v1955_v55  ;;  %2104 = vmatpush2.msra.mxu0 %v2057_v53  ;;  %v2056_v55 = vld [vmem:[#allocation12 + $0x3b8] sm:$0xff] }
 0x1e8   : > { %2147 = vmatpush1.msra.mxu1 %v1954_v57  ;;  %2105 = vmatprep.subr.mxu0 %v2056_v55  ;;  %v2055_v57 = vld [vmem:[#allocation12 + $0x3b0] sm:$0xff] }
 0x1e9   : > { %2148 = vmatprep.subr.mxu1 %v1953_v59  ;;  %2106 = vmatpush2.msra.mxu0 %v2055_v57  ;;  %v2054_v59 = vld [vmem:[#allocation12 + $0x3a8] sm:$0xff] }
 0x1ea   : > { %2149 = vmatpush1.msra.mxu1 %v1952_v62  ;;  %2107 = vmatprep.subr.mxu0 %v2054_v59  ;;  %v2053_v62 = vld [vmem:[#allocation12 + $0x3a0] sm:$0xff] }
 0x1eb   : > { %2150 = vmatprep.subr.mxu1 %v1951_v1  ;;  %v1833_v1 = vlaneseq  ;;  %2108 = vmatpush2.msra.mxu0 %v2053_v62 }
 0x1ec   : > { %2151 = vmatpush1.msra.mxu1 %v1950_v3  ;;  %v1983_v3 = vld [vmem:[#allocation12 + $0x188] sm:$0xff]  ;;  %2109 = vmatprep.subr.mxu0 %v2052_v2 }
 0x1ed   : > { %2152 = vmatprep.subr.mxu1 %v1949_v5  ;;  %v1982_v5 = vld [vmem:[#allocation12 + $0x180] sm:$0xff]  ;;  %vm4423_vm12 = vcmp.lt.s32.totalorder %v1833_v1, 256  ;;  %2110 = vmatpush2.msra.mxu0 %v2051_v4 }
 0x1ee   : > { %2153 = vmatpush1.msra.mxu1 %v1948_v7  ;;  %v2050_v7 = vld [vmem:[#allocation12 + $0x388] sm:$0xff]  ;;  %1837 = vst.msk [vmem:[#allocation4] ss:$8 sm:$0x3] %vm4423_vm12, %v4118_v0 }
 0x1ef   : > { %2154 = vmatprep.subr.mxu1 %v1947_v9  ;;  %1840 = vst.msk [vmem:[#allocation4 + $0x5] ss:$8 sm:$0x3] %vm4423_vm12, %v4118_v0  ;;  %1843 = vst.msk [vmem:[#allocation4 + $0x10] ss:$8 sm:$0x3] %vm4423_vm12, %v4118_v0  ;;  %2111 = vmatprep.subr.mxu0 %v2050_v7 }
 0x1f0   : > { %2155 = vmatpush1.msra.mxu1 %v1946_v11  ;;  %2651 = vst.msk [vmem:[#allocation5] ss:$8 sm:$0x3] %vm4423_vm12, %v4118_v0  ;;  %2654 = vst.msk [vmem:[#allocation5 + $0x5] ss:$8 sm:$0x3] %vm4423_vm12, %v4118_v0 }
 0x1f1   : > { %2156 = vmatprep.subr.mxu1 %v1945_v13  ;;  %3097 = vst.msk [vmem:[#allocation6] ss:$8 sm:$0x3] %vm4423_vm12, %v4118_v0  ;;  %3100 = vst.msk [vmem:[#allocation6 + $0x5] ss:$8 sm:$0x3] %vm4423_vm12, %v4118_v0 }
 0x1f2   : > { %2157 = vmatpush1.msra.mxu1 %v1944_v60  ;;  %v2049_v9 = vld [vmem:[#allocation12 + $0x380] sm:$0xff]  ;;  %v2048_v11 = vld [vmem:[#allocation12 + $0x378] sm:$0xff]  ;;  %v2047_v13 = vld [vmem:[#allocation12 + $0x370] sm:$0xff] }
 0x1f3   : > { %2158 = vmatprep.subr.mxu1 %v1943_v16  ;;  %2112 = vmatpush2.msra.mxu0 %v2049_v9  ;;  %v2046_v60 = vld [vmem:[#allocation12 + $0x368] sm:$0xff]  ;;  %v2045_v16 = vld [vmem:[#allocation12 + $0x360] sm:$0xff]  ;;  %v1976_v0 = vld [vmem:[#allocation12 + $0x150] sm:$0xff]  ;;  %v1855_v9 = vshrl.u32 %v1833_v1, 7 }
 0x1f4   : > { %2159 = vmatpush1.msra.mxu1 %v1942_v18  ;;  %2113 = vmatprep.subr.mxu0 %v2048_v11  ;;  %v1975_v18 = vld [vmem:[#allocation12 + $0x148] sm:$0xff] }
 0x1f5   : > { %2160 = vmatprep.subr.mxu1 %v1941_v20  ;;  %2114 = vmatpush2.msra.mxu0 %v2047_v13  ;;  %v1974_v20 = vld [vmem:[#allocation12 + $0x140] sm:$0xff] }
 0x1f6   : > { %2161 = vmatpush1.msra.mxu1 %v1940_v22  ;;  %2115 = vmatprep.subr.mxu0 %v2046_v60  ;;  %v1973_v22 = vld [vmem:[#allocation12 + $0x138] sm:$0xff] }
 0x1f7   : > { %2162 = vmatprep.subr.mxu1 %v1939_v24  ;;  %2116 = vmatpush2.msra.mxu0 %v2045_v16  ;;  %v1972_v24 = vld [vmem:[#allocation12 + $0x130] sm:$0xff] }
 0x1f8   : > { %2163 = vmatpush1.msra.mxu1 %v1938_v26  ;;  %2117 = vmatprep.subr.mxu0 %v2044_v17  ;;  %v1971_v26 = vld [vmem:[#allocation12 + $0x128] sm:$0xff] }
 0x1f9   : > { %2164 = vmatprep.subr.mxu1 %v1937_v28  ;;  %2118 = vmatpush2.msra.mxu0 %v2043_v19  ;;  %v1970_v28 = vld [vmem:[#allocation12 + $0x120] sm:$0xff] }
 0x1fa   : > { %2165 = vmatpush1.msra.mxu1 %v1936_v30  ;;  %2119 = vmatprep.subr.mxu0 %v2042_v21  ;;  %v1969_v30 = vld [vmem:[#allocation12 + $0x118] sm:$0xff] }
 0x1fb   : > { %2166 = vmatprep.subr.mxu1 %v1935_v32  ;;  %2120 = vmatpush2.msra.mxu0 %v2041_v23  ;;  %v1968_v32 = vld [vmem:[#allocation12 + $0x110] sm:$0xff] }
 0x1fc   : > { %2167 = vmatpush1.msra.mxu1 %v1934_v34  ;;  %2121 = vmatprep.subr.mxu0 %v2040_v25  ;;  %v1967_v34 = vld [vmem:[#allocation12 + $0x108] sm:$0xff] }
 0x1fd   : > { %2168 = vmatprep.subr.mxu1 %v1997_v36  ;;  %2122 = vmatpush2.msra.mxu0 %v2039_v27  ;;  %v1966_v36 = vld [vmem:[#allocation12 + $0x100] sm:$0xff]  ;;  %v2386_v27 = vld [vmem:[#allocation12 + $0x6f0] sm:$0xff] }
 0x1fe   : > { %2169 = vmatpush2.msra.mxu1 %v1996_v38  ;;  %2123 = vmatprep.subr.mxu0 %v2038_v29  ;;  %v2387_v38 = vld [vmem:[#allocation12 + $0x6f8] sm:$0xff] }
 0x1ff   : > { %2170 = vmatprep.subr.mxu1 %v1995_v40  ;;  %2124 = vmatpush2.msra.mxu0 %v2037_v31  ;;  %v2241_v40 = vld [vmem:[#allocation12 + $0x4f8] sm:$0xff]  ;;  %v2240_v31 = vld [vmem:[#allocation12 + $0x4f0] sm:$0xff] }
 0x200   : > { %2171 = vmatpush2.msra.mxu1 %v1994_v42  ;;  %2125 = vmatprep.subr.mxu0 %v2036_v33 }
 0x201   : > { %2172 = vmatprep.subr.mxu1 %v1993_v44  ;;  %2126 = vmatpush2.msra.mxu0 %v2035_v35 }
 0x202   : > { %2173 = vmatpush2.msra.mxu1 %v1992_v46  ;;  %2127 = vmatprep.subr.mxu0 %v2034_v37  ;;  %v2239_v37 = vld [vmem:[#allocation12 + $0x4e8] sm:$0xff] }
 0x203   : > { %2174 = vmatprep.subr.mxu1 %v1991_v48  ;;  %2128 = vmatpush2.msra.mxu0 %v2033_v39  ;;  %v2383_v39 = vld [vmem:[#allocation12 + $0x6d8] sm:$0xff] }
 0x204   : > { %2175 = vmatpush2.msra.mxu1 %v1990_v50  ;;  %2280 = vmatprep.subr.mxu0 %v2241_v40  ;;  %v2238_v40 = vld [vmem:[#allocation12 + $0x4e0] sm:$0xff] }
 0x205   : > { %2176 = vmatprep.subr.mxu1 %v1989_v52 }
 0x206   : > { %2177 = vmatpush2.msra.mxu1 %v1988_v54 }
 0x207   : > { %2178 = vmatprep.subr.mxu1 %v1987_v56 }
 0x208   : > { %2179 = vmatpush2.msra.mxu1 %v1986_v58 }
 0x209   : > { %2180 = vmatprep.subr.mxu1 %v1985_v61  ;;  %v4120_v61 = vmov 1966171168  }
 0x20a   : > { %2181 = vmatpush2.msra.mxu1 %v1984_v63  ;;  %v1852_v62 = vunpack.c.l.s4 %v4120_v61  ;;  %v2228_v61 = vld [vmem:[#allocation12 + $0x490] sm:$0xff] }
 0x20b   : > { %2182 = vmatprep.subr.mxu1 %v1983_v3 }
 0x20c   : > { %2183 = vmatpush2.msra.mxu1 %v1982_v5 }
 0x20d   : > { %2184 = vmatprep.subr.mxu1 %v1981_v8  ;;  %v1853_v8 = vunpack.c.0.s8 %v1852_v62  ;;  %v2372_v62 = vld [vmem:[#allocation12 + $0x680] sm:$0xff] }
 0x20e   : > { %2185 = vmatpush2.msra.mxu1 %v1980_v10 }
 0x20f   : > { %2186 = vmatprep.subr.mxu1 %v1979_v12  ;;  %v1856_v13 = vsub.s32 %v1853_v8, %v1855_v9  ;;  %v2224_v8 = vld [vmem:[#allocation12 + $0x470] sm:$0xff]  ;;  %v2368_v9 = vld [vmem:[#allocation12 + $0x660] sm:$0xff] }
 0x210   : > { %2187 = vmatpush2.msra.mxu1 %v1978_v14 }
 0x211   : > { %2188 = vmatprep.subr.mxu1 %v1977_v15 }
 0x212   : > { %2189 = vmatpush2.msra.mxu1 %v1976_v0 }
 0x213   : > { %2190 = vmatprep.subr.mxu1 %v1975_v18 }
 0x214   : > { %2191 = vmatpush2.msra.mxu1 %v1974_v20 }
 0x215   : > { %2192 = vmatprep.subr.mxu1 %v1973_v22 }
 0x216   : > { %2193 = vmatpush2.msra.mxu1 %v1972_v24 }
 0x217   : > { %2194 = vmatprep.subr.mxu1 %v1971_v26 }
 0x218   : > { %2195 = vmatpush2.msra.mxu1 %v1970_v28 }
 0x219   : > { %2196 = vmatprep.subr.mxu1 %v1969_v30  ;;  %v2385_v30 = vld [vmem:[#allocation12 + $0x6e8] sm:$0xff] }
 0x21a   : > { %2197 = vmatpush2.msra.mxu1 %v1968_v32  ;;  %v2384_v32 = vld [vmem:[#allocation12 + $0x6e0] sm:$0xff] }
 0x21b   : > { %2198 = vmatprep.subr.mxu1 %v1967_v34 }
 0x21c   : > { %2199 = vmatpush2.msra.mxu1 %v1966_v36 }
 0x21d   : > { %2426 = vmatprep.subr.mxu1 %v2387_v38 }
 0x239   : > { %v1216_v41 = vpop.f32.mrf.mxu1 }
 0x23a   : > { %v1287_v42 = vpop.f32.mrf.mxu0 }
 0x23b   : > { %v1218_v43 = vpop.f32.mrf.mxu1  ;;  %v1288_v46 = vadd.f32 %v1287_v42, %v1216_v41  ;;  %v2382_v41 = vld [vmem:[#allocation12 + $0x6d0] sm:$0xff]  ;;  %v2237_v42 = vld [vmem:[#allocation12 + $0x4d8] sm:$0xff] }
 0x23c   : > { %v1289_v45 = vpop.f32.mrf.mxu0 }
 0x23d   : > { %v1290_v48 = vadd.f32 %v1289_v45, %v1218_v43  ;;  %v2381_v43 = vld [vmem:[#allocation12 + $0x6c8] sm:$0xff]  ;;  %v2380_v45 = vld [vmem:[#allocation12 + $0x6c0] sm:$0xff] }
 0x25a   : > { %v1392_v44 = vpop.f32.mrf.mxu1 }
 0x25b   : > { %v1397_v49 = vadd.f32 %v1392_v44, %v1288_v46  ;;  %v1499_v50 = vpop.f32.mrf.mxu0  ;;  %v2236_v44 = vld [vmem:[#allocation12 + $0x4d0] sm:$0xff]  ;;  %v2235_v46 = vld [vmem:[#allocation12 + $0x4c8] sm:$0xff] }
 0x25c   : > { %v1394_v47 = vpop.f32.mrf.mxu1 }
 0x25d   : > { %v1398_v52 = vadd.f32 %v1394_v47, %v1290_v48  ;;  %v1504_v53 = vadd.f32 %v1499_v50, %v1397_v49  ;;  %v1501_v54 = vpop.f32.mrf.mxu0  ;;  %v2379_v47 = vld [vmem:[#allocation12 + $0x6b8] sm:$0xff]  ;;  %v2234_v48 = vld [vmem:[#allocation12 + $0x4c0] sm:$0xff]  ;;  %v2378_v49 = vld [vmem:[#allocation12 + $0x6b0] sm:$0xff] }
 0x25e   : > { %v2233_v50 = vld [vmem:[#allocation12 + $0x4b8] sm:$0xff] }
 0x25f   : > { %v1505_v56 = vadd.f32 %v1501_v54, %v1398_v52  ;;  %v2232_v52 = vld [vmem:[#allocation12 + $0x4b0] sm:$0xff]  ;;  %v2231_v54 = vld [vmem:[#allocation12 + $0x4a8] sm:$0xff] }
 0x27c   : > { %v1606_v51 = vpop.f32.mrf.mxu1 }
 0x27d   : > { %v1611_v57 = vadd.f32 %v1606_v51, %v1504_v53  ;;  %v1713_v58 = vpop.f32.mrf.mxu0  ;;  %v2377_v51 = vld [vmem:[#allocation12 + $0x6a8] sm:$0xff]  ;;  %v2376_v53 = vld [vmem:[#allocation12 + $0x6a0] sm:$0xff] }
 0x27e   : > { %v1608_v55 = vpop.f32.mrf.mxu1 }
 0x27f   : > { %v1612_v59 = vadd.f32 %v1608_v55, %v1505_v56  ;;  %v1718_v63 = vadd.f32 %v1713_v58, %v1611_v57  ;;  %v1715_v2 = vpop.f32.mrf.mxu0  ;;  %v2375_v55 = vld [vmem:[#allocation12 + $0x698] sm:$0xff]  ;;  %v2230_v56 = vld [vmem:[#allocation12 + $0x4a0] sm:$0xff]  ;;  %v2374_v57 = vld [vmem:[#allocation12 + $0x690] sm:$0xff] }
 0x280   : > { %v2229_v58 = vld [vmem:[#allocation12 + $0x498] sm:$0xff] }
 0x281   : > { %v1719_v4 = vadd.f32 %v1715_v2, %v1612_v59  ;;  %v2373_v59 = vld [vmem:[#allocation12 + $0x688] sm:$0xff]  ;;  %v2371_v2 = vld [vmem:[#allocation12 + $0x678] sm:$0xff] }
 0x29d   : > { %v1820_v3 = vpop.f32.mrf.mxu1 }
 0x29e   : > { %v1825_v5 = vadd.f32 %v1820_v3, %v1718_v63  ;;  %v2227_v63 = vld [vmem:[#allocation12 + $0x488] sm:$0xff]  ;;  %v2226_v3 = vld [vmem:[#allocation12 + $0x480] sm:$0xff] }
 0x29f   : > { %v1822_v7 = vpop.f32.mrf.mxu1 }
 0x2a0   : > { %v1829_v10 = vmul.f32 0.2, %v1825_v5  ;;  %v1826_v11 = vadd.f32 %v1822_v7, %v1719_v4  ;;  %vm1827_vm13 = vcmp.ge.f32.partialorder %v1825_v5, 0.0  ;;  %v2370_v4 = vld [vmem:[#allocation12 + $0x670] sm:$0xff]  ;;  %v2369_v7 = vld [vmem:[#allocation12 + $0x668] sm:$0xff] }
 0x2a2   : > { %vm1828_vm14 = vcmp.ge.f32.partialorder %v1826_v11, 0.0  ;;  %v1830_v12 = vmul.f32 0.2, %v1826_v11  ;;  %v1831_v14 = vsel %vm1827_vm13, %v1825_v5, %v1829_v10  ;;  %v2225_v5 = vld [vmem:[#allocation12 + $0x478] sm:$0xff]  ;;  %v2223_v10 = vld [vmem:[#allocation12 + $0x468] sm:$0xff] }
 0x2a4   : > { %v1832_v60 = vsel %vm1828_vm14, %v1826_v11, %v1830_v12  ;;  %v2367_v11 = vld [vmem:[#allocation12 + $0x658] sm:$0xff]  ;;  %v2222_v12 = vld [vmem:[#allocation12 + $0x460] sm:$0xff] }
 0x2a5   : > { %v1850_v15 = vcombine.low %v1831_v14, %v1832_v60  ;;  %v1891_v16 = vcombine.high %v1831_v14, %v1832_v60  ;;  %v2221_v14 = vld [vmem:[#allocation12 + $0x458] sm:$0xff]  ;;  %v2365_v60 = vld [vmem:[#allocation12 + $0x648] sm:$0xff] }
 0x2a7   : > { %v1857_v0 = vrot.slane %v1850_v15, %v1856_v13  ;;  %v1898_v17 = vrot.slane %v1891_v16, %v1856_v13  ;;  %v2220_v15 = vld [vmem:[#allocation12 + $0x450] sm:$0xff]  ;;  %v2364_v16 = vld [vmem:[#allocation12 + $0x640] sm:$0xff] }
 0x2a9   : > { %v1864_v18 = vrot.slane %v1857_v0, %v1856_v13  ;;  %v1869_v19 = vcombine.high %v1857_v0, %v1857_v0  ;;  %v1905_v20 = vrot.slane %v1898_v17, %v1856_v13  ;;  %v1910_v21 = vcombine.high %v1898_v17, %v1898_v17  ;;  %v2219_v0 = vld [vmem:[#allocation12 + $0x448] sm:$0xff]  ;;  %v2363_v17 = vld [vmem:[#allocation12 + $0x638] sm:$0xff] }
 0x2ab   : > { %1867 = vst.msk [vmem:[#allocation4 + $0x1] ss:$8 sm:$0x3] %vm4423_vm12, %v1864_v18  ;;  %v1876_v1 = vrot.slane %v1869_v19, %v1856_v13  ;;  %v1881_v22 = vcombine.high %v1864_v18, %v1864_v18  ;;  %1908 = vst.msk [vmem:[#allocation4 + $0x3] ss:$8 sm:$0x3] %vm4423_vm12, %v1905_v20  ;;  %v1917_v23 = vrot.slane %v1910_v21, %v1856_v13 }
 0x2ac   : > { %v1922_v24 = vcombine.high %v1905_v20, %v1905_v20  ;;  %v2366_v13 = vld [vmem:[#allocation12 + $0x650] sm:$0xff]  ;;  %v2218_v18 = vld [vmem:[#allocation12 + $0x440] sm:$0xff]  ;;  %v2217_v20 = vld [vmem:[#allocation12 + $0x438] sm:$0xff] }
 0x2ad   : > { %1879 = vst.msk [vmem:[#allocation4 + $0x11] ss:$8 sm:$0x3] %vm4423_vm12, %v1876_v1  ;;  %1884 = vst.msk [vmem:[#allocation4 + $0x2] ss:$8 sm:$0x3] %vm4423_vm12, %v1881_v22  ;;  %v1886_v25 = vcombine.high %v1876_v1, %v1876_v1  ;;  %v1927_v26 = vcombine.high %v1917_v23, %v1917_v23 }
 0x2ae   : > { %1920 = vst.msk [vmem:[#allocation4 + $0x13] ss:$8 sm:$0x3] %vm4423_vm12, %v1917_v23  ;;  %1925 = vst.msk [vmem:[#allocation4 + $0x4] ss:$8 sm:$0x3] %vm4423_vm12, %v1922_v24 }
 0x2af   : > { %1889 = vst.msk [vmem:[#allocation4 + $0x12] ss:$8 sm:$0x3] %vm4423_vm12, %v1886_v25  ;;  %1930 = vst.msk [vmem:[#allocation4 + $0x14] ss:$8 sm:$0x3] %vm4423_vm12, %v1927_v26 }
 0x2b0   : > { %v2362_v19 = vld [vmem:[#allocation12 + $0x630] sm:$0xff]  ;;  %v2361_v21 = vld [vmem:[#allocation12 + $0x628] sm:$0xff]  ;;  %v2360_v22 = vld [vmem:[#allocation12 + $0x620] sm:$0xff] }
 0x2b1   : > { %v2216_v1 = vld [vmem:[#allocation12 + $0x430] sm:$0xff]  ;;  %v2215_v23 = vld [vmem:[#allocation12 + $0x428] sm:$0xff]  ;;  %v2359_v24 = vld [vmem:[#allocation12 + $0x618] sm:$0xff] }
 0x2b2   : > { %v2214_v25 = vld [vmem:[#allocation12 + $0x420] sm:$0xff]  ;;  %v2358_v26 = vld [vmem:[#allocation12 + $0x610] sm:$0xff] }
 0x2b4   : > { %v1933_v28 = vld [vmem:[#allocation4 + $0x8] sm:$0xf]  ;;  %v1932_v29 = vld [vmem:[#allocation4] sm:$0xf] }
 0x2b5   : > { %2200 = vmatprep.mubr.f32.mxu1 %v1933_v28  ;;  %v2208_v33 = vld [vmem:[#allocation4 + $0x8] sm:$0x1e]  ;;  %v2357_v28 = vld [vmem:[#allocation12 + $0x608] sm:$0xff] }
 0x2b6   : > { %2201 = vmatmul.mubr.f32.vlgmr.msra.gmra.mxu1 %v1932_v29  ;;  %v1999_v34 = vld [vmem:[#allocation4 + $0x18] sm:$0xf]  ;;  %v1998_v35 = vld [vmem:[#allocation4 + $0x10] sm:$0xf]  ;;  %v2277_v6 = vrot.slane %v2208_v33, 1  ;;  %v2212_v29 = vld [vmem:[#allocation12 + $0x410] sm:$0xff] }
 0x2b7   : > { %v2354_v36 = vld [vmem:[#allocation4 + $0x18] sm:$0x1e]  ;;  %2427 = vmatpush1.msra.mxu1 %v2386_v27  ;;  %2129 = vmatprep.mubr.f32.mxu0 %v1999_v34  ;;  %v2213_v27 = vld [vmem:[#allocation12 + $0x418] sm:$0xff]  ;;  %v2210_v33 = vld [vmem:[#allocation12 + $0x400] sm:$0xff] }
 0x2b8   : > { %v2423_v38 = vrot.slane %v2354_v36, 1  ;;  %2428 = vmatprep.subr.mxu1 %v2385_v30  ;;  %2130 = vmatmul.mubr.f32.vlgmr.msra.gmra.mxu0 %v1998_v35  ;;  %v2356_v30 = vld [vmem:[#allocation12 + $0x600] sm:$0xff]  ;;  %v2418_v34 = vld [vmem:[#allocation12 + $0x7f0] sm:$0xff]  ;;  %v2273_v35 = vld [vmem:[#allocation12 + $0x5f8] sm:$0xff] }
 0x2b9   : > { %2281 = vmatpush1.msra.mxu0 %v2240_v31  ;;  %2429 = vmatpush1.msra.mxu1 %v2384_v32  ;;  %v2211_v31 = vld [vmem:[#allocation12 + $0x408] sm:$0xff]  ;;  %v2419_v32 = vld [vmem:[#allocation12 + $0x7f8] sm:$0xff] }
 0x2ba   : > { %2282 = vmatprep.subr.mxu0 %v2239_v37  ;;  %2344 = vmatprep.mubr.f32.mxu0 %v2277_v6  ;;  %v2417_v36 = vld [vmem:[#allocation12 + $0x7e8] sm:$0xff]  ;;  %v2272_v37 = vld [vmem:[#allocation12 + $0x5f0] sm:$0xff] }
 0x2bb   : > { %2430 = vmatprep.subr.mxu1 %v2383_v39  ;;  %2490 = vmatprep.mubr.f32.mxu1 %v2423_v38  ;;  %v2416_v38 = vld [vmem:[#allocation12 + $0x7e0] sm:$0xff]  ;;  %v2271_v6 = vld [vmem:[#allocation12 + $0x5e8] sm:$0xff]  ;;  %v2415_v39 = vld [vmem:[#allocation12 + $0x7d8] sm:$0xff] }
 0x2bc   : > { %2283 = vmatpush1.msra.mxu0 %v2238_v40  ;;  %2431 = vmatpush1.msra.mxu1 %v2382_v41  ;;  %v2270_v40 = vld [vmem:[#allocation12 + $0x5e0] sm:$0xff]  ;;  %v2414_v41 = vld [vmem:[#allocation12 + $0x7d0] sm:$0xff] }
 0x2bd   : > { %2284 = vmatprep.subr.mxu0 %v2237_v42  ;;  %2432 = vmatprep.subr.mxu1 %v2381_v43  ;;  %v2269_v42 = vld [vmem:[#allocation12 + $0x5d8] sm:$0xff]  ;;  %v2413_v43 = vld [vmem:[#allocation12 + $0x7c8] sm:$0xff] }
 0x2be   : > { %2285 = vmatpush1.msra.mxu0 %v2236_v44  ;;  %2433 = vmatpush1.msra.mxu1 %v2380_v45  ;;  %v2268_v44 = vld [vmem:[#allocation12 + $0x5d0] sm:$0xff]  ;;  %v2412_v45 = vld [vmem:[#allocation12 + $0x7c0] sm:$0xff] }
 0x2bf   : > { %2286 = vmatprep.subr.mxu0 %v2235_v46  ;;  %2434 = vmatprep.subr.mxu1 %v2379_v47  ;;  %v2267_v46 = vld [vmem:[#allocation12 + $0x5c8] sm:$0xff]  ;;  %v2411_v47 = vld [vmem:[#allocation12 + $0x7b8] sm:$0xff] }
 0x2c0   : > { %2287 = vmatpush1.msra.mxu0 %v2234_v48  ;;  %2435 = vmatpush1.msra.mxu1 %v2378_v49  ;;  %v2266_v48 = vld [vmem:[#allocation12 + $0x5c0] sm:$0xff]  ;;  %v2410_v49 = vld [vmem:[#allocation12 + $0x7b0] sm:$0xff] }
 0x2c1   : > { %2288 = vmatprep.subr.mxu0 %v2233_v50  ;;  %2436 = vmatprep.subr.mxu1 %v2377_v51  ;;  %v2265_v50 = vld [vmem:[#allocation12 + $0x5b8] sm:$0xff]  ;;  %v2409_v51 = vld [vmem:[#allocation12 + $0x7a8] sm:$0xff] }
 0x2c2   : > { %2289 = vmatpush1.msra.mxu0 %v2232_v52  ;;  %2437 = vmatpush1.msra.mxu1 %v2376_v53  ;;  %v2264_v52 = vld [vmem:[#allocation12 + $0x5b0] sm:$0xff]  ;;  %v2408_v53 = vld [vmem:[#allocation12 + $0x7a0] sm:$0xff] }
 0x2c3   : > { %2290 = vmatprep.subr.mxu0 %v2231_v54  ;;  %2438 = vmatprep.subr.mxu1 %v2375_v55  ;;  %v2263_v54 = vld [vmem:[#allocation12 + $0x5a8] sm:$0xff]  ;;  %v2407_v55 = vld [vmem:[#allocation12 + $0x798] sm:$0xff] }
 0x2c4   : > { %2291 = vmatpush1.msra.mxu0 %v2230_v56  ;;  %2439 = vmatpush1.msra.mxu1 %v2374_v57  ;;  %v2262_v56 = vld [vmem:[#allocation12 + $0x5a0] sm:$0xff]  ;;  %v2406_v57 = vld [vmem:[#allocation12 + $0x790] sm:$0xff] }
 0x2c5   : > { %2292 = vmatprep.subr.mxu0 %v2229_v58  ;;  %2440 = vmatprep.subr.mxu1 %v2373_v59  ;;  %v2261_v58 = vld [vmem:[#allocation12 + $0x598] sm:$0xff]  ;;  %v2405_v59 = vld [vmem:[#allocation12 + $0x788] sm:$0xff] }
 0x2c6   : > { %2293 = vmatpush1.msra.mxu0 %v2228_v61  ;;  %2441 = vmatpush1.msra.mxu1 %v2372_v62  ;;  %v2260_v61 = vld [vmem:[#allocation12 + $0x590] sm:$0xff]  ;;  %v2404_v62 = vld [vmem:[#allocation12 + $0x780] sm:$0xff] }
 0x2c7   : > { %2294 = vmatprep.subr.mxu0 %v2227_v63  ;;  %2442 = vmatprep.subr.mxu1 %v2371_v2  ;;  %v2259_v63 = vld [vmem:[#allocation12 + $0x588] sm:$0xff]  ;;  %v2403_v2 = vld [vmem:[#allocation12 + $0x778] sm:$0xff] }
 0x2c8   : > { %2295 = vmatpush1.msra.mxu0 %v2226_v3  ;;  %2443 = vmatpush1.msra.mxu1 %v2370_v4  ;;  %v2258_v3 = vld [vmem:[#allocation12 + $0x580] sm:$0xff]  ;;  %v2402_v4 = vld [vmem:[#allocation12 + $0x770] sm:$0xff] }
 0x2c9   : > { %2296 = vmatprep.subr.mxu0 %v2225_v5  ;;  %2444 = vmatprep.subr.mxu1 %v2369_v7  ;;  %v2257_v5 = vld [vmem:[#allocation12 + $0x578] sm:$0xff]  ;;  %v2401_v7 = vld [vmem:[#allocation12 + $0x768] sm:$0xff] }
 0x2ca   : > { %2297 = vmatpush1.msra.mxu0 %v2224_v8  ;;  %2445 = vmatpush1.msra.mxu1 %v2368_v9  ;;  %v2256_v8 = vld [vmem:[#allocation12 + $0x570] sm:$0xff]  ;;  %v2400_v9 = vld [vmem:[#allocation12 + $0x760] sm:$0xff] }
 0x2cb   : > { %2298 = vmatprep.subr.mxu0 %v2223_v10  ;;  %2446 = vmatprep.subr.mxu1 %v2367_v11  ;;  %v2255_v10 = vld [vmem:[#allocation12 + $0x568] sm:$0xff]  ;;  %v2399_v11 = vld [vmem:[#allocation12 + $0x758] sm:$0xff] }
 0x2cc   : > { %2299 = vmatpush1.msra.mxu0 %v2222_v12  ;;  %2447 = vmatpush1.msra.mxu1 %v2366_v13  ;;  %v2254_v12 = vld [vmem:[#allocation12 + $0x560] sm:$0xff]  ;;  %v2398_v13 = vld [vmem:[#allocation12 + $0x750] sm:$0xff] }
 0x2cd   : > { %2300 = vmatprep.subr.mxu0 %v2221_v14  ;;  %2448 = vmatprep.subr.mxu1 %v2365_v60  ;;  %v2253_v14 = vld [vmem:[#allocation12 + $0x558] sm:$0xff]  ;;  %v2397_v60 = vld [vmem:[#allocation12 + $0x748] sm:$0xff] }
 0x2ce   : > { %2301 = vmatpush1.msra.mxu0 %v2220_v15  ;;  %2449 = vmatpush1.msra.mxu1 %v2364_v16  ;;  %v2252_v15 = vld [vmem:[#allocation12 + $0x550] sm:$0xff]  ;;  %v2396_v16 = vld [vmem:[#allocation12 + $0x740] sm:$0xff] }
 0x2cf   : > { %2302 = vmatprep.subr.mxu0 %v2219_v0  ;;  %2450 = vmatprep.subr.mxu1 %v2363_v17  ;;  %v2251_v0 = vld [vmem:[#allocation12 + $0x548] sm:$0xff]  ;;  %v2395_v17 = vld [vmem:[#allocation12 + $0x738] sm:$0xff] }
 0x2d0   : > { %2303 = vmatpush1.msra.mxu0 %v2218_v18  ;;  %2451 = vmatpush1.msra.mxu1 %v2362_v19  ;;  %v2250_v18 = vld [vmem:[#allocation12 + $0x540] sm:$0xff]  ;;  %v2394_v19 = vld [vmem:[#allocation12 + $0x730] sm:$0xff] }
 0x2d1   : > { %2304 = vmatprep.subr.mxu0 %v2217_v20  ;;  %2452 = vmatprep.subr.mxu1 %v2361_v21  ;;  %v2249_v20 = vld [vmem:[#allocation12 + $0x538] sm:$0xff]  ;;  %v2393_v21 = vld [vmem:[#allocation12 + $0x728] sm:$0xff] }
 0x2d2   : > { %2305 = vmatpush1.msra.mxu0 %v2216_v1  ;;  %2453 = vmatpush1.msra.mxu1 %v2360_v22  ;;  %v2248_v1 = vld [vmem:[#allocation12 + $0x530] sm:$0xff]  ;;  %v2392_v22 = vld [vmem:[#allocation12 + $0x720] sm:$0xff] }
 0x2d3   : > { %2306 = vmatprep.subr.mxu0 %v2215_v23  ;;  %2454 = vmatprep.subr.mxu1 %v2359_v24  ;;  %v2247_v23 = vld [vmem:[#allocation12 + $0x528] sm:$0xff]  ;;  %v2391_v24 = vld [vmem:[#allocation12 + $0x718] sm:$0xff] }
 0x2d4   : > { %2307 = vmatpush1.msra.mxu0 %v2214_v25  ;;  %2455 = vmatpush1.msra.mxu1 %v2358_v26  ;;  %v2246_v25 = vld [vmem:[#allocation12 + $0x520] sm:$0xff]  ;;  %v2390_v26 = vld [vmem:[#allocation12 + $0x710] sm:$0xff] }
 0x2d5   : > { %2308 = vmatprep.subr.mxu0 %v2213_v27  ;;  %2456 = vmatprep.subr.mxu1 %v2357_v28  ;;  %v2245_v27 = vld [vmem:[#allocation12 + $0x518] sm:$0xff]  ;;  %v2389_v28 = vld [vmem:[#allocation12 + $0x708] sm:$0xff] }
 0x2d6   : > { %2309 = vmatpush1.msra.mxu0 %v2212_v29  ;;  %2457 = vmatpush1.msra.mxu1 %v2356_v30  ;;  %v2353_v29 = vld [vmem:[#allocation4 + $0x10] sm:$0x1e]  ;;  %v2244_v30 = vld [vmem:[#allocation12 + $0x510] sm:$0xff] }
 0x2d7   : > { %2310 = vmatprep.subr.mxu0 %v2211_v31  ;;  %2458 = vmatprep.subr.mxu1 %v2419_v32  ;;  %v2388_v31 = vld [vmem:[#allocation12 + $0x700] sm:$0xff]  ;;  %v2243_v32 = vld [vmem:[#allocation12 + $0x508] sm:$0xff] }
 0x2d8   : > { %2311 = vmatpush1.msra.mxu0 %v2210_v33  ;;  %2459 = vmatpush2.msra.mxu1 %v2418_v34  ;;  %v2207_v33 = vld [vmem:[#allocation4] sm:$0x1e]  ;;  %v2422_v34 = vrot.slane %v2353_v29, 1  ;;  %v2543_v29 = vld [vmem:[#allocation12 + $0x948] sm:$0xff] }
 0x2d9   : > { %2312 = vmatprep.subr.mxu0 %v2273_v35  ;;  %2460 = vmatprep.subr.mxu1 %v2417_v36  ;;  %v2242_v35 = vld [vmem:[#allocation12 + $0x500] sm:$0xff]  ;;  %v2500_v36 = vld [vmem:[#allocation4 + $0x8] sm:$0x3c] }
 0x2da   : > { %2313 = vmatpush2.msra.mxu0 %v2272_v37  ;;  %2461 = vmatpush2.msra.mxu1 %v2416_v38  ;;  %v2533_v37 = vld [vmem:[#allocation12 + $0x8f8] sm:$0xff]  ;;  %v2276_v38 = vrot.slane %v2207_v33, 1  ;;  %v2539_v33 = vld [vmem:[#allocation12 + $0x928] sm:$0xff] }
 0x2db   : > { %2314 = vmatprep.subr.mxu0 %v2271_v6  ;;  %2462 = vmatprep.subr.mxu1 %v2415_v39  ;;  %v2532_v6 = vld [vmem:[#allocation12 + $0x8f0] sm:$0xff]  ;;  %v2569_v39 = vrot.slane %v2500_v36, 2 }
 0x2dc   : > { %2315 = vmatpush2.msra.mxu0 %v2270_v40  ;;  %2463 = vmatpush2.msra.mxu1 %v2414_v41  ;;  %v2531_v40 = vld [vmem:[#allocation12 + $0x8e8] sm:$0xff]  ;;  %v2530_v41 = vld [vmem:[#allocation12 + $0x8e0] sm:$0xff]  ;;  %v2536_v36 = vld [vmem:[#allocation12 + $0x910] sm:$0xff] }
 0x2dd   : > { %2316 = vmatprep.subr.mxu0 %v2269_v42  ;;  %2464 = vmatprep.subr.mxu1 %v2413_v43  ;;  %v2529_v42 = vld [vmem:[#allocation12 + $0x8d8] sm:$0xff]  ;;  %v2528_v43 = vld [vmem:[#allocation12 + $0x8d0] sm:$0xff] }
 0x2de   : > { %2317 = vmatpush2.msra.mxu0 %v2268_v44  ;;  %2465 = vmatpush2.msra.mxu1 %v2412_v45  ;;  %v2527_v44 = vld [vmem:[#allocation12 + $0x8c8] sm:$0xff]  ;;  %v2526_v45 = vld [vmem:[#allocation12 + $0x8c0] sm:$0xff] }
 0x2df   : > { %2318 = vmatprep.subr.mxu0 %v2267_v46  ;;  %2466 = vmatprep.subr.mxu1 %v2411_v47  ;;  %v2525_v46 = vld [vmem:[#allocation12 + $0x8b8] sm:$0xff]  ;;  %v2524_v47 = vld [vmem:[#allocation12 + $0x8b0] sm:$0xff] }
 0x2e0   : > { %2319 = vmatpush2.msra.mxu0 %v2266_v48  ;;  %2467 = vmatpush2.msra.mxu1 %v2410_v49  ;;  %v2523_v48 = vld [vmem:[#allocation12 + $0x8a8] sm:$0xff]  ;;  %v2522_v49 = vld [vmem:[#allocation12 + $0x8a0] sm:$0xff] }
 0x2e1   : > { %2320 = vmatprep.subr.mxu0 %v2265_v50  ;;  %2468 = vmatprep.subr.mxu1 %v2409_v51  ;;  %v2521_v50 = vld [vmem:[#allocation12 + $0x898] sm:$0xff]  ;;  %v2520_v51 = vld [vmem:[#allocation12 + $0x890] sm:$0xff] }
 0x2e2   : > { %2321 = vmatpush2.msra.mxu0 %v2264_v52  ;;  %2469 = vmatpush2.msra.mxu1 %v2408_v53  ;;  %v2519_v52 = vld [vmem:[#allocation12 + $0x888] sm:$0xff]  ;;  %v2518_v53 = vld [vmem:[#allocation12 + $0x880] sm:$0xff] }
 0x2e3   : > { %2322 = vmatprep.subr.mxu0 %v2263_v54  ;;  %2470 = vmatprep.subr.mxu1 %v2407_v55  ;;  %v2517_v54 = vld [vmem:[#allocation12 + $0x878] sm:$0xff]  ;;  %v2516_v55 = vld [vmem:[#allocation12 + $0x870] sm:$0xff] }
 0x2e4   : > { %2323 = vmatpush2.msra.mxu0 %v2262_v56  ;;  %2471 = vmatpush2.msra.mxu1 %v2406_v57  ;;  %v2515_v56 = vld [vmem:[#allocation12 + $0x868] sm:$0xff]  ;;  %v2514_v57 = vld [vmem:[#allocation12 + $0x860] sm:$0xff] }
 0x2e5   : > { %2324 = vmatprep.subr.mxu0 %v2261_v58  ;;  %2472 = vmatprep.subr.mxu1 %v2405_v59  ;;  %v2513_v58 = vld [vmem:[#allocation12 + $0x858] sm:$0xff]  ;;  %v2512_v59 = vld [vmem:[#allocation12 + $0x850] sm:$0xff] }
 0x2e6   : > { %2325 = vmatpush2.msra.mxu0 %v2260_v61  ;;  %2473 = vmatpush2.msra.mxu1 %v2404_v62  ;;  %v2511_v61 = vld [vmem:[#allocation12 + $0x848] sm:$0xff]  ;;  %v2510_v62 = vld [vmem:[#allocation12 + $0x840] sm:$0xff] }
 0x2e7   : > { %2326 = vmatprep.subr.mxu0 %v2259_v63  ;;  %2474 = vmatprep.subr.mxu1 %v2403_v2  ;;  %v2509_v63 = vld [vmem:[#allocation12 + $0x838] sm:$0xff]  ;;  %v2508_v2 = vld [vmem:[#allocation12 + $0x830] sm:$0xff] }
 0x2e8   : > { %2327 = vmatpush2.msra.mxu0 %v2258_v3  ;;  %2475 = vmatpush2.msra.mxu1 %v2402_v4  ;;  %v2507_v3 = vld [vmem:[#allocation12 + $0x828] sm:$0xff]  ;;  %v2506_v4 = vld [vmem:[#allocation12 + $0x820] sm:$0xff] }
 0x2e9   : > { %2328 = vmatprep.subr.mxu0 %v2257_v5  ;;  %2476 = vmatprep.subr.mxu1 %v2401_v7  ;;  %v2505_v5 = vld [vmem:[#allocation12 + $0x818] sm:$0xff]  ;;  %v2504_v7 = vld [vmem:[#allocation12 + $0x810] sm:$0xff] }
 0x2ea   : > { %2329 = vmatpush2.msra.mxu0 %v2256_v8  ;;  %2477 = vmatpush2.msra.mxu1 %v2400_v9  ;;  %v2503_v8 = vld [vmem:[#allocation12 + $0x808] sm:$0xff]  ;;  %v2502_v9 = vld [vmem:[#allocation12 + $0x800] sm:$0xff] }
 0x2eb   : > { %2330 = vmatprep.subr.mxu0 %v2255_v10  ;;  %2478 = vmatprep.subr.mxu1 %v2399_v11  ;;  %v2565_v10 = vld [vmem:[#allocation12 + $0x9f8] sm:$0xff]  ;;  %v2564_v11 = vld [vmem:[#allocation12 + $0x9f0] sm:$0xff] }
 0x2ec   : > { %2331 = vmatpush2.msra.mxu0 %v2254_v12  ;;  %2479 = vmatpush2.msra.mxu1 %v2398_v13  ;;  %v2563_v12 = vld [vmem:[#allocation12 + $0x9e8] sm:$0xff]  ;;  %v2562_v13 = vld [vmem:[#allocation12 + $0x9e0] sm:$0xff] }
 0x2ed   : > { %2332 = vmatprep.subr.mxu0 %v2253_v14  ;;  %2480 = vmatprep.subr.mxu1 %v2397_v60  ;;  %v2561_v14 = vld [vmem:[#allocation12 + $0x9d8] sm:$0xff]  ;;  %v2560_v60 = vld [vmem:[#allocation12 + $0x9d0] sm:$0xff] }
 0x2ee   : > { %2333 = vmatpush2.msra.mxu0 %v2252_v15  ;;  %2481 = vmatpush2.msra.mxu1 %v2396_v16  ;;  %v2559_v15 = vld [vmem:[#allocation12 + $0x9c8] sm:$0xff]  ;;  %v2558_v16 = vld [vmem:[#allocation12 + $0x9c0] sm:$0xff] }
 0x2ef   : > { %2334 = vmatprep.subr.mxu0 %v2251_v0  ;;  %2482 = vmatprep.subr.mxu1 %v2395_v17  ;;  %v2557_v0 = vld [vmem:[#allocation12 + $0x9b8] sm:$0xff]  ;;  %v2556_v17 = vld [vmem:[#allocation12 + $0x9b0] sm:$0xff] }
 0x2f0   : > { %2335 = vmatpush2.msra.mxu0 %v2250_v18  ;;  %2483 = vmatpush2.msra.mxu1 %v2394_v19  ;;  %v2555_v18 = vld [vmem:[#allocation12 + $0x9a8] sm:$0xff]  ;;  %v2554_v19 = vld [vmem:[#allocation12 + $0x9a0] sm:$0xff] }
 0x2f1   : > { %2336 = vmatprep.subr.mxu0 %v2249_v20  ;;  %2484 = vmatprep.subr.mxu1 %v2393_v21  ;;  %v2553_v20 = vld [vmem:[#allocation12 + $0x998] sm:$0xff]  ;;  %v2552_v21 = vld [vmem:[#allocation12 + $0x990] sm:$0xff] }
 0x2f2   : > { %2337 = vmatpush2.msra.mxu0 %v2248_v1  ;;  %2485 = vmatpush2.msra.mxu1 %v2392_v22  ;;  %v2551_v1 = vld [vmem:[#allocation12 + $0x988] sm:$0xff]  ;;  %v2550_v22 = vld [vmem:[#allocation12 + $0x980] sm:$0xff] }
 0x2f3   : > { %2338 = vmatprep.subr.mxu0 %v2247_v23  ;;  %2486 = vmatprep.subr.mxu1 %v2391_v24  ;;  %v2549_v23 = vld [vmem:[#allocation12 + $0x978] sm:$0xff]  ;;  %v2548_v24 = vld [vmem:[#allocation12 + $0x970] sm:$0xff] }
 0x2f4   : > { %2339 = vmatpush2.msra.mxu0 %v2246_v25  ;;  %2487 = vmatpush2.msra.mxu1 %v2390_v26  ;;  %v2547_v25 = vld [vmem:[#allocation12 + $0x968] sm:$0xff]  ;;  %v2546_v26 = vld [vmem:[#allocation12 + $0x960] sm:$0xff] }
 0x2f5   : > { %2340 = vmatprep.subr.mxu0 %v2245_v27  ;;  %2488 = vmatprep.subr.mxu1 %v2389_v28  ;;  %v2545_v27 = vld [vmem:[#allocation12 + $0x958] sm:$0xff]  ;;  %v2544_v28 = vld [vmem:[#allocation12 + $0x950] sm:$0xff] }
 0x2f6   : > { %2341 = vmatpush2.msra.mxu0 %v2244_v30  ;;  %2489 = vmatpush2.msra.mxu1 %v2388_v31  ;;  %v2542_v30 = vld [vmem:[#allocation12 + $0x940] sm:$0xff]  ;;  %v2541_v31 = vld [vmem:[#allocation12 + $0x938] sm:$0xff] }
 0x2f7   : > { %2342 = vmatprep.subr.mxu0 %v2243_v32  ;;  %2491 = vmatmul.mubr.f32.vlgmr.msra.gmra.mxu1 %v2422_v34  ;;  %v2540_v32 = vld [vmem:[#allocation12 + $0x930] sm:$0xff]  ;;  %v2538_v34 = vld [vmem:[#allocation12 + $0x920] sm:$0xff] }
 0x2f8   : > { %2343 = vmatpush2.msra.mxu0 %v2242_v35  ;;  %v2537_v35 = vld [vmem:[#allocation12 + $0x918] sm:$0xff] }
 0x2f9   : > { %2345 = vmatmul.mubr.f32.vlgmr.msra.gmra.mxu0 %v2276_v38  ;;  %2572 = vmatprep.subr.mxu0 %v2533_v37  ;;  %v2535_v37 = vld [vmem:[#allocation12 + $0x908] sm:$0xff]  ;;  %v2499_v38 = vld [vmem:[#allocation4] sm:$0x3c] }
 0x2fa   : > { %2573 = vmatpush1.msra.mxu0 %v2532_v6  ;;  %2636 = vmatprep.mubr.f32.mxu0 %v2569_v39  ;;  %v2534_v6 = vld [vmem:[#allocation12 + $0x900] sm:$0xff]  ;;  %v2568_v39 = vrot.slane %v2499_v38, 2  ;;  %v2734_v38 = vld [vmem:[#allocation14 + $0x208] sm:$0xff] }
 0x2fb   : > { %2574 = vmatprep.subr.mxu0 %v2531_v40  ;;  %v2697_v40 = vld [vmem:[#allocation14 + $0xf8] sm:$0xff] }
 0x2fc   : > { %2575 = vmatpush1.msra.mxu0 %v2530_v41  ;;  %v2764_v41 = vld [vmem:[#allocation14 + $0x2f8] sm:$0xff] }
 0x2fd   : > { %2576 = vmatprep.subr.mxu0 %v2529_v42  ;;  %v2696_v42 = vld [vmem:[#allocation14 + $0xf0] sm:$0xff]  ;;  %2803 = vmatprep.subr.mxu1 %v2764_v41  ;;  %v2796_v41 = vld [vmem:[#allocation14 + $0x3f8] sm:$0xff] }
 0x2fe   : > { %2577 = vmatpush1.msra.mxu0 %v2528_v43  ;;  %v2763_v43 = vld [vmem:[#allocation14 + $0x2f0] sm:$0xff] }
 0x2ff   : > { %2578 = vmatprep.subr.mxu0 %v2527_v44  ;;  %v2695_v44 = vld [vmem:[#allocation14 + $0xe8] sm:$0xff]  ;;  %2804 = vmatpush1.msra.mxu1 %v2763_v43  ;;  %v2795_v43 = vld [vmem:[#allocation14 + $0x3f0] sm:$0xff] }
 0x300   : > { %2579 = vmatpush1.msra.mxu0 %v2526_v45  ;;  %v2762_v45 = vld [vmem:[#allocation14 + $0x2e8] sm:$0xff] }
 0x301   : > { %2580 = vmatprep.subr.mxu0 %v2525_v46  ;;  %v2694_v46 = vld [vmem:[#allocation14 + $0xe0] sm:$0xff]  ;;  %2805 = vmatprep.subr.mxu1 %v2762_v45  ;;  %v2794_v45 = vld [vmem:[#allocation14 + $0x3e8] sm:$0xff] }
 0x302   : > { %2581 = vmatpush1.msra.mxu0 %v2524_v47  ;;  %v2761_v47 = vld [vmem:[#allocation14 + $0x2e0] sm:$0xff] }
 0x303   : > { %2582 = vmatprep.subr.mxu0 %v2523_v48  ;;  %v2693_v48 = vld [vmem:[#allocation14 + $0xd8] sm:$0xff]  ;;  %2806 = vmatpush1.msra.mxu1 %v2761_v47  ;;  %v2793_v47 = vld [vmem:[#allocation14 + $0x3e0] sm:$0xff] }
 0x304   : > { %2583 = vmatpush1.msra.mxu0 %v2522_v49  ;;  %v2760_v49 = vld [vmem:[#allocation14 + $0x2d8] sm:$0xff] }
 0x305   : > { %2584 = vmatprep.subr.mxu0 %v2521_v50  ;;  %v2692_v50 = vld [vmem:[#allocation14 + $0xd0] sm:$0xff]  ;;  %2807 = vmatprep.subr.mxu1 %v2760_v49  ;;  %v2792_v49 = vld [vmem:[#allocation14 + $0x3d8] sm:$0xff] }
 0x306   : > { %2585 = vmatpush1.msra.mxu0 %v2520_v51  ;;  %v2759_v51 = vld [vmem:[#allocation14 + $0x2d0] sm:$0xff] }
 0x307   : > { %2586 = vmatprep.subr.mxu0 %v2519_v52  ;;  %v2691_v52 = vld [vmem:[#allocation14 + $0xc8] sm:$0xff]  ;;  %2808 = vmatpush1.msra.mxu1 %v2759_v51  ;;  %v2791_v51 = vld [vmem:[#allocation14 + $0x3d0] sm:$0xff] }
 0x308   : > { %2587 = vmatpush1.msra.mxu0 %v2518_v53  ;;  %v2758_v53 = vld [vmem:[#allocation14 + $0x2c8] sm:$0xff] }
 0x309   : > { %2588 = vmatprep.subr.mxu0 %v2517_v54  ;;  %v2690_v54 = vld [vmem:[#allocation14 + $0xc0] sm:$0xff]  ;;  %2809 = vmatprep.subr.mxu1 %v2758_v53  ;;  %v2790_v53 = vld [vmem:[#allocation14 + $0x3c8] sm:$0xff] }
 0x30a   : > { %2589 = vmatpush1.msra.mxu0 %v2516_v55  ;;  %v2757_v55 = vld [vmem:[#allocation14 + $0x2c0] sm:$0xff] }
 0x30b   : > { %2590 = vmatprep.subr.mxu0 %v2515_v56  ;;  %v2689_v56 = vld [vmem:[#allocation14 + $0xb8] sm:$0xff]  ;;  %2810 = vmatpush1.msra.mxu1 %v2757_v55  ;;  %v2789_v55 = vld [vmem:[#allocation14 + $0x3c0] sm:$0xff] }
 0x30c   : > { %2591 = vmatpush1.msra.mxu0 %v2514_v57  ;;  %v2756_v57 = vld [vmem:[#allocation14 + $0x2b8] sm:$0xff] }
 0x30d   : > { %2592 = vmatprep.subr.mxu0 %v2513_v58  ;;  %v2688_v58 = vld [vmem:[#allocation14 + $0xb0] sm:$0xff]  ;;  %2811 = vmatprep.subr.mxu1 %v2756_v57  ;;  %v2788_v57 = vld [vmem:[#allocation14 + $0x3b8] sm:$0xff] }
 0x30e   : > { %2593 = vmatpush1.msra.mxu0 %v2512_v59  ;;  %v2755_v59 = vld [vmem:[#allocation14 + $0x2b0] sm:$0xff] }
 0x30f   : > { %2594 = vmatprep.subr.mxu0 %v2511_v61  ;;  %v2687_v61 = vld [vmem:[#allocation14 + $0xa8] sm:$0xff]  ;;  %2812 = vmatpush1.msra.mxu1 %v2755_v59  ;;  %v2787_v59 = vld [vmem:[#allocation14 + $0x3b0] sm:$0xff] }
 0x310   : > { %2595 = vmatpush1.msra.mxu0 %v2510_v62  ;;  %v2754_v62 = vld [vmem:[#allocation14 + $0x2a8] sm:$0xff] }
 0x311   : > { %2596 = vmatprep.subr.mxu0 %v2509_v63  ;;  %v2686_v63 = vld [vmem:[#allocation14 + $0xa0] sm:$0xff]  ;;  %2813 = vmatprep.subr.mxu1 %v2754_v62  ;;  %v2786_v62 = vld [vmem:[#allocation14 + $0x3a8] sm:$0xff] }
 0x312   : > { %2597 = vmatpush1.msra.mxu0 %v2508_v2  ;;  %v2753_v2 = vld [vmem:[#allocation14 + $0x2a0] sm:$0xff] }
 0x313   : > { %2598 = vmatprep.subr.mxu0 %v2507_v3  ;;  %v2685_v3 = vld [vmem:[#allocation14 + $0x98] sm:$0xff]  ;;  %2814 = vmatpush1.msra.mxu1 %v2753_v2  ;;  %v2785_v2 = vld [vmem:[#allocation14 + $0x3a0] sm:$0xff] }
 0x314   : > { %2599 = vmatpush1.msra.mxu0 %v2506_v4  ;;  %v2752_v4 = vld [vmem:[#allocation14 + $0x298] sm:$0xff] }
 0x315   : > { %2600 = vmatprep.subr.mxu0 %v2505_v5  ;;  %v2684_v5 = vld [vmem:[#allocation14 + $0x90] sm:$0xff]  ;;  %2815 = vmatprep.subr.mxu1 %v2752_v4  ;;  %v2784_v4 = vld [vmem:[#allocation14 + $0x398] sm:$0xff] }
 0x316   : > { %2601 = vmatpush1.msra.mxu0 %v2504_v7  ;;  %v2751_v7 = vld [vmem:[#allocation14 + $0x290] sm:$0xff] }
 0x317   : > { %2602 = vmatprep.subr.mxu0 %v2503_v8  ;;  %v2683_v8 = vld [vmem:[#allocation14 + $0x88] sm:$0xff]  ;;  %2816 = vmatpush1.msra.mxu1 %v2751_v7  ;;  %v2783_v7 = vld [vmem:[#allocation14 + $0x390] sm:$0xff] }
 0x318   : > { %2603 = vmatpush1.msra.mxu0 %v2502_v9  ;;  %v2750_v9 = vld [vmem:[#allocation14 + $0x288] sm:$0xff] }
 0x319   : > { %2604 = vmatprep.subr.mxu0 %v2565_v10  ;;  %v2682_v10 = vld [vmem:[#allocation14 + $0x80] sm:$0xff]  ;;  %2817 = vmatprep.subr.mxu1 %v2750_v9  ;;  %v2782_v9 = vld [vmem:[#allocation14 + $0x388] sm:$0xff] }
 0x31a   : > { %2605 = vmatpush2.msra.mxu0 %v2564_v11  ;;  %v2749_v11 = vld [vmem:[#allocation14 + $0x280] sm:$0xff] }
 0x31b   : > { %2606 = vmatprep.subr.mxu0 %v2563_v12  ;;  %v2681_v12 = vld [vmem:[#allocation14 + $0x78] sm:$0xff]  ;;  %2818 = vmatpush1.msra.mxu1 %v2749_v11  ;;  %v2781_v11 = vld [vmem:[#allocation14 + $0x380] sm:$0xff] }
 0x31c   : > { %2607 = vmatpush2.msra.mxu0 %v2562_v13  ;;  %v2748_v13 = vld [vmem:[#allocation14 + $0x278] sm:$0xff] }
 0x31d   : > { %2608 = vmatprep.subr.mxu0 %v2561_v14  ;;  %v2680_v14 = vld [vmem:[#allocation14 + $0x70] sm:$0xff]  ;;  %2819 = vmatprep.subr.mxu1 %v2748_v13  ;;  %v2780_v13 = vld [vmem:[#allocation14 + $0x378] sm:$0xff] }
 0x31e   : > { %2609 = vmatpush2.msra.mxu0 %v2560_v60  ;;  %v2747_v60 = vld [vmem:[#allocation14 + $0x270] sm:$0xff] }
 0x31f   : > { %2610 = vmatprep.subr.mxu0 %v2559_v15  ;;  %v2679_v15 = vld [vmem:[#allocation14 + $0x68] sm:$0xff]  ;;  %2820 = vmatpush1.msra.mxu1 %v2747_v60  ;;  %v2779_v60 = vld [vmem:[#allocation14 + $0x370] sm:$0xff] }
 0x320   : > { %2611 = vmatpush2.msra.mxu0 %v2558_v16  ;;  %v2746_v16 = vld [vmem:[#allocation14 + $0x268] sm:$0xff] }
 0x321   : > { %2612 = vmatprep.subr.mxu0 %v2557_v0  ;;  %v2678_v0 = vld [vmem:[#allocation14 + $0x60] sm:$0xff]  ;;  %2821 = vmatprep.subr.mxu1 %v2746_v16  ;;  %v2778_v16 = vld [vmem:[#allocation14 + $0x368] sm:$0xff] }
 0x322   : > { %2613 = vmatpush2.msra.mxu0 %v2556_v17  ;;  %v2745_v17 = vld [vmem:[#allocation14 + $0x260] sm:$0xff] }
 0x323   : > { %2614 = vmatprep.subr.mxu0 %v2555_v18  ;;  %v2677_v18 = vld [vmem:[#allocation14 + $0x58] sm:$0xff]  ;;  %2822 = vmatpush1.msra.mxu1 %v2745_v17  ;;  %v2777_v17 = vld [vmem:[#allocation14 + $0x360] sm:$0xff] }
 0x324   : > { %2615 = vmatpush2.msra.mxu0 %v2554_v19  ;;  %v2744_v19 = vld [vmem:[#allocation14 + $0x258] sm:$0xff] }
 0x325   : > { %2616 = vmatprep.subr.mxu0 %v2553_v20  ;;  %v2676_v20 = vld [vmem:[#allocation14 + $0x50] sm:$0xff]  ;;  %2823 = vmatprep.subr.mxu1 %v2744_v19  ;;  %v2776_v19 = vld [vmem:[#allocation14 + $0x358] sm:$0xff] }
 0x326   : > { %2617 = vmatpush2.msra.mxu0 %v2552_v21  ;;  %v2743_v21 = vld [vmem:[#allocation14 + $0x250] sm:$0xff] }
 0x327   : > { %2618 = vmatprep.subr.mxu0 %v2551_v1  ;;  %v2675_v1 = vld [vmem:[#allocation14 + $0x48] sm:$0xff]  ;;  %2824 = vmatpush1.msra.mxu1 %v2743_v21  ;;  %v2775_v21 = vld [vmem:[#allocation14 + $0x350] sm:$0xff] }
 0x328   : > { %2619 = vmatpush2.msra.mxu0 %v2550_v22  ;;  %v2742_v22 = vld [vmem:[#allocation14 + $0x248] sm:$0xff] }
 0x329   : > { %2620 = vmatprep.subr.mxu0 %v2549_v23  ;;  %v2674_v23 = vld [vmem:[#allocation14 + $0x40] sm:$0xff]  ;;  %2825 = vmatprep.subr.mxu1 %v2742_v22  ;;  %v2774_v22 = vld [vmem:[#allocation14 + $0x348] sm:$0xff] }
 0x32a   : > { %2621 = vmatpush2.msra.mxu0 %v2548_v24  ;;  %v2741_v24 = vld [vmem:[#allocation14 + $0x240] sm:$0xff] }
 0x32b   : > { %2622 = vmatprep.subr.mxu0 %v2547_v25  ;;  %v2673_v25 = vld [vmem:[#allocation14 + $0x38] sm:$0xff]  ;;  %2826 = vmatpush1.msra.mxu1 %v2741_v24  ;;  %v2773_v24 = vld [vmem:[#allocation14 + $0x340] sm:$0xff] }
 0x32c   : > { %2623 = vmatpush2.msra.mxu0 %v2546_v26  ;;  %v2740_v26 = vld [vmem:[#allocation14 + $0x238] sm:$0xff] }
 0x32d   : > { %2624 = vmatprep.subr.mxu0 %v2545_v27  ;;  %v2672_v27 = vld [vmem:[#allocation14 + $0x30] sm:$0xff]  ;;  %2827 = vmatprep.subr.mxu1 %v2740_v26  ;;  %v2772_v26 = vld [vmem:[#allocation14 + $0x338] sm:$0xff] }
 0x32e   : > { %2625 = vmatpush2.msra.mxu0 %v2544_v28  ;;  %v2739_v28 = vld [vmem:[#allocation14 + $0x230] sm:$0xff] }
 0x32f   : > { %2626 = vmatprep.subr.mxu0 %v2543_v29  ;;  %v2671_v29 = vld [vmem:[#allocation14 + $0x28] sm:$0xff]  ;;  %2828 = vmatpush1.msra.mxu1 %v2739_v28  ;;  %v2771_v28 = vld [vmem:[#allocation14 + $0x330] sm:$0xff] }
 0x330   : > { %2627 = vmatpush2.msra.mxu0 %v2542_v30  ;;  %v2738_v30 = vld [vmem:[#allocation14 + $0x228] sm:$0xff] }
 0x331   : > { %2628 = vmatprep.subr.mxu0 %v2541_v31  ;;  %v2670_v31 = vld [vmem:[#allocation14 + $0x20] sm:$0xff]  ;;  %2829 = vmatprep.subr.mxu1 %v2738_v30  ;;  %v2770_v30 = vld [vmem:[#allocation14 + $0x328] sm:$0xff] }
 0x332   : > { %2629 = vmatpush2.msra.mxu0 %v2540_v32  ;;  %v2737_v32 = vld [vmem:[#allocation14 + $0x220] sm:$0xff] }
 0x333   : > { %2630 = vmatprep.subr.mxu0 %v2539_v33  ;;  %v2669_v33 = vld [vmem:[#allocation14 + $0x18] sm:$0xff]  ;;  %2830 = vmatpush1.msra.mxu1 %v2737_v32  ;;  %v2769_v32 = vld [vmem:[#allocation14 + $0x320] sm:$0xff] }
 0x334   : > { %2631 = vmatpush2.msra.mxu0 %v2538_v34  ;;  %v2736_v34 = vld [vmem:[#allocation14 + $0x218] sm:$0xff] }
 0x335   : > { %2632 = vmatprep.subr.mxu0 %v2537_v35  ;;  %v2668_v35 = vld [vmem:[#allocation14 + $0x10] sm:$0xff]  ;;  %2831 = vmatprep.subr.mxu1 %v2736_v34  ;;  %v2768_v34 = vld [vmem:[#allocation14 + $0x318] sm:$0xff] }
 0x336   : > { %2633 = vmatpush2.msra.mxu0 %v2536_v36  ;;  %v2735_v36 = vld [vmem:[#allocation14 + $0x210] sm:$0xff] }
 0x337   : > { %2634 = vmatprep.subr.mxu0 %v2535_v37  ;;  %v2667_v37 = vld [vmem:[#allocation14 + $0x8] sm:$0xff]  ;;  %2832 = vmatpush1.msra.mxu1 %v2735_v36  ;;  %v2767_v36 = vld [vmem:[#allocation14 + $0x310] sm:$0xff] }
 0x338   : > { %2635 = vmatpush2.msra.mxu0 %v2534_v6  ;;  %v2666_v6 = vld [vmem:[#allocation14] sm:$0xff]  ;;  %2833 = vmatprep.subr.mxu1 %v2734_v38  ;;  %v2766_v38 = vld [vmem:[#allocation14 + $0x308] sm:$0xff] }
 0x339   : > { %2637 = vmatmul.mubr.f32.vlgmr.msra.gmra.mxu0 %v2568_v39  ;;  %2874 = vmatprep.subr.mxu0 %v2697_v40  ;;  %v2733_v39 = vld [vmem:[#allocation14 + $0x200] sm:$0xff]  ;;  %v2729_v40 = vld [vmem:[#allocation14 + $0x1f8] sm:$0xff] }
 0x33a   : > { %2875 = vmatpush1.msra.mxu0 %v2696_v42  ;;  %v2728_v42 = vld [vmem:[#allocation14 + $0x1f0] sm:$0xff]  ;;  %2834 = vmatpush1.msra.mxu1 %v2733_v39  ;;  %v2765_v39 = vld [vmem:[#allocation14 + $0x300] sm:$0xff] }
 0x33b   : > { %2876 = vmatprep.subr.mxu0 %v2695_v44  ;;  %v2727_v44 = vld [vmem:[#allocation14 + $0x1e8] sm:$0xff]  ;;  %2835 = vmatprep.subr.mxu1 %v2796_v41 }
 0x33c   : > { %2877 = vmatpush1.msra.mxu0 %v2694_v46  ;;  %v2726_v46 = vld [vmem:[#allocation14 + $0x1e0] sm:$0xff]  ;;  %2836 = vmatpush2.msra.mxu1 %v2795_v43 }
 0x33d   : > { %2878 = vmatprep.subr.mxu0 %v2693_v48  ;;  %v2725_v48 = vld [vmem:[#allocation14 + $0x1d8] sm:$0xff]  ;;  %2837 = vmatprep.subr.mxu1 %v2794_v45 }
 0x33e   : > { %2879 = vmatpush1.msra.mxu0 %v2692_v50  ;;  %v2724_v50 = vld [vmem:[#allocation14 + $0x1d0] sm:$0xff]  ;;  %2838 = vmatpush2.msra.mxu1 %v2793_v47 }
 0x33f   : > { %2880 = vmatprep.subr.mxu0 %v2691_v52  ;;  %v2723_v52 = vld [vmem:[#allocation14 + $0x1c8] sm:$0xff]  ;;  %2839 = vmatprep.subr.mxu1 %v2792_v49 }
 0x340   : > { %2881 = vmatpush1.msra.mxu0 %v2690_v54  ;;  %v2722_v54 = vld [vmem:[#allocation14 + $0x1c0] sm:$0xff]  ;;  %2840 = vmatpush2.msra.mxu1 %v2791_v51 }
 0x341   : > { %2882 = vmatprep.subr.mxu0 %v2689_v56  ;;  %v2721_v56 = vld [vmem:[#allocation14 + $0x1b8] sm:$0xff]  ;;  %2841 = vmatprep.subr.mxu1 %v2790_v53 }
 0x342   : > { %2883 = vmatpush1.msra.mxu0 %v2688_v58  ;;  %v2720_v58 = vld [vmem:[#allocation14 + $0x1b0] sm:$0xff]  ;;  %2842 = vmatpush2.msra.mxu1 %v2789_v55 }
 0x343   : > { %2884 = vmatprep.subr.mxu0 %v2687_v61  ;;  %v2719_v61 = vld [vmem:[#allocation14 + $0x1a8] sm:$0xff]  ;;  %2843 = vmatprep.subr.mxu1 %v2788_v57 }
 0x344   : > { %2885 = vmatpush1.msra.mxu0 %v2686_v63  ;;  %v2718_v63 = vld [vmem:[#allocation14 + $0x1a0] sm:$0xff]  ;;  %2844 = vmatpush2.msra.mxu1 %v2787_v59 }
 0x345   : > { %2886 = vmatprep.subr.mxu0 %v2685_v3  ;;  %v2717_v3 = vld [vmem:[#allocation14 + $0x198] sm:$0xff]  ;;  %2845 = vmatprep.subr.mxu1 %v2786_v62 }
 0x346   : > { %2887 = vmatpush1.msra.mxu0 %v2684_v5  ;;  %2846 = vmatpush2.msra.mxu1 %v2785_v2  ;;  %v2716_v5 = vld [vmem:[#allocation14 + $0x190] sm:$0xff] }
 0x347   : > { %2888 = vmatprep.subr.mxu0 %v2683_v8  ;;  %2847 = vmatprep.subr.mxu1 %v2784_v4  ;;  %v2715_v8 = vld [vmem:[#allocation14 + $0x188] sm:$0xff] }
 0x348   : > { %2889 = vmatpush1.msra.mxu0 %v2682_v10  ;;  %2848 = vmatpush2.msra.mxu1 %v2783_v7  ;;  %v2714_v10 = vld [vmem:[#allocation14 + $0x180] sm:$0xff] }
 0x349   : > { %2890 = vmatprep.subr.mxu0 %v2681_v12  ;;  %2849 = vmatprep.subr.mxu1 %v2782_v9  ;;  %v2713_v12 = vld [vmem:[#allocation14 + $0x178] sm:$0xff] }
 0x34a   : > { %2891 = vmatpush1.msra.mxu0 %v2680_v14  ;;  %2850 = vmatpush2.msra.mxu1 %v2781_v11  ;;  %v2712_v14 = vld [vmem:[#allocation14 + $0x170] sm:$0xff] }
 0x34b   : > { %2892 = vmatprep.subr.mxu0 %v2679_v15  ;;  %2851 = vmatprep.subr.mxu1 %v2780_v13  ;;  %v2711_v15 = vld [vmem:[#allocation14 + $0x168] sm:$0xff] }
 0x34c   : > { %2893 = vmatpush1.msra.mxu0 %v2678_v0  ;;  %2852 = vmatpush2.msra.mxu1 %v2779_v60  ;;  %v2710_v0 = vld [vmem:[#allocation14 + $0x160] sm:$0xff]  ;;  %v2977_v13 = vld [vmem:[#allocation14 + $0x4e8] sm:$0xff] }
 0x34d   : > { %2894 = vmatprep.subr.mxu0 %v2677_v18  ;;  %2853 = vmatprep.subr.mxu1 %v2778_v16  ;;  %v2709_v18 = vld [vmem:[#allocation14 + $0x158] sm:$0xff]  ;;  %v2976_v60 = vld [vmem:[#allocation14 + $0x4e0] sm:$0xff]  ;;  %v2974_v16 = vld [vmem:[#allocation14 + $0x4d0] sm:$0xff] }
 0x34e   : > { %2895 = vmatpush1.msra.mxu0 %v2676_v20  ;;  %2854 = vmatpush2.msra.mxu1 %v2777_v17  ;;  %v2708_v20 = vld [vmem:[#allocation14 + $0x150] sm:$0xff]  ;;  %v2972_v17 = vld [vmem:[#allocation14 + $0x4c0] sm:$0xff] }
 0x34f   : > { %2896 = vmatprep.subr.mxu0 %v2675_v1  ;;  %2855 = vmatprep.subr.mxu1 %v2776_v19  ;;  %v2707_v1 = vld [vmem:[#allocation14 + $0x148] sm:$0xff]  ;;  %v2970_v19 = vld [vmem:[#allocation14 + $0x4b0] sm:$0xff] }
 0x350   : > { %2897 = vmatpush1.msra.mxu0 %v2674_v23  ;;  %2856 = vmatpush2.msra.mxu1 %v2775_v21  ;;  %v2706_v23 = vld [vmem:[#allocation14 + $0x140] sm:$0xff] }
 0x351   : > { %2898 = vmatprep.subr.mxu0 %v2673_v25  ;;  %v2705_v25 = vld [vmem:[#allocation14 + $0x138] sm:$0xff]  ;;  %2857 = vmatprep.subr.mxu1 %v2774_v22  ;;  %v2968_v21 = vld [vmem:[#allocation14 + $0x4a0] sm:$0xff]  ;;  %v2966_v22 = vld [vmem:[#allocation14 + $0x490] sm:$0xff] }
 0x352   : > { %2899 = vmatpush1.msra.mxu0 %v2672_v27  ;;  %v2704_v27 = vld [vmem:[#allocation14 + $0x130] sm:$0xff]  ;;  %2858 = vmatpush2.msra.mxu1 %v2773_v24  ;;  %v2964_v24 = vld [vmem:[#allocation14 + $0x480] sm:$0xff] }
 0x353   : > { %2900 = vmatprep.subr.mxu0 %v2671_v29  ;;  %v2703_v29 = vld [vmem:[#allocation14 + $0x128] sm:$0xff]  ;;  %2859 = vmatprep.subr.mxu1 %v2772_v26  ;;  %v2962_v26 = vld [vmem:[#allocation14 + $0x470] sm:$0xff] }
 0x354   : > { %2901 = vmatpush1.msra.mxu0 %v2670_v31  ;;  %v2702_v31 = vld [vmem:[#allocation14 + $0x120] sm:$0xff]  ;;  %2860 = vmatpush2.msra.mxu1 %v2771_v28 }
 0x355   : > { %2902 = vmatprep.subr.mxu0 %v2669_v33  ;;  %v2701_v33 = vld [vmem:[#allocation14 + $0x118] sm:$0xff]  ;;  %2861 = vmatprep.subr.mxu1 %v2770_v30  ;;  %v2960_v28 = vld [vmem:[#allocation14 + $0x460] sm:$0xff]  ;;  %v2958_v30 = vld [vmem:[#allocation14 + $0x450] sm:$0xff] }
 0x356   : > { %2903 = vmatpush1.msra.mxu0 %v2668_v35  ;;  %v2700_v35 = vld [vmem:[#allocation14 + $0x110] sm:$0xff]  ;;  %2862 = vmatpush2.msra.mxu1 %v2769_v32  ;;  %v2956_v32 = vld [vmem:[#allocation14 + $0x440] sm:$0xff] }
 0x357   : > { %2904 = vmatprep.subr.mxu0 %v2667_v37  ;;  %v2699_v37 = vld [vmem:[#allocation14 + $0x108] sm:$0xff]  ;;  %2863 = vmatprep.subr.mxu1 %v2768_v34  ;;  %v2954_v34 = vld [vmem:[#allocation14 + $0x430] sm:$0xff] }
 0x358   : > { %2905 = vmatpush1.msra.mxu0 %v2666_v6  ;;  %v2698_v6 = vld [vmem:[#allocation14 + $0x100] sm:$0xff]  ;;  %2864 = vmatpush2.msra.mxu1 %v2767_v36 }
 0x359   : > { %2906 = vmatprep.subr.mxu0 %v2729_v40  ;;  %2865 = vmatprep.subr.mxu1 %v2766_v38  ;;  %v2979_v40 = vld [vmem:[#allocation14 + $0x4f8] sm:$0xff]  ;;  %v2952_v36 = vld [vmem:[#allocation14 + $0x420] sm:$0xff]  ;;  %v2950_v38 = vld [vmem:[#allocation14 + $0x410] sm:$0xff] }
 0x35a   : > { %2907 = vmatpush2.msra.mxu0 %v2728_v42  ;;  %2866 = vmatpush2.msra.mxu1 %v2765_v39  ;;  %v2948_v39 = vld [vmem:[#allocation14 + $0x400] sm:$0xff] }
 0x35b   : > { %2908 = vmatprep.subr.mxu0 %v2727_v44  ;;  %3018 = vmatprep.subr.mxu1 %v2979_v40  ;;  %v3011_v40 = vld [vmem:[#allocation14 + $0x5f8] sm:$0xff] }
 0x35c   : > { %2909 = vmatpush2.msra.mxu0 %v2726_v46 }
 0x35d   : > { %2910 = vmatprep.subr.mxu0 %v2725_v48 }
 0x35e   : > { %2911 = vmatpush2.msra.mxu0 %v2724_v50 }
 0x35f   : > { %2912 = vmatprep.subr.mxu0 %v2723_v52 }
 0x360   : > { %2913 = vmatpush2.msra.mxu0 %v2722_v54 }
 0x361   : > { %2914 = vmatprep.subr.mxu0 %v2721_v56 }
 0x362   : > { %2915 = vmatpush2.msra.mxu0 %v2720_v58 }
 0x363   : > { %2916 = vmatprep.subr.mxu0 %v2719_v61 }
 0x364   : > { %2917 = vmatpush2.msra.mxu0 %v2718_v63 }
 0x365   : > { %2918 = vmatprep.subr.mxu0 %v2717_v3 }
 0x366   : > { %2919 = vmatpush2.msra.mxu0 %v2716_v5 }
 0x367   : > { %2920 = vmatprep.subr.mxu0 %v2715_v8 }
 0x368   : > { %2921 = vmatpush2.msra.mxu0 %v2714_v10 }
 0x369   : > { %2922 = vmatprep.subr.mxu0 %v2713_v12  ;;  %v2978_v12 = vld [vmem:[#allocation14 + $0x4f0] sm:$0xff] }
 0x36a   : > { %2923 = vmatpush2.msra.mxu0 %v2712_v14 }
 0x36b   : > { %2924 = vmatprep.subr.mxu0 %v2711_v15  ;;  %v2975_v15 = vld [vmem:[#allocation14 + $0x4d8] sm:$0xff] }
 0x36c   : > { %2925 = vmatpush2.msra.mxu0 %v2710_v0  ;;  %v2973_v0 = vld [vmem:[#allocation14 + $0x4c8] sm:$0xff] }
 0x36d   : > { %2926 = vmatprep.subr.mxu0 %v2709_v18  ;;  %v2971_v18 = vld [vmem:[#allocation14 + $0x4b8] sm:$0xff] }
 0x36e   : > { %2927 = vmatpush2.msra.mxu0 %v2708_v20  ;;  %v2969_v20 = vld [vmem:[#allocation14 + $0x4a8] sm:$0xff] }
 0x36f   : > { %2928 = vmatprep.subr.mxu0 %v2707_v1  ;;  %v2967_v1 = vld [vmem:[#allocation14 + $0x498] sm:$0xff] }
 0x370   : > { %2929 = vmatpush2.msra.mxu0 %v2706_v23  ;;  %v2965_v23 = vld [vmem:[#allocation14 + $0x488] sm:$0xff] }
 0x371   : > { %2930 = vmatprep.subr.mxu0 %v2705_v25  ;;  %v2963_v25 = vld [vmem:[#allocation14 + $0x478] sm:$0xff] }
 0x372   : > { %2931 = vmatpush2.msra.mxu0 %v2704_v27  ;;  %v2961_v27 = vld [vmem:[#allocation14 + $0x468] sm:$0xff] }
 0x373   : > { %2932 = vmatprep.subr.mxu0 %v2703_v29  ;;  %v2959_v29 = vld [vmem:[#allocation14 + $0x458] sm:$0xff] }
 0x374   : > { %2933 = vmatpush2.msra.mxu0 %v2702_v31  ;;  %v2957_v31 = vld [vmem:[#allocation14 + $0x448] sm:$0xff] }
 0x375   : > { %2934 = vmatprep.subr.mxu0 %v2701_v33  ;;  %v2955_v33 = vld [vmem:[#allocation14 + $0x438] sm:$0xff] }
 0x376   : > { %2935 = vmatpush2.msra.mxu0 %v2700_v35  ;;  %v2202_v43 = vpop.f32.mrf.mxu1  ;;  %v2953_v35 = vld [vmem:[#allocation14 + $0x428] sm:$0xff] }
 0x377   : > { %2936 = vmatprep.subr.mxu0 %v2699_v37  ;;  %v2951_v37 = vld [vmem:[#allocation14 + $0x418] sm:$0xff] }
 0x378   : > { %2937 = vmatpush2.msra.mxu0 %v2698_v6  ;;  %v2131_v41 = vpop.f32.mrf.mxu0  ;;  %v2204_v46 = vpop.f32.mrf.mxu1  ;;  %v2949_v6 = vld [vmem:[#allocation14 + $0x408] sm:$0xff] }
 0x379   : > { %v2203_v45 = vadd.f32 %v2202_v43, %v2131_v41  ;;  %v3010_v41 = vld [vmem:[#allocation14 + $0x5f0] sm:$0xff]  ;;  %v3008_v43 = vld [vmem:[#allocation14 + $0x5e0] sm:$0xff] }
 0x37a   : > { %v2133_v42 = vpop.f32.mrf.mxu0 }
 0x37b   : > { %v2205_v48 = vadd.f32 %v2204_v46, %v2133_v42  ;;  %v3009_v42 = vld [vmem:[#allocation14 + $0x5e8] sm:$0xff] }
 0x37c   : > { %v3005_v46 = vld [vmem:[#allocation14 + $0x5c8] sm:$0xff] }
 0x3b7   : > { %v2492_v50 = vpop.f32.mrf.mxu1 }
 0x3b9   : > { %v2346_v44 = vpop.f32.mrf.mxu0  ;;  %v2494_v53 = vpop.f32.mrf.mxu1 }
 0x3ba   : > { %v2351_v49 = vadd.f32 %v2346_v44, %v2203_v45  ;;  %v3007_v44 = vld [vmem:[#allocation14 + $0x5d8] sm:$0xff]  ;;  %v3006_v45 = vld [vmem:[#allocation14 + $0x5d0] sm:$0xff] }
 0x3bb   : > { %v2348_v47 = vpop.f32.mrf.mxu0 }
 0x3bc   : > { %v2352_v51 = vadd.f32 %v2348_v47, %v2205_v48  ;;  %v2497_v52 = vadd.f32 %v2492_v50, %v2351_v49  ;;  %v3004_v47 = vld [vmem:[#allocation14 + $0x5c0] sm:$0xff]  ;;  %v3003_v48 = vld [vmem:[#allocation14 + $0x5b8] sm:$0xff]  ;;  %v3002_v49 = vld [vmem:[#allocation14 + $0x5b0] sm:$0xff] }
 0x3bd   : > { %v3001_v50 = vld [vmem:[#allocation14 + $0x5a8] sm:$0xff] }
 0x3be   : > { %v2498_v56 = vadd.f32 %v2494_v53, %v2352_v51  ;;  %v3000_v51 = vld [vmem:[#allocation14 + $0x5a0] sm:$0xff]  ;;  %v2998_v53 = vld [vmem:[#allocation14 + $0x590] sm:$0xff] }
 0x3f9   : > { %v2638_v54 = vpop.f32.mrf.mxu0 }
 0x3fa   : > { %v2643_v55 = vadd.f32 %v2638_v54, %v2497_v52  ;;  %v2999_v52 = vld [vmem:[#allocation14 + $0x598] sm:$0xff]  ;;  %v2997_v54 = vld [vmem:[#allocation14 + $0x588] sm:$0xff] }
 0x3fb   : > { %v2640_v57 = vpop.f32.mrf.mxu0 }
 0x3fc   : > { %vm2645_vm15 = vcmp.ge.f32.partialorder %v2643_v55, 0.0  ;;  %v2647_v58 = vmul.f32 0.2, %v2643_v55  ;;  %v2644_v59 = vadd.f32 %v2640_v57, %v2498_v56  ;;  %v2995_v56 = vld [vmem:[#allocation14 + $0x578] sm:$0xff]  ;;  %v2994_v57 = vld [vmem:[#allocation14 + $0x570] sm:$0xff] }
 0x3fe   : > { %v2649_v61 = vsel %vm2645_vm15, %v2643_v55, %v2647_v58  ;;  %vm2646_vm0 = vcmp.ge.f32.partialorder %v2644_v59, 0.0  ;;  %v2648_v62 = vmul.f32 0.2, %v2644_v59  ;;  %v2996_v55 = vld [vmem:[#allocation14 + $0x580] sm:$0xff]  ;;  %v2993_v58 = vld [vmem:[#allocation14 + $0x568] sm:$0xff] }
 0x3ff   : > { %v2658_v63 = vrot.slane %v2649_v61, 7  ;;  %v2991_v61 = vld [vmem:[#allocation14 + $0x558] sm:$0xff] }
 0x400   : > { %v2650_v2 = vsel %vm2646_vm0, %v2644_v59, %v2648_v62  ;;  %v2992_v59 = vld [vmem:[#allocation14 + $0x560] sm:$0xff]  ;;  %v2990_v62 = vld [vmem:[#allocation14 + $0x550] sm:$0xff] }
 0x401   : > { %2662 = vst [vmem:[#allocation5] sm:$0x1e] %v2658_v63  ;;  %v2659_v3 = vrot.slane %v2650_v2, 7  ;;  %v2989_v63 = vld [vmem:[#allocation14 + $0x548] sm:$0xff]  ;;  %v2988_v2 = vld [vmem:[#allocation14 + $0x540] sm:$0xff] }
 0x403   : > { %2663 = vst [vmem:[#allocation5 + $0x8] sm:$0x1e] %v2659_v3  ;;  %v2987_v3 = vld [vmem:[#allocation14 + $0x538] sm:$0xff] }
 0x408   : > { %v2730_v4 = vld [vmem:[#allocation5] sm:$0x1e] }
 0x409   : > { %v2664_v9 = vld [vmem:[#allocation5] sm:$0xf]  ;;  %v2799_v11 = vrot.slane %v2730_v4, 1 }
 0x40a   : > { %v2665_v5 = vld [vmem:[#allocation5 + $0x8] sm:$0xf]  ;;  %v2986_v4 = vld [vmem:[#allocation14 + $0x530] sm:$0xff] }
 0x40b   : > { %v2731_v7 = vld [vmem:[#allocation5 + $0x8] sm:$0x1e]  ;;  %2938 = vmatprep.mubr.f32.mxu0 %v2665_v5  ;;  %v2985_v5 = vld [vmem:[#allocation14 + $0x528] sm:$0xff] }
 0x40c   : > { %v2946_v8 = vld [vmem:[#allocation5 + $0x8] sm:$0x3c]  ;;  %v2800_v10 = vrot.slane %v2731_v7, 1  ;;  %2939 = vmatmul.mubr.f32.vlgmr.msra.gmra.mxu0 %v2664_v9  ;;  %v2984_v7 = vld [vmem:[#allocation14 + $0x520] sm:$0xff]  ;;  %v2982_v9 = vld [vmem:[#allocation14 + $0x510] sm:$0xff] }
 0x40d   : > { %v3015_v14 = vrot.slane %v2946_v8, 2  ;;  %v2983_v8 = vld [vmem:[#allocation14 + $0x518] sm:$0xff] }
 0x40e   : > { %2867 = vmatprep.mubr.f32.mxu1 %v2800_v10  ;;  %v2981_v10 = vld [vmem:[#allocation14 + $0x508] sm:$0xff] }
 0x40f   : > { %2868 = vmatmul.mubr.f32.vlgmr.msra.gmra.mxu1 %v2799_v11  ;;  %v2945_v11 = vld [vmem:[#allocation5] sm:$0x3c] }
 0x410   : > { %3019 = vmatpush1.msra.mxu1 %v2978_v12  ;;  %3082 = vmatprep.mubr.f32.mxu1 %v3015_v14  ;;  %v2980_v12 = vld [vmem:[#allocation14 + $0x500] sm:$0xff]  ;;  %v3143_v14 = vld [vmem:[#allocation15 + $0xf8] sm:$0xff] }
 0x411   : > { %3020 = vmatprep.subr.mxu1 %v2977_v13  ;;  %v3014_v13 = vrot.slane %v2945_v11, 2  ;;  %v3180_v11 = vld [vmem:[#allocation15 + $0x208] sm:$0xff] }
 0x412   : > { %3021 = vmatpush1.msra.mxu1 %v2976_v60  ;;  %v3210_v60 = vld [vmem:[#allocation15 + $0x2f8] sm:$0xff] }
 0x413   : > { %3022 = vmatprep.subr.mxu1 %v2975_v15  ;;  %v3142_v15 = vld [vmem:[#allocation15 + $0xf0] sm:$0xff]  ;;  %3249 = vmatprep.subr.mxu0 %v3210_v60  ;;  %v3242_v60 = vld [vmem:[#allocation15 + $0x3f8] sm:$0xff] }
 0x414   : > { %3023 = vmatpush1.msra.mxu1 %v2974_v16  ;;  %v3209_v16 = vld [vmem:[#allocation15 + $0x2f0] sm:$0xff] }
 0x415   : > { %3024 = vmatprep.subr.mxu1 %v2973_v0  ;;  %v3141_v0 = vld [vmem:[#allocation15 + $0xe8] sm:$0xff]  ;;  %3250 = vmatpush1.msra.mxu0 %v3209_v16  ;;  %v3241_v16 = vld [vmem:[#allocation15 + $0x3f0] sm:$0xff] }
 0x416   : > { %3025 = vmatpush1.msra.mxu1 %v2972_v17  ;;  %v3208_v17 = vld [vmem:[#allocation15 + $0x2e8] sm:$0xff] }
 0x417   : > { %3026 = vmatprep.subr.mxu1 %v2971_v18  ;;  %v3140_v18 = vld [vmem:[#allocation15 + $0xe0] sm:$0xff]  ;;  %3251 = vmatprep.subr.mxu0 %v3208_v17  ;;  %v3240_v17 = vld [vmem:[#allocation15 + $0x3e8] sm:$0xff] }
 0x418   : > { %3027 = vmatpush1.msra.mxu1 %v2970_v19  ;;  %v3207_v19 = vld [vmem:[#allocation15 + $0x2e0] sm:$0xff] }
 0x419   : > { %3028 = vmatprep.subr.mxu1 %v2969_v20  ;;  %v3139_v20 = vld [vmem:[#allocation15 + $0xd8] sm:$0xff]  ;;  %3252 = vmatpush1.msra.mxu0 %v3207_v19  ;;  %v3239_v19 = vld [vmem:[#allocation15 + $0x3e0] sm:$0xff] }
 0x41a   : > { %3029 = vmatpush1.msra.mxu1 %v2968_v21  ;;  %v3206_v21 = vld [vmem:[#allocation15 + $0x2d8] sm:$0xff] }
 0x41b   : > { %3030 = vmatprep.subr.mxu1 %v2967_v1  ;;  %v3138_v1 = vld [vmem:[#allocation15 + $0xd0] sm:$0xff]  ;;  %3253 = vmatprep.subr.mxu0 %v3206_v21  ;;  %v3238_v21 = vld [vmem:[#allocation15 + $0x3d8] sm:$0xff] }
 0x41c   : > { %3031 = vmatpush1.msra.mxu1 %v2966_v22  ;;  %v3205_v22 = vld [vmem:[#allocation15 + $0x2d0] sm:$0xff] }
 0x41d   : > { %3032 = vmatprep.subr.mxu1 %v2965_v23  ;;  %v3137_v23 = vld [vmem:[#allocation15 + $0xc8] sm:$0xff]  ;;  %3254 = vmatpush1.msra.mxu0 %v3205_v22  ;;  %v3237_v22 = vld [vmem:[#allocation15 + $0x3d0] sm:$0xff] }
 0x41e   : > { %3033 = vmatpush1.msra.mxu1 %v2964_v24  ;;  %v3204_v24 = vld [vmem:[#allocation15 + $0x2c8] sm:$0xff] }
 0x41f   : > { %3034 = vmatprep.subr.mxu1 %v2963_v25  ;;  %v3136_v25 = vld [vmem:[#allocation15 + $0xc0] sm:$0xff]  ;;  %3255 = vmatprep.subr.mxu0 %v3204_v24  ;;  %v3236_v24 = vld [vmem:[#allocation15 + $0x3c8] sm:$0xff] }
 0x420   : > { %3035 = vmatpush1.msra.mxu1 %v2962_v26  ;;  %v3203_v26 = vld [vmem:[#allocation15 + $0x2c0] sm:$0xff] }
 0x421   : > { %3036 = vmatprep.subr.mxu1 %v2961_v27  ;;  %v3135_v27 = vld [vmem:[#allocation15 + $0xb8] sm:$0xff]  ;;  %3256 = vmatpush1.msra.mxu0 %v3203_v26  ;;  %v3235_v26 = vld [vmem:[#allocation15 + $0x3c0] sm:$0xff] }
 0x422   : > { %3037 = vmatpush1.msra.mxu1 %v2960_v28  ;;  %v3202_v28 = vld [vmem:[#allocation15 + $0x2b8] sm:$0xff] }
 0x423   : > { %3038 = vmatprep.subr.mxu1 %v2959_v29  ;;  %v3134_v29 = vld [vmem:[#allocation15 + $0xb0] sm:$0xff]  ;;  %3257 = vmatprep.subr.mxu0 %v3202_v28  ;;  %v3234_v28 = vld [vmem:[#allocation15 + $0x3b8] sm:$0xff] }
 0x424   : > { %3039 = vmatpush1.msra.mxu1 %v2958_v30  ;;  %v3201_v30 = vld [vmem:[#allocation15 + $0x2b0] sm:$0xff] }
 0x425   : > { %3040 = vmatprep.subr.mxu1 %v2957_v31  ;;  %v3133_v31 = vld [vmem:[#allocation15 + $0xa8] sm:$0xff]  ;;  %3258 = vmatpush1.msra.mxu0 %v3201_v30  ;;  %v3233_v30 = vld [vmem:[#allocation15 + $0x3b0] sm:$0xff] }
 0x426   : > { %3041 = vmatpush1.msra.mxu1 %v2956_v32  ;;  %v3200_v32 = vld [vmem:[#allocation15 + $0x2a8] sm:$0xff] }
 0x427   : > { %3042 = vmatprep.subr.mxu1 %v2955_v33  ;;  %v3132_v33 = vld [vmem:[#allocation15 + $0xa0] sm:$0xff]  ;;  %3259 = vmatprep.subr.mxu0 %v3200_v32  ;;  %v3232_v32 = vld [vmem:[#allocation15 + $0x3a8] sm:$0xff] }
 0x428   : > { %3043 = vmatpush1.msra.mxu1 %v2954_v34  ;;  %v3199_v34 = vld [vmem:[#allocation15 + $0x2a0] sm:$0xff] }
 0x429   : > { %3044 = vmatprep.subr.mxu1 %v2953_v35  ;;  %v3131_v35 = vld [vmem:[#allocation15 + $0x98] sm:$0xff]  ;;  %3260 = vmatpush1.msra.mxu0 %v3199_v34  ;;  %v3231_v34 = vld [vmem:[#allocation15 + $0x3a0] sm:$0xff] }
 0x42a   : > { %3045 = vmatpush1.msra.mxu1 %v2952_v36  ;;  %v3198_v36 = vld [vmem:[#allocation15 + $0x298] sm:$0xff] }
 0x42b   : > { %3046 = vmatprep.subr.mxu1 %v2951_v37  ;;  %v3130_v37 = vld [vmem:[#allocation15 + $0x90] sm:$0xff]  ;;  %3261 = vmatprep.subr.mxu0 %v3198_v36  ;;  %v3230_v36 = vld [vmem:[#allocation15 + $0x398] sm:$0xff] }
 0x42c   : > { %3047 = vmatpush1.msra.mxu1 %v2950_v38  ;;  %v3197_v38 = vld [vmem:[#allocation15 + $0x290] sm:$0xff] }
 0x42d   : > { %3048 = vmatprep.subr.mxu1 %v2949_v6  ;;  %v3129_v6 = vld [vmem:[#allocation15 + $0x88] sm:$0xff]  ;;  %3262 = vmatpush1.msra.mxu0 %v3197_v38  ;;  %v3229_v38 = vld [vmem:[#allocation15 + $0x390] sm:$0xff] }
 0x42e   : > { %3049 = vmatpush1.msra.mxu1 %v2948_v39  ;;  %v3196_v39 = vld [vmem:[#allocation15 + $0x288] sm:$0xff] }
 0x42f   : > { %3050 = vmatprep.subr.mxu1 %v3011_v40  ;;  %v3128_v40 = vld [vmem:[#allocation15 + $0x80] sm:$0xff]  ;;  %3263 = vmatprep.subr.mxu0 %v3196_v39  ;;  %v3228_v39 = vld [vmem:[#allocation15 + $0x388] sm:$0xff] }
 0x430   : > { %3051 = vmatpush2.msra.mxu1 %v3010_v41  ;;  %v3195_v41 = vld [vmem:[#allocation15 + $0x280] sm:$0xff] }
 0x431   : > { %3052 = vmatprep.subr.mxu1 %v3009_v42  ;;  %v3127_v42 = vld [vmem:[#allocation15 + $0x78] sm:$0xff]  ;;  %3264 = vmatpush1.msra.mxu0 %v3195_v41  ;;  %v3227_v41 = vld [vmem:[#allocation15 + $0x380] sm:$0xff] }
 0x432   : > { %3053 = vmatpush2.msra.mxu1 %v3008_v43  ;;  %v3194_v43 = vld [vmem:[#allocation15 + $0x278] sm:$0xff] }
 0x433   : > { %3054 = vmatprep.subr.mxu1 %v3007_v44  ;;  %v3126_v44 = vld [vmem:[#allocation15 + $0x70] sm:$0xff]  ;;  %3265 = vmatprep.subr.mxu0 %v3194_v43  ;;  %v3226_v43 = vld [vmem:[#allocation15 + $0x378] sm:$0xff] }
 0x434   : > { %3055 = vmatpush2.msra.mxu1 %v3006_v45  ;;  %v3193_v45 = vld [vmem:[#allocation15 + $0x270] sm:$0xff] }
 0x435   : > { %3056 = vmatprep.subr.mxu1 %v3005_v46  ;;  %v3125_v46 = vld [vmem:[#allocation15 + $0x68] sm:$0xff]  ;;  %3266 = vmatpush1.msra.mxu0 %v3193_v45  ;;  %v3225_v45 = vld [vmem:[#allocation15 + $0x370] sm:$0xff] }
 0x436   : > { %3057 = vmatpush2.msra.mxu1 %v3004_v47  ;;  %v3192_v47 = vld [vmem:[#allocation15 + $0x268] sm:$0xff] }
 0x437   : > { %3058 = vmatprep.subr.mxu1 %v3003_v48  ;;  %v3124_v48 = vld [vmem:[#allocation15 + $0x60] sm:$0xff]  ;;  %3267 = vmatprep.subr.mxu0 %v3192_v47  ;;  %v3224_v47 = vld [vmem:[#allocation15 + $0x368] sm:$0xff] }
 0x438   : > { %3059 = vmatpush2.msra.mxu1 %v3002_v49  ;;  %v3191_v49 = vld [vmem:[#allocation15 + $0x260] sm:$0xff] }
 0x439   : > { %3060 = vmatprep.subr.mxu1 %v3001_v50  ;;  %v3123_v50 = vld [vmem:[#allocation15 + $0x58] sm:$0xff]  ;;  %3268 = vmatpush1.msra.mxu0 %v3191_v49  ;;  %v3223_v49 = vld [vmem:[#allocation15 + $0x360] sm:$0xff] }
 0x43a   : > { %3061 = vmatpush2.msra.mxu1 %v3000_v51  ;;  %v3190_v51 = vld [vmem:[#allocation15 + $0x258] sm:$0xff] }
 0x43b   : > { %3062 = vmatprep.subr.mxu1 %v2999_v52  ;;  %v3122_v52 = vld [vmem:[#allocation15 + $0x50] sm:$0xff]  ;;  %3269 = vmatprep.subr.mxu0 %v3190_v51  ;;  %v3222_v51 = vld [vmem:[#allocation15 + $0x358] sm:$0xff] }
 0x43c   : > { %3063 = vmatpush2.msra.mxu1 %v2998_v53  ;;  %v3189_v53 = vld [vmem:[#allocation15 + $0x250] sm:$0xff] }
 0x43d   : > { %3064 = vmatprep.subr.mxu1 %v2997_v54  ;;  %v3121_v54 = vld [vmem:[#allocation15 + $0x48] sm:$0xff]  ;;  %3270 = vmatpush1.msra.mxu0 %v3189_v53  ;;  %v3221_v53 = vld [vmem:[#allocation15 + $0x350] sm:$0xff] }
 0x43e   : > { %3065 = vmatpush2.msra.mxu1 %v2996_v55  ;;  %v3188_v55 = vld [vmem:[#allocation15 + $0x248] sm:$0xff] }
 0x43f   : > { %3066 = vmatprep.subr.mxu1 %v2995_v56  ;;  %v3120_v56 = vld [vmem:[#allocation15 + $0x40] sm:$0xff]  ;;  %3271 = vmatprep.subr.mxu0 %v3188_v55  ;;  %v3220_v55 = vld [vmem:[#allocation15 + $0x348] sm:$0xff] }
 0x440   : > { %3067 = vmatpush2.msra.mxu1 %v2994_v57  ;;  %v3187_v57 = vld [vmem:[#allocation15 + $0x240] sm:$0xff] }
 0x441   : > { %3068 = vmatprep.subr.mxu1 %v2993_v58  ;;  %v3119_v58 = vld [vmem:[#allocation15 + $0x38] sm:$0xff]  ;;  %3272 = vmatpush1.msra.mxu0 %v3187_v57  ;;  %v3219_v57 = vld [vmem:[#allocation15 + $0x340] sm:$0xff] }
 0x442   : > { %3069 = vmatpush2.msra.mxu1 %v2992_v59  ;;  %v3186_v59 = vld [vmem:[#allocation15 + $0x238] sm:$0xff] }
 0x443   : > { %3070 = vmatprep.subr.mxu1 %v2991_v61  ;;  %v3118_v61 = vld [vmem:[#allocation15 + $0x30] sm:$0xff]  ;;  %3273 = vmatprep.subr.mxu0 %v3186_v59  ;;  %v3218_v59 = vld [vmem:[#allocation15 + $0x338] sm:$0xff] }
 0x444   : > { %3071 = vmatpush2.msra.mxu1 %v2990_v62  ;;  %v3185_v62 = vld [vmem:[#allocation15 + $0x230] sm:$0xff] }
 0x445   : > { %3072 = vmatprep.subr.mxu1 %v2989_v63  ;;  %v3117_v63 = vld [vmem:[#allocation15 + $0x28] sm:$0xff]  ;;  %3274 = vmatpush1.msra.mxu0 %v3185_v62  ;;  %v3217_v62 = vld [vmem:[#allocation15 + $0x330] sm:$0xff] }
 0x446   : > { %3073 = vmatpush2.msra.mxu1 %v2988_v2  ;;  %v3184_v2 = vld [vmem:[#allocation15 + $0x228] sm:$0xff] }
 0x447   : > { %3074 = vmatprep.subr.mxu1 %v2987_v3  ;;  %v3116_v3 = vld [vmem:[#allocation15 + $0x20] sm:$0xff]  ;;  %3275 = vmatprep.subr.mxu0 %v3184_v2  ;;  %v3216_v2 = vld [vmem:[#allocation15 + $0x328] sm:$0xff] }
 0x448   : > { %3075 = vmatpush2.msra.mxu1 %v2986_v4  ;;  %v3183_v4 = vld [vmem:[#allocation15 + $0x220] sm:$0xff] }
 0x449   : > { %3076 = vmatprep.subr.mxu1 %v2985_v5  ;;  %v3115_v5 = vld [vmem:[#allocation15 + $0x18] sm:$0xff]  ;;  %3276 = vmatpush1.msra.mxu0 %v3183_v4  ;;  %v3215_v4 = vld [vmem:[#allocation15 + $0x320] sm:$0xff] }
 0x44a   : > { %3077 = vmatpush2.msra.mxu1 %v2984_v7  ;;  %v3182_v7 = vld [vmem:[#allocation15 + $0x218] sm:$0xff] }
 0x44b   : > { %3078 = vmatprep.subr.mxu1 %v2983_v8  ;;  %v3114_v8 = vld [vmem:[#allocation15 + $0x10] sm:$0xff]  ;;  %3277 = vmatprep.subr.mxu0 %v3182_v7  ;;  %v3214_v7 = vld [vmem:[#allocation15 + $0x318] sm:$0xff] }
 0x44c   : > { %3079 = vmatpush2.msra.mxu1 %v2982_v9  ;;  %v3181_v9 = vld [vmem:[#allocation15 + $0x210] sm:$0xff] }
 0x44d   : > { %3080 = vmatprep.subr.mxu1 %v2981_v10  ;;  %v3113_v10 = vld [vmem:[#allocation15 + $0x8] sm:$0xff]  ;;  %3278 = vmatpush1.msra.mxu0 %v3181_v9  ;;  %v3213_v9 = vld [vmem:[#allocation15 + $0x310] sm:$0xff] }
 0x44e   : > { %3081 = vmatpush2.msra.mxu1 %v2980_v12  ;;  %v3112_v12 = vld [vmem:[#allocation15] sm:$0xff]  ;;  %3279 = vmatprep.subr.mxu0 %v3180_v11  ;;  %v3212_v11 = vld [vmem:[#allocation15 + $0x308] sm:$0xff] }
 0x44f   : > { %3083 = vmatmul.mubr.f32.vlgmr.msra.gmra.mxu1 %v3014_v13  ;;  %3320 = vmatprep.subr.mxu1 %v3143_v14  ;;  %v3179_v13 = vld [vmem:[#allocation15 + $0x200] sm:$0xff]  ;;  %v3175_v14 = vld [vmem:[#allocation15 + $0x1f8] sm:$0xff] }
 0x450   : > { %3321 = vmatpush1.msra.mxu1 %v3142_v15  ;;  %v3174_v15 = vld [vmem:[#allocation15 + $0x1f0] sm:$0xff]  ;;  %3280 = vmatpush1.msra.mxu0 %v3179_v13  ;;  %v3211_v13 = vld [vmem:[#allocation15 + $0x300] sm:$0xff] }
 0x451   : > { %3322 = vmatprep.subr.mxu1 %v3141_v0  ;;  %v3173_v0 = vld [vmem:[#allocation15 + $0x1e8] sm:$0xff]  ;;  %3281 = vmatprep.subr.mxu0 %v3242_v60 }
 0x452   : > { %3323 = vmatpush1.msra.mxu1 %v3140_v18  ;;  %v3172_v18 = vld [vmem:[#allocation15 + $0x1e0] sm:$0xff]  ;;  %3282 = vmatpush2.msra.mxu0 %v3241_v16 }
 0x453   : > { %3324 = vmatprep.subr.mxu1 %v3139_v20  ;;  %v3171_v20 = vld [vmem:[#allocation15 + $0x1d8] sm:$0xff]  ;;  %3283 = vmatprep.subr.mxu0 %v3240_v17 }
 0x454   : > { %3325 = vmatpush1.msra.mxu1 %v3138_v1  ;;  %v3170_v1 = vld [vmem:[#allocation15 + $0x1d0] sm:$0xff]  ;;  %3284 = vmatpush2.msra.mxu0 %v3239_v19 }
 0x455   : > { %3326 = vmatprep.subr.mxu1 %v3137_v23  ;;  %v3169_v23 = vld [vmem:[#allocation15 + $0x1c8] sm:$0xff]  ;;  %3285 = vmatprep.subr.mxu0 %v3238_v21 }
 0x456   : > { %3327 = vmatpush1.msra.mxu1 %v3136_v25  ;;  %v3168_v25 = vld [vmem:[#allocation15 + $0x1c0] sm:$0xff]  ;;  %3286 = vmatpush2.msra.mxu0 %v3237_v22 }
 0x457   : > { %3328 = vmatprep.subr.mxu1 %v3135_v27  ;;  %v3167_v27 = vld [vmem:[#allocation15 + $0x1b8] sm:$0xff]  ;;  %3287 = vmatprep.subr.mxu0 %v3236_v24 }
 0x458   : > { %3329 = vmatpush1.msra.mxu1 %v3134_v29  ;;  %v3166_v29 = vld [vmem:[#allocation15 + $0x1b0] sm:$0xff]  ;;  %3288 = vmatpush2.msra.mxu0 %v3235_v26 }
 0x459   : > { %3330 = vmatprep.subr.mxu1 %v3133_v31  ;;  %v3165_v31 = vld [vmem:[#allocation15 + $0x1a8] sm:$0xff]  ;;  %3289 = vmatprep.subr.mxu0 %v3234_v28 }
 0x45a   : > { %3331 = vmatpush1.msra.mxu1 %v3132_v33  ;;  %v3164_v33 = vld [vmem:[#allocation15 + $0x1a0] sm:$0xff]  ;;  %3290 = vmatpush2.msra.mxu0 %v3233_v30 }
 0x45b   : > { %3332 = vmatprep.subr.mxu1 %v3131_v35  ;;  %v3163_v35 = vld [vmem:[#allocation15 + $0x198] sm:$0xff]  ;;  %3291 = vmatprep.subr.mxu0 %v3232_v32 }
 0x45c   : > { %3333 = vmatpush1.msra.mxu1 %v3130_v37  ;;  %3292 = vmatpush2.msra.mxu0 %v3231_v34  ;;  %v3162_v37 = vld [vmem:[#allocation15 + $0x190] sm:$0xff] }
 0x45d   : > { %3334 = vmatprep.subr.mxu1 %v3129_v6  ;;  %3293 = vmatprep.subr.mxu0 %v3230_v36  ;;  %v3161_v6 = vld [vmem:[#allocation15 + $0x188] sm:$0xff] }
 0x45e   : > { %3335 = vmatpush1.msra.mxu1 %v3128_v40  ;;  %3294 = vmatpush2.msra.mxu0 %v3229_v38  ;;  %v3160_v40 = vld [vmem:[#allocation15 + $0x180] sm:$0xff]  ;;  %v3423_v36 = vld [vmem:[#allocation15 + $0x4e8] sm:$0xff] }
 0x45f   : > { %3336 = vmatprep.subr.mxu1 %v3127_v42  ;;  %3295 = vmatprep.subr.mxu0 %v3228_v39  ;;  %v3159_v42 = vld [vmem:[#allocation15 + $0x178] sm:$0xff]  ;;  %v3422_v38 = vld [vmem:[#allocation15 + $0x4e0] sm:$0xff]  ;;  %v3420_v39 = vld [vmem:[#allocation15 + $0x4d0] sm:$0xff] }
 0x460   : > { %3337 = vmatpush1.msra.mxu1 %v3126_v44  ;;  %3296 = vmatpush2.msra.mxu0 %v3227_v41  ;;  %v3158_v44 = vld [vmem:[#allocation15 + $0x170] sm:$0xff]  ;;  %v3418_v41 = vld [vmem:[#allocation15 + $0x4c0] sm:$0xff] }
 0x461   : > { %3338 = vmatprep.subr.mxu1 %v3125_v46  ;;  %3297 = vmatprep.subr.mxu0 %v3226_v43  ;;  %v3157_v46 = vld [vmem:[#allocation15 + $0x168] sm:$0xff]  ;;  %v3416_v43 = vld [vmem:[#allocation15 + $0x4b0] sm:$0xff] }
 0x462   : > { %3339 = vmatpush1.msra.mxu1 %v3124_v48  ;;  %3298 = vmatpush2.msra.mxu0 %v3225_v45  ;;  %v3156_v48 = vld [vmem:[#allocation15 + $0x160] sm:$0xff] }
 0x463   : > { %3340 = vmatprep.subr.mxu1 %v3123_v50  ;;  %3299 = vmatprep.subr.mxu0 %v3224_v47  ;;  %v3155_v50 = vld [vmem:[#allocation15 + $0x158] sm:$0xff]  ;;  %v3414_v45 = vld [vmem:[#allocation15 + $0x4a0] sm:$0xff]  ;;  %v3412_v47 = vld [vmem:[#allocation15 + $0x490] sm:$0xff] }
 0x464   : > { %3341 = vmatpush1.msra.mxu1 %v3122_v52  ;;  %3300 = vmatpush2.msra.mxu0 %v3223_v49  ;;  %v3154_v52 = vld [vmem:[#allocation15 + $0x150] sm:$0xff]  ;;  %v3410_v49 = vld [vmem:[#allocation15 + $0x480] sm:$0xff] }
 0x465   : > { %3342 = vmatprep.subr.mxu1 %v3121_v54  ;;  %3301 = vmatprep.subr.mxu0 %v3222_v51  ;;  %v3153_v54 = vld [vmem:[#allocation15 + $0x148] sm:$0xff]  ;;  %v3408_v51 = vld [vmem:[#allocation15 + $0x470] sm:$0xff] }
 0x466   : > { %3343 = vmatpush1.msra.mxu1 %v3120_v56  ;;  %3302 = vmatpush2.msra.mxu0 %v3221_v53  ;;  %v3152_v56 = vld [vmem:[#allocation15 + $0x140] sm:$0xff] }
 0x467   : > { %3344 = vmatprep.subr.mxu1 %v3119_v58  ;;  %3303 = vmatprep.subr.mxu0 %v3220_v55  ;;  %v3151_v58 = vld [vmem:[#allocation15 + $0x138] sm:$0xff]  ;;  %v3406_v53 = vld [vmem:[#allocation15 + $0x460] sm:$0xff]  ;;  %v3404_v55 = vld [vmem:[#allocation15 + $0x450] sm:$0xff] }
 0x468   : > { %3345 = vmatpush1.msra.mxu1 %v3118_v61  ;;  %v3150_v61 = vld [vmem:[#allocation15 + $0x130] sm:$0xff]  ;;  %3304 = vmatpush2.msra.mxu0 %v3219_v57  ;;  %v3402_v57 = vld [vmem:[#allocation15 + $0x440] sm:$0xff] }
 0x469   : > { %3346 = vmatprep.subr.mxu1 %v3117_v63  ;;  %v3149_v63 = vld [vmem:[#allocation15 + $0x128] sm:$0xff]  ;;  %3305 = vmatprep.subr.mxu0 %v3218_v59  ;;  %v3400_v59 = vld [vmem:[#allocation15 + $0x430] sm:$0xff] }
 0x46a   : > { %3347 = vmatpush1.msra.mxu1 %v3116_v3  ;;  %v3148_v3 = vld [vmem:[#allocation15 + $0x120] sm:$0xff]  ;;  %3306 = vmatpush2.msra.mxu0 %v3217_v62 }
 0x46b   : > { %3348 = vmatprep.subr.mxu1 %v3115_v5  ;;  %v3147_v5 = vld [vmem:[#allocation15 + $0x118] sm:$0xff]  ;;  %3307 = vmatprep.subr.mxu0 %v3216_v2  ;;  %v3398_v62 = vld [vmem:[#allocation15 + $0x420] sm:$0xff]  ;;  %v3396_v2 = vld [vmem:[#allocation15 + $0x410] sm:$0xff] }
 0x46c   : > { %3349 = vmatpush1.msra.mxu1 %v3114_v8  ;;  %v3146_v8 = vld [vmem:[#allocation15 + $0x110] sm:$0xff]  ;;  %3308 = vmatpush2.msra.mxu0 %v3215_v4  ;;  %v3394_v4 = vld [vmem:[#allocation15 + $0x400] sm:$0xff] }
 0x46d   : > { %3350 = vmatprep.subr.mxu1 %v3113_v10  ;;  %v3145_v10 = vld [vmem:[#allocation15 + $0x108] sm:$0xff]  ;;  %3309 = vmatprep.subr.mxu0 %v3214_v7  ;;  %v3456_v7 = vld [vmem:[#allocation15 + $0x5f0] sm:$0xff] }
 0x46e   : > { %3351 = vmatpush1.msra.mxu1 %v3112_v12  ;;  %v3144_v12 = vld [vmem:[#allocation15 + $0x100] sm:$0xff]  ;;  %3310 = vmatpush2.msra.mxu0 %v3213_v9 }
 0x46f   : > { %3352 = vmatprep.subr.mxu1 %v3175_v14  ;;  %3311 = vmatprep.subr.mxu0 %v3212_v11  ;;  %v3425_v14 = vld [vmem:[#allocation15 + $0x4f8] sm:$0xff]  ;;  %v3454_v9 = vld [vmem:[#allocation15 + $0x5e0] sm:$0xff]  ;;  %v3452_v11 = vld [vmem:[#allocation15 + $0x5d0] sm:$0xff] }
 0x470   : > { %3353 = vmatpush2.msra.mxu1 %v3174_v15  ;;  %3312 = vmatpush2.msra.mxu0 %v3211_v13  ;;  %v3450_v13 = vld [vmem:[#allocation15 + $0x5c0] sm:$0xff] }
 0x471   : > { %3354 = vmatprep.subr.mxu1 %v3173_v0  ;;  %3464 = vmatprep.subr.mxu0 %v3425_v14  ;;  %v3449_v14 = vld [vmem:[#allocation15 + $0x5b8] sm:$0xff] }
 0x472   : > { %3355 = vmatpush2.msra.mxu1 %v3172_v18 }
 0x473   : > { %3356 = vmatprep.subr.mxu1 %v3171_v20 }
 0x474   : > { %3357 = vmatpush2.msra.mxu1 %v3170_v1 }
 0x475   : > { %3358 = vmatprep.subr.mxu1 %v3169_v23 }
 0x476   : > { %3359 = vmatpush2.msra.mxu1 %v3168_v25 }
 0x477   : > { %3360 = vmatprep.subr.mxu1 %v3167_v27 }
 0x478   : > { %3361 = vmatpush2.msra.mxu1 %v3166_v29 }
 0x479   : > { %3362 = vmatprep.subr.mxu1 %v3165_v31 }
 0x47a   : > { %3363 = vmatpush2.msra.mxu1 %v3164_v33 }
 0x47b   : > { %3364 = vmatprep.subr.mxu1 %v3163_v35  ;;  %v3424_v35 = vld [vmem:[#allocation15 + $0x4f0] sm:$0xff] }
 0x47c   : > { %3365 = vmatpush2.msra.mxu1 %v3162_v37 }
 0x47d   : > { %3366 = vmatprep.subr.mxu1 %v3161_v6  ;;  %v3421_v6 = vld [vmem:[#allocation15 + $0x4d8] sm:$0xff] }
 0x47e   : > { %3367 = vmatpush2.msra.mxu1 %v3160_v40  ;;  %v3419_v40 = vld [vmem:[#allocation15 + $0x4c8] sm:$0xff] }
 0x47f   : > { %3368 = vmatprep.subr.mxu1 %v3159_v42  ;;  %v3417_v42 = vld [vmem:[#allocation15 + $0x4b8] sm:$0xff] }
 0x480   : > { %3369 = vmatpush2.msra.mxu1 %v3158_v44  ;;  %v3415_v44 = vld [vmem:[#allocation15 + $0x4a8] sm:$0xff] }
 0x481   : > { %3370 = vmatprep.subr.mxu1 %v3157_v46  ;;  %v3413_v46 = vld [vmem:[#allocation15 + $0x498] sm:$0xff] }
 0x482   : > { %3371 = vmatpush2.msra.mxu1 %v3156_v48  ;;  %v3411_v48 = vld [vmem:[#allocation15 + $0x488] sm:$0xff] }
 0x483   : > { %3372 = vmatprep.subr.mxu1 %v3155_v50  ;;  %v3409_v50 = vld [vmem:[#allocation15 + $0x478] sm:$0xff] }
 0x484   : > { %3373 = vmatpush2.msra.mxu1 %v3154_v52  ;;  %v3407_v52 = vld [vmem:[#allocation15 + $0x468] sm:$0xff] }
 0x485   : > { %3374 = vmatprep.subr.mxu1 %v3153_v54  ;;  %v3405_v54 = vld [vmem:[#allocation15 + $0x458] sm:$0xff] }
 0x486   : > { %3375 = vmatpush2.msra.mxu1 %v3152_v56  ;;  %v3403_v56 = vld [vmem:[#allocation15 + $0x448] sm:$0xff] }
 0x487   : > { %3376 = vmatprep.subr.mxu1 %v3151_v58  ;;  %v3401_v58 = vld [vmem:[#allocation15 + $0x438] sm:$0xff] }
 0x488   : > { %3377 = vmatpush2.msra.mxu1 %v3150_v61  ;;  %v3399_v61 = vld [vmem:[#allocation15 + $0x428] sm:$0xff] }
 0x489   : > { %3378 = vmatprep.subr.mxu1 %v3149_v63  ;;  %v3397_v63 = vld [vmem:[#allocation15 + $0x418] sm:$0xff] }
 0x48a   : > { %3379 = vmatpush2.msra.mxu1 %v3148_v3  ;;  %v3395_v3 = vld [vmem:[#allocation15 + $0x408] sm:$0xff] }
 0x48b   : > { %3380 = vmatprep.subr.mxu1 %v3147_v5  ;;  %v3457_v5 = vld [vmem:[#allocation15 + $0x5f8] sm:$0xff] }
 0x48c   : > { %3381 = vmatpush2.msra.mxu1 %v3146_v8  ;;  %v3455_v8 = vld [vmem:[#allocation15 + $0x5e8] sm:$0xff] }
 0x48d   : > { %3382 = vmatprep.subr.mxu1 %v3145_v10  ;;  %v3453_v10 = vld [vmem:[#allocation15 + $0x5d8] sm:$0xff] }
 0x48e   : > { %3383 = vmatpush2.msra.mxu1 %v3144_v12  ;;  %v3451_v12 = vld [vmem:[#allocation15 + $0x5c8] sm:$0xff] }
 0x4cc   : > { %v2940_v15 = vpop.f32.mrf.mxu0 }
 0x4ce   : > { %v2942_v17 = vpop.f32.mrf.mxu0 }
 0x4cf   : > { %v2869_v60 = vpop.f32.mrf.mxu1 }
 0x4d0   : > { %v2941_v0 = vadd.f32 %v2940_v15, %v2869_v60  ;;  %v3448_v60 = vld [vmem:[#allocation15 + $0x5b0] sm:$0xff]  ;;  %v3447_v15 = vld [vmem:[#allocation15 + $0x5a8] sm:$0xff] }
 0x4d1   : > { %v2871_v16 = vpop.f32.mrf.mxu1 }
 0x4d2   : > { %v2943_v19 = vadd.f32 %v2942_v17, %v2871_v16  ;;  %v3446_v16 = vld [vmem:[#allocation15 + $0x5a0] sm:$0xff]  ;;  %v3444_v17 = vld [vmem:[#allocation15 + $0x590] sm:$0xff] }
 0x50f   : > { %v3084_v18 = vpop.f32.mrf.mxu1 }
 0x510   : > { %v3089_v20 = vadd.f32 %v3084_v18, %v2941_v0  ;;  %v3445_v0 = vld [vmem:[#allocation15 + $0x598] sm:$0xff]  ;;  %v3443_v18 = vld [vmem:[#allocation15 + $0x588] sm:$0xff] }
 0x511   : > { %v3086_v21 = vpop.f32.mrf.mxu1 }
 0x512   : > { %vm3091_vm1 = vcmp.ge.f32.partialorder %v3089_v20, 0.0  ;;  %v3093_v1 = vmul.f32 0.2, %v3089_v20  ;;  %v3090_v22 = vadd.f32 %v3086_v21, %v2943_v19  ;;  %v3442_v19 = vld [vmem:[#allocation15 + $0x580] sm:$0xff]  ;;  %v3440_v21 = vld [vmem:[#allocation15 + $0x570] sm:$0xff] }
 0x514   : > { %v3095_v23 = vsel %vm3091_vm1, %v3089_v20, %v3093_v1  ;;  %vm3092_vm2 = vcmp.ge.f32.partialorder %v3090_v22, 0.0  ;;  %v3094_v24 = vmul.f32 0.2, %v3090_v22  ;;  %v3441_v20 = vld [vmem:[#allocation15 + $0x578] sm:$0xff]  ;;  %v3439_v1 = vld [vmem:[#allocation15 + $0x568] sm:$0xff] }
 0x515   : > { %v3104_v25 = vrot.slane %v3095_v23, 7  ;;  %v3437_v23 = vld [vmem:[#allocation15 + $0x558] sm:$0xff] }
 0x516   : > { %v3096_v26 = vsel %vm3092_vm2, %v3090_v22, %v3094_v24  ;;  %v3438_v22 = vld [vmem:[#allocation15 + $0x560] sm:$0xff]  ;;  %v3436_v24 = vld [vmem:[#allocation15 + $0x550] sm:$0xff] }
 0x517   : > { %3108 = vst [vmem:[#allocation6] sm:$0x1e] %v3104_v25  ;;  %v3105_v27 = vrot.slane %v3096_v26, 7  ;;  %v3435_v25 = vld [vmem:[#allocation15 + $0x548] sm:$0xff]  ;;  %v3434_v26 = vld [vmem:[#allocation15 + $0x540] sm:$0xff] }
 0x519   : > { %3109 = vst [vmem:[#allocation6 + $0x8] sm:$0x1e] %v3105_v27  ;;  %v3433_v27 = vld [vmem:[#allocation15 + $0x538] sm:$0xff] }
 0x51e   : > { %v3176_v28 = vld [vmem:[#allocation6] sm:$0x1e] }
 0x51f   : > { %v3110_v32 = vld [vmem:[#allocation6] sm:$0xf]  ;;  %v3245_v34 = vrot.slane %v3176_v28, 1  ;;  %v3432_v28 = vld [vmem:[#allocation15 + $0x530] sm:$0xff] }
 0x520   : > { %v3111_v29 = vld [vmem:[#allocation6 + $0x8] sm:$0xf] }
 0x521   : > { %v3177_v30 = vld [vmem:[#allocation6 + $0x8] sm:$0x1e]  ;;  %3384 = vmatprep.mubr.f32.mxu1 %v3111_v29 }
 0x522   : > { %v3392_v31 = vld [vmem:[#allocation6 + $0x8] sm:$0x3c]  ;;  %v3246_v33 = vrot.slane %v3177_v30, 1  ;;  %3385 = vmatmul.mubr.f32.vlgmr.msra.gmra.mxu1 %v3110_v32  ;;  %v3430_v30 = vld [vmem:[#allocation15 + $0x520] sm:$0xff]  ;;  %v3428_v32 = vld [vmem:[#allocation15 + $0x510] sm:$0xff] }
 0x523   : > { %v3461_v37 = vrot.slane %v3392_v31, 2  ;;  %v3431_v29 = vld [vmem:[#allocation15 + $0x528] sm:$0xff]  ;;  %v3429_v31 = vld [vmem:[#allocation15 + $0x518] sm:$0xff] }
 0x524   : > { %3313 = vmatprep.mubr.f32.mxu0 %v3246_v33  ;;  %v3427_v33 = vld [vmem:[#allocation15 + $0x508] sm:$0xff] }
 0x525   : > { %3314 = vmatmul.mubr.f32.vlgmr.msra.gmra.mxu0 %v3245_v34  ;;  %v3391_v34 = vld [vmem:[#allocation6] sm:$0x3c] }
 0x526   : > { %3465 = vmatpush1.msra.mxu0 %v3424_v35  ;;  %3528 = vmatprep.mubr.f32.mxu0 %v3461_v37  ;;  %v3426_v35 = vld [vmem:[#allocation15 + $0x500] sm:$0xff] }
 0x527   : > { %3466 = vmatprep.subr.mxu0 %v3423_v36  ;;  %v3460_v36 = vrot.slane %v3391_v34, 2 }
 0x528   : > { %3467 = vmatpush1.msra.mxu0 %v3422_v38 }
 0x529   : > { %3468 = vmatprep.subr.mxu0 %v3421_v6 }
 0x52a   : > { %3469 = vmatpush1.msra.mxu0 %v3420_v39 }
 0x52b   : > { %3470 = vmatprep.subr.mxu0 %v3419_v40 }
 0x52c   : > { %3471 = vmatpush1.msra.mxu0 %v3418_v41 }
 0x52d   : > { %3472 = vmatprep.subr.mxu0 %v3417_v42 }
 0x52e   : > { %3473 = vmatpush1.msra.mxu0 %v3416_v43 }
 0x52f   : > { %3474 = vmatprep.subr.mxu0 %v3415_v44 }
 0x530   : > { %3475 = vmatpush1.msra.mxu0 %v3414_v45 }
 0x531   : > { %3476 = vmatprep.subr.mxu0 %v3413_v46 }
 0x532   : > { %3477 = vmatpush1.msra.mxu0 %v3412_v47 }
 0x533   : > { %3478 = vmatprep.subr.mxu0 %v3411_v48 }
 0x534   : > { %3479 = vmatpush1.msra.mxu0 %v3410_v49 }
 0x535   : > { %3480 = vmatprep.subr.mxu0 %v3409_v50 }
 0x536   : > { %3481 = vmatpush1.msra.mxu0 %v3408_v51 }
 0x537   : > { %3482 = vmatprep.subr.mxu0 %v3407_v52 }
 0x538   : > { %3483 = vmatpush1.msra.mxu0 %v3406_v53 }
 0x539   : > { %3484 = vmatprep.subr.mxu0 %v3405_v54 }
 0x53a   : > { %3485 = vmatpush1.msra.mxu0 %v3404_v55 }
 0x53b   : > { %3486 = vmatprep.subr.mxu0 %v3403_v56 }
 0x53c   : > { %3487 = vmatpush1.msra.mxu0 %v3402_v57 }
 0x53d   : > { %3488 = vmatprep.subr.mxu0 %v3401_v58 }
 0x53e   : > { %3489 = vmatpush1.msra.mxu0 %v3400_v59 }
 0x53f   : > { %3490 = vmatprep.subr.mxu0 %v3399_v61 }
 0x540   : > { %3491 = vmatpush1.msra.mxu0 %v3398_v62 }
 0x541   : > { %3492 = vmatprep.subr.mxu0 %v3397_v63 }
 0x542   : > { %3493 = vmatpush1.msra.mxu0 %v3396_v2 }
 0x543   : > { %3494 = vmatprep.subr.mxu0 %v3395_v3 }
 0x544   : > { %3495 = vmatpush1.msra.mxu0 %v3394_v4 }
 0x545   : > { %3496 = vmatprep.subr.mxu0 %v3457_v5 }
 0x546   : > { %3497 = vmatpush2.msra.mxu0 %v3456_v7 }
 0x547   : > { %3498 = vmatprep.subr.mxu0 %v3455_v8 }
 0x548   : > { %3499 = vmatpush2.msra.mxu0 %v3454_v9 }
 0x549   : > { %3500 = vmatprep.subr.mxu0 %v3453_v10 }
 0x54a   : > { %3501 = vmatpush2.msra.mxu0 %v3452_v11 }
 0x54b   : > { %3502 = vmatprep.subr.mxu0 %v3451_v12 }
 0x54c   : > { %3503 = vmatpush2.msra.mxu0 %v3450_v13 }
 0x54d   : > { %3504 = vmatprep.subr.mxu0 %v3449_v14 }
 0x54e   : > { %3505 = vmatpush2.msra.mxu0 %v3448_v60 }
 0x54f   : > { %3506 = vmatprep.subr.mxu0 %v3447_v15 }
 0x550   : > { %3507 = vmatpush2.msra.mxu0 %v3446_v16 }
 0x551   : > { %3508 = vmatprep.subr.mxu0 %v3445_v0 }
 0x552   : > { %3509 = vmatpush2.msra.mxu0 %v3444_v17 }
 0x553   : > { %3510 = vmatprep.subr.mxu0 %v3443_v18 }
 0x554   : > { %3511 = vmatpush2.msra.mxu0 %v3442_v19 }
 0x555   : > { %3512 = vmatprep.subr.mxu0 %v3441_v20 }
 0x556   : > { %3513 = vmatpush2.msra.mxu0 %v3440_v21 }
 0x557   : > { %3514 = vmatprep.subr.mxu0 %v3439_v1 }
 0x558   : > { %3515 = vmatpush2.msra.mxu0 %v3438_v22 }
 0x559   : > { %3516 = vmatprep.subr.mxu0 %v3437_v23 }
 0x55a   : > { %3517 = vmatpush2.msra.mxu0 %v3436_v24 }
 0x55b   : > { %3518 = vmatprep.subr.mxu0 %v3435_v25 }
 0x55c   : > { %3519 = vmatpush2.msra.mxu0 %v3434_v26 }
 0x55d   : > { %3520 = vmatprep.subr.mxu0 %v3433_v27 }
 0x55e   : > { %3521 = vmatpush2.msra.mxu0 %v3432_v28 }
 0x55f   : > { %3522 = vmatprep.subr.mxu0 %v3431_v29 }
 0x560   : > { %3523 = vmatpush2.msra.mxu0 %v3430_v30 }
 0x561   : > { %3524 = vmatprep.subr.mxu0 %v3429_v31 }
 0x562   : > { %3525 = vmatpush2.msra.mxu0 %v3428_v32 }
 0x563   : > { %3526 = vmatprep.subr.mxu0 %v3427_v33 }
 0x564   : > { %3527 = vmatpush2.msra.mxu0 %v3426_v35 }
 0x565   : > { %3529 = vmatmul.mubr.f32.vlgmr.msra.gmra.mxu0 %v3460_v36 }
 0x5e2   : > { %v3386_v38 = vpop.f32.mrf.mxu1 }
 0x5e4   : > { %v3388_v40 = vpop.f32.mrf.mxu1 }
 0x5e5   : > { %v3315_v37 = vpop.f32.mrf.mxu0 }
 0x5e6   : > { %v3387_v39 = vadd.f32 %v3386_v38, %v3315_v37 }
 0x5e7   : > { %v3317_v6 = vpop.f32.mrf.mxu0 }
 0x5e8   : > { %v3389_v42 = vadd.f32 %v3388_v40, %v3317_v6 }
 0x625   : > { %v3530_v41 = vpop.f32.mrf.mxu0 }
 0x626   : > { %v3535_v43 = vadd.f32 %v3530_v41, %v3387_v39 }
 0x627   : > { %v3532_v44 = vpop.f32.mrf.mxu0 }
 0x628   : > { %v3537_v45 = vsub.f32 0.0, %v3535_v43  ;;  %v3536_v46 = vadd.f32 %v3532_v44, %v3389_v42 }
 0x62a   : > { %v3539_v47 = vmul.f32 1.442695, %v3537_v45  ;;  %v3538_v48 = vsub.f32 0.0, %v3536_v46 }
 0x62c   : > { %3894 = vpow2.f32 %v3539_v47  ;;  %v3541_v49 = vmul.f32 1.442695, %v3538_v48 }
 0x62e   : > { %3896 = vpow2.f32 %v3541_v49 }
 0x639   : > { %v3895_v50 = vpop.eup %3894 }
 0x63a   : > { %v3543_v51 = vadd.f32 1.0, %v3895_v50 }
 0x63b   : > { %v3897_v52 = vpop.eup %3896 }
 0x63c   : > { %v3544_v53 = vadd.f32 1.0, %v3897_v52  ;;  %3898 = vrcp.f32 %v3543_v51 }
 0x63e   : > { %3900 = vrcp.f32 %v3544_v53 }
 0x649   : > { %v3899_v54 = vpop.eup %3898 }
 0x64b   : > { %v3901_v55 = vpop.eup %3900 }
 0x64c   : > { %v3551_v56 = vcombine.low %v3899_v54, %v3901_v55 }
 0x64e   : > { %3553 = vst [vmem:[%s344_s7] sm:$0xff] %v3551_v56 }
 0x64f PF: > { %p19_p0 = scmp.ge.s32.totalorder %s4261_s29, 4   ;;  %s4508_s21 = smov %s4098_s22 }
 0x650   : > { %s4509_s22 = smov %s4102_s23  ;;  %s4510_s23 = smov %s4272_s30 }
 0x651   : > { %s4511_s24 = smov %s4261_s29  ;;  %21 = sbr.rel (!%p19_p0) target bundleno = 6 (0x6), region = 140 }
 0x656   :  { %3575 = vsyncpa [#allocation8], 1 }
 0x657   :  { %3577 = vsyncpa [#allocation8 + $0x1], 1 }
 0x658   :  { %3578 = vsyncpa [#allocation10], 1 }
 0x659   :  { %3579 = vsyncpa [#allocation13], 1 }
 0x65a   :  { %3580 = vsyncpa [#allocation16], 1 }

</bundles_post_ra>
